<compile_context>
chip_gen: v5e
topology: v5e:2x2
jax: 0.10.0
libtpu: 0.0.40
codegen_flags: <defaults>
</compile_context>

<pallas_src>
import functools

import jax
import jax.numpy as jnp
from jax import lax
from jax.experimental import pallas as pl
from jax.experimental.pallas import tpu as pltpu


# ==========================================================================
# In-kernel helpers
# ==========================================================================

def _layernorm(x, w, b, eps=1e-5):
    """Row-wise layernorm of a 2-D f32 value; w/b are (1, D)."""
    mu = jnp.mean(x, axis=-1, keepdims=True)
    var = jnp.mean(jnp.square(x - mu), axis=-1, keepdims=True)
    return (x - mu) * lax.rsqrt(var + eps) * w + b


def _gelu_exact(x):
    return 0.5 * x * (1.0 + lax.erf(x * 0.7071067811865476))


# ==========================================================================
# Kernel 1: input projection (conv-as-matmul + LayerNorm + embedding add)
# ==========================================================================

def _input_proj_kernel(p_ref, cw_ref, cb_ref, lnw_ref, lnb_ref, emb_ref,
                       o_ref, *, eps=1e-5):
    bblk, n, kp = p_ref.shape
    dim = cw_ref.shape[-1]
    p = p_ref[...].reshape(bblk * n, kp)                         # bf16
    y = jnp.dot(p, cw_ref[...], preferred_element_type=jnp.float32) + cb_ref[...]
    y = y.reshape(bblk, n, dim)
    # LayerNorm([dim, H/2, W/2]): normalize over the whole (N, dim) slab per
    # batch element (channel-last layout of the PyTorch (c, h, w) affine).
    mu = jnp.mean(jnp.mean(y, axis=2, keepdims=True), axis=1, keepdims=True)
    d = y - mu
    var = jnp.mean(jnp.mean(d * d, axis=2, keepdims=True), axis=1, keepdims=True)
    yn = d * lax.rsqrt(var + eps) * lnw_ref[...][None] + lnb_ref[...][None]
    # Scattering embedding projection was hoisted out of the kernel (batch-free).
    o_ref[...] = (yn + emb_ref[...][None]).astype(o_ref.dtype)


# ==========================================================================
# Kernel 2: the whole transformer stack (+ fused MultiplicativeNoiseLayer)
# ==========================================================================

def _block_stack_kernel(x_ref, ln1w_ref, ln1b_ref, qkvw_ref, qkvb_ref,
                        pw_ref, pb_ref, ln2w_ref, ln2b_ref,
                        f1w_ref, f1b_ref, f2w_ref, f2b_ref, noise_ref,
                        o_ref, xbuf_ref, *, num_heads, alpha):
    layer = pl.program_id(1)
    depth = pl.num_programs(1)
    bblk, n, c = x_ref.shape
    hd = c // num_heads
    scale = hd ** -0.5
    bf16 = jnp.bfloat16

    # Load the residual stream into the VMEM carry at the first layer.
    @pl.when(layer == 0)
    def _():
        xbuf_ref[...] = x_ref[...].astype(jnp.float32)

    x = xbuf_ref[...]                                            # (Bblk, N, C) f32
    x2 = x.reshape(bblk * n, c)

    # ---- LN1 + fused qkv projection (one (M, C)@(C, 3C) MXU matmul) ----
    h = _layernorm(x2, ln1w_ref[0], ln1b_ref[0])
    qkv = jnp.dot(h.astype(bf16), qkvw_ref[0],
                  preferred_element_type=jnp.float32) + qkvb_ref[0]

    # ---- per-(batch, head) attention; qkv columns are ordered (qkv, head, hd)
    #      exactly like the PyTorch reshape(B, N, 3, heads, hd). ----
    ctx_rows = []
    for b in range(bblk):
        r = b * n
        heads_out = []
        for head in range(num_heads):
            q = qkv[r:r + n, head * hd:(head + 1) * hd]
            k = qkv[r:r + n, c + head * hd:c + (head + 1) * hd]
            v = qkv[r:r + n, 2 * c + head * hd:2 * c + (head + 1) * hd]
            s = lax.dot_general(q.astype(bf16), k.astype(bf16),
                                (((1,), (1,)), ((), ())),
                                preferred_element_type=jnp.float32) * scale
            p = jnp.exp(s - jnp.max(s, axis=-1, keepdims=True))
            p = p * pl.reciprocal(jnp.sum(p, axis=-1, keepdims=True), approx=True)
            heads_out.append(jnp.dot(p.astype(bf16), v.astype(bf16),
                                     preferred_element_type=jnp.float32))
        ctx_rows.append(jnp.concatenate(heads_out, axis=-1))     # (N, C)
    ctx = ctx_rows[0] if bblk == 1 else jnp.concatenate(ctx_rows, axis=0)

    # ---- fused output projection (one (M, C)@(C, C) matmul) ----
    attn = jnp.dot(ctx.astype(bf16), pw_ref[0],
                   preferred_element_type=jnp.float32) + pb_ref[0]
    # (attn_drop / proj_drop: eval mode -> identity)

    # ---- LN2 + MLP; a single residual wraps the whole sequential block ----
    # TODO(synk): add kv / hidden-dim tiling (flash-style) for long sequences;
    # at these sizes everything fits VMEM comfortably on all generations.
    h2 = _layernorm(attn, ln2w_ref[0], ln2b_ref[0])
    m = jnp.dot(h2.astype(bf16), f1w_ref[0],
                preferred_element_type=jnp.float32) + f1b_ref[0]
    m = _gelu_exact(m)
    m = jnp.dot(m.astype(bf16), f2w_ref[0],
                preferred_element_type=jnp.float32) + f2b_ref[0]
    # (Dropout: eval mode -> identity)

    out = (x2 + m).reshape(bblk, n, c)                           # residual
    xbuf_ref[...] = out

    @pl.when(layer == depth - 1)
    def _():
        # MultiplicativeNoiseLayer fused into the last layer's epilogue:
        # out + (1 - alpha) * sqrt(out) * noise  (sqrt(neg) -> NaN, as in torch).
        noisy = out + (1.0 - alpha) * jnp.sqrt(out) * noise_ref[...].astype(jnp.float32)
        o_ref[...] = noisy.astype(o_ref.dtype)


# ==========================================================================
# Kernel 3: ConvTranspose2d(k=7, s=2, p=3, op=1) + Tanh as a sub-pixel matmul
# ==========================================================================

def _deconv_kernel(xp_ref, wt_ref, b_ref, o_ref, *, H2, W2):
    n = H2 * W2
    cin4 = o_ref.shape[1]
    xpv = xp_ref[0].astype(jnp.float32)                          # (H2+3, W2+3, dim)
    dim = xpv.shape[-1]
    acc = jnp.zeros((cin4, n), jnp.float32)
    t = 0
    for dy in range(-1, 3):
        for dx in range(-1, 3):
            # Tap sliced straight from the padded activation (no HBM gather).
            xt = xpv[1 + dy:1 + dy + H2, 1 + dx:1 + dx + W2, :].reshape(n, dim)
            # (4*Cin, dim) x (N, dim)^T -> (4*Cin, N): token dim on lanes.
            acc = acc + lax.dot_general(wt_ref[t], xt.astype(jnp.bfloat16),
                                        (((1,), (1,)), ((), ())),
                                        preferred_element_type=jnp.float32)
            t += 1
    o_ref[0] = jnp.tanh(acc + b_ref[...])


# ==========================================================================
# Pallas wrappers
# ==========================================================================

def _pick_bblk(batch):
    # Keep >= 2 parallel grid steps when B >= 2 (v7x has two TensorCores); for
    # larger batches B/2 batch elements are still folded into the matmul M dim.
    if batch >= 2 and batch % 2 == 0:
        return batch // 2
    return 1


def input_proj(patches, conv_w_mat, conv_b, ln_w, ln_b, emb, bblk):
    """patches: (B, N, Kp) bf16 -> (B, N, dim) bf16 (conv + LN + embedding)."""
    B, N, Kp = patches.shape
    dim = conv_w_mat.shape[-1]
    nb = B // bblk

    def full(a):
        return pl.BlockSpec(a.shape, lambda i, _nd=a.ndim: (0,) * _nd)

    return pl.pallas_call(
        _input_proj_kernel,
        out_shape=jax.ShapeDtypeStruct((B, N, dim), jnp.bfloat16),
        grid=(nb,),
        in_specs=[pl.BlockSpec((bblk, N, Kp), lambda i: (i, 0, 0)),
                  full(conv_w_mat), full(conv_b), full(ln_w), full(ln_b),
                  full(emb)],
        out_specs=pl.BlockSpec((bblk, N, dim), lambda i: (i, 0, 0)),
        compiler_params=pltpu.CompilerParams(dimension_semantics=("parallel",)),
    )(patches, conv_w_mat, conv_b, ln_w, ln_b, emb)


def block_stack(xs, noise, blocks, num_heads, alpha, bblk):
    """Run all transformer blocks (and the fused noise layer) in one call."""
    B, N, C = xs.shape
    depth = blocks["qkv_w"].shape[0]
    nb = B // bblk
    seq_spec = pl.BlockSpec((bblk, N, C), lambda b, l: (b, 0, 0))

    names = ("ln1_w", "ln1_b", "qkv_w", "qkv_b", "proj_w", "proj_b",
             "ln2_w", "ln2_b", "fc1_w", "fc1_b", "fc2_w", "fc2_b")
    wargs = [blocks[k] for k in names]

    def layer_spec(a):
        return pl.BlockSpec((1,) + a.shape[1:],
                            lambda b, l, _nd=a.ndim: (l,) + (0,) * (_nd - 1))

    kern = functools.partial(_block_stack_kernel, num_heads=num_heads, alpha=alpha)
    return pl.pallas_call(
        kern,
        out_shape=jax.ShapeDtypeStruct((B, N, C), jnp.bfloat16),
        grid=(nb, depth),
        in_specs=[seq_spec] + [layer_spec(a) for a in wargs] + [seq_spec],
        out_specs=seq_spec,
        scratch_shapes=[pltpu.VMEM((bblk, N, C), jnp.float32)],
        compiler_params=pltpu.CompilerParams(
            dimension_semantics=("parallel", "arbitrary"),
            vmem_limit_bytes=32 * 1024 * 1024),
    )(xs, *wargs, noise)


def output_deconv(xs, w_taps, b4, H2, W2):
    """xs: (B, N, dim) bf16 -> (B, Cin, 2*H2, 2*W2) f32 via sub-pixel deconv."""
    B, N, C = xs.shape
    cin4 = w_taps.shape[1]
    img = xs.reshape(B, H2, W2, C)
    # One small zero-pad so every sub-pixel tap is a plain in-kernel slice.
    xp = jnp.pad(img, ((0, 0), (1, 2), (1, 2), (0, 0)))
    out_t = pl.pallas_call(
        functools.partial(_deconv_kernel, H2=H2, W2=W2),
        out_shape=jax.ShapeDtypeStruct((B, cin4, N), jnp.float32),
        grid=(B,),
        in_specs=[
            pl.BlockSpec((1, H2 + 3, W2 + 3, C), lambda i: (i, 0, 0, 0)),
            pl.BlockSpec(w_taps.shape, lambda i: (0, 0, 0)),
            pl.BlockSpec(b4.shape, lambda i: (0, 0)),
        ],
        out_specs=pl.BlockSpec((1, cin4, N), lambda i: (i, 0, 0)),
        compiler_params=pltpu.CompilerParams(dimension_semantics=("parallel",)),
    )(xp, w_taps, b4)
    cin = cin4 // 4
    out = out_t.reshape(B, 2, 2, cin, H2, W2).transpose(0, 3, 4, 1, 5, 2)
    return out.reshape(B, cin, 2 * H2, 2 * W2)


# ==========================================================================
# Pure-layout JAX glue (patch extraction / weight rearrangement)
# ==========================================================================

def im2col(x, k, stride, pad):
    """x: (B, C, H, W) -> (B, Ho*Wo, C*k*k) patches, column order (c, kh, kw)."""
    B, C, H, W = x.shape
    xp = jnp.pad(x, ((0, 0), (0, 0), (pad, pad), (pad, pad)))
    Ho = (H + 2 * pad - k) // stride + 1
    Wo = (W + 2 * pad - k) // stride + 1
    cols = []
    for kh in range(k):
        for kw in range(k):
            cols.append(xp[:, :, kh:kh + stride * Ho:stride, kw:kw + stride * Wo:stride])
    patches = jnp.stack(cols, axis=2)                            # (B, C, k*k, Ho, Wo)
    patches = patches.reshape(B, C * k * k, Ho * Wo).transpose(0, 2, 1)
    return patches, Ho, Wo


def build_deconv_taps(w, b):
    """ConvTranspose2d(dim->cin, k=7, s=2, p=3, op=1) weight (dim, cin, 7, 7) ->
    (16, 4*cin, dim) per-tap slabs (tap = (dy, dx) in [-1, 2]^2, rows ordered
    (py, px, cout)) plus a (4*cin, 1) bias, implementing the sub-pixel identity
    out[c, 2i+py, 2j+px] = sum_{dy,dx,ci} x[ci, i+dy, j+dx] * w[ci, c, py+3-2dy, px+3-2dx]."""
    dim, cin, k, _ = w.shape
    taps = []
    for dy in range(-1, 3):
        for dx in range(-1, 3):
            rows = []
            for py in (0, 1):
                for px in (0, 1):
                    kh = py + 3 - 2 * dy
                    kw = px + 3 - 2 * dx
                    if 0 <= kh < k and 0 <= kw < k:
                        rows.append(w[:, :, kh, kw].T)            # (cin, dim)
                    else:
                        rows.append(jnp.zeros((cin, dim), w.dtype))
            taps.append(jnp.concatenate(rows, axis=0))            # (4*cin, dim)
    w_taps = jnp.stack(taps, axis=0)                              # (16, 4*cin, dim)
    b4 = jnp.tile(b, 4).reshape(4 * cin, 1)                       # (4*cin, 1)
    return w_taps, b4


# ==========================================================================
# Parameters
# ==========================================================================

def init_params(key, in_channels, dim, depth, num_heads, mlp_ratio, num_tokens):
    hidden = int(dim * mlp_ratio)
    keys = iter(jax.random.split(key, 8 + 10 * depth))

    def nrm(shape, scale=0.02):
        return scale * jax.random.normal(next(keys), shape, jnp.float32)

    # input_proj: Conv2d(in_ch -> dim, k=7, s=2, p=3), PyTorch weight layout.
    conv_w = nrm((dim, in_channels, 7, 7), 0.05)
    K = in_channels * 49
    Kp = ((K + 127) // 128) * 128                                 # lane-align K
    conv_w_mat = jnp.pad(conv_w.reshape(dim, K).T, ((0, Kp - K), (0, 0)))

    # output_proj: ConvTranspose2d(dim -> in_ch, k=7, s=2, p=3, op=1).
    deconv_w = nrm((dim, in_channels, 7, 7), 0.05)
    deconv_b = nrm((in_channels,), 0.05)
    w_taps, b4 = build_deconv_taps(deconv_w, deconv_b)

    params = {
        "conv_w_mat": conv_w_mat.astype(jnp.bfloat16),            # (Kp, dim)
        "conv_b": nrm((1, dim), 0.05),
        # LayerNorm([dim, H/2, W/2]) affine stored channel-last ((h*w, c));
        # loading a real checkpoint needs a (c,h,w)->(h*w,c) permutation.
        "ln_in_w": jnp.ones((num_tokens, dim), jnp.float32),
        "ln_in_b": jnp.zeros((num_tokens, dim), jnp.float32),
        # TODO(synk): the original x + embedding add does not broadcast for
        # num_mechanisms=3; num_mechanisms is set to the token count here.
        "scat_emb": jax.random.normal(next(keys), (num_tokens, dim), jnp.float32),
        "scat_proj_w": nrm((dim, dim)),                           # torch (out, in)
        "scat_proj_b": nrm((dim,)),
        "deconv_taps": w_taps.astype(jnp.bfloat16),               # (16, 4*Cin, dim)
        "deconv_b4": b4,                                          # (4*Cin, 1)
    }

    blk = {k: [] for k in ("ln1_w", "ln1_b", "qkv_w", "qkv_b", "proj_w",
                           "proj_b", "ln2_w", "ln2_b", "fc1_w", "fc1_b",
                           "fc2_w", "fc2_b")}
    for _ in range(depth):
        qkv_w = nrm((3 * dim, dim))                 # nn.Linear(dim, 3*dim), (out, in)
        qkv_b = nrm((3 * dim,))
        proj_w = nrm((dim, dim))
        fc1_w = nrm((hidden, dim))
        fc2_w = nrm((dim, hidden))
        blk["ln1_w"].append(jnp.ones((1, dim), jnp.float32))
        blk["ln1_b"].append(jnp.zeros((1, dim), jnp.float32))
        blk["qkv_w"].append(qkv_w.T)                # (dim, 3*dim), cols = (qkv, head, hd)
        blk["qkv_b"].append(qkv_b.reshape(1, 3 * dim))
        blk["proj_w"].append(proj_w.T)              # (dim, dim)
        blk["proj_b"].append(nrm((1, dim)))
        blk["ln2_w"].append(jnp.ones((1, dim), jnp.float32))
        blk["ln2_b"].append(jnp.zeros((1, dim), jnp.float32))
        blk["fc1_w"].append(fc1_w.T)                # (dim, hidden)
        blk["fc1_b"].append(nrm((1, hidden)))
        blk["fc2_w"].append(fc2_w.T)                # (hidden, dim)
        blk["fc2_b"].append(nrm((1, dim)))

    bf16_keys = {"qkv_w", "proj_w", "fc1_w", "fc2_w"}
    params["blocks"] = {
        k: jnp.stack(v, axis=0).astype(jnp.bfloat16 if k in bf16_keys else jnp.float32)
        for k, v in blk.items()
    }
    return params


# ==========================================================================
# Forward pass
# ==========================================================================

def _forward(params, x, noise, num_heads):
    B, Cin, H, W = x.shape
    bblk = _pick_bblk(B)

    # input_proj: Conv2d(k=7,s=2,p=3) + LayerNorm + scattering embedding.
    # TODO(synk): the 7x7/stride-2 patch gather stays wrapper-side (in_ch=2, so
    # the im2col duplication is negligible); fuse it in-kernel for wide inputs.
    patches, H2, W2 = im2col(x, k=7, stride=2, pad=3)             # (B, N, Cin*49)
    Kp = params["conv_w_mat"].shape[0]
    patches = jnp.pad(patches, ((0, 0), (0, 0), (0, Kp - patches.shape[-1])))
    # Scattering-embedding projection hoisted out of the kernel (batch-free).
    emb = params["scat_emb"] @ params["scat_proj_w"].T + params["scat_proj_b"]
    xs = input_proj(patches.astype(jnp.bfloat16), params["conv_w_mat"],
                    params["conv_b"], params["ln_in_w"], params["ln_in_b"],
                    emb, bblk)                                    # (B, N, dim) bf16

    # All transformer blocks + MultiplicativeNoiseLayer in one pallas_call.
    xs = block_stack(xs, noise.astype(jnp.bfloat16), params["blocks"],
                     num_heads, 0.9, bblk)                        # (B, N, dim) bf16

    # output_proj: ConvTranspose2d(k=7,s=2,p=3,op=1) + Tanh (fused sub-pixel).
    return output_deconv(xs, params["deconv_taps"], params["deconv_b4"], H2, W2)


forward = jax.jit(_forward, static_argnums=(3,))


# ==========================================================================
# Main
# ==========================================================================

if __name__ == "__main__":
    B, IN_CH, H, W = 2, 2, 16, 16
    DIM, DEPTH, HEADS, MLP_RATIO = 32, 2, 4, 4.0

    H2, W2 = H // 2, W // 2
    N_TOK = H2 * W2

    key = jax.random.PRNGKey(0)
    kx, kn, kp = jax.random.split(key, 3)
    x = jax.random.normal(kx, (B, IN_CH, H, W), jnp.float32)
    # randn_like for the MultiplicativeNoiseLayer, supplied channel-last (B, N, dim).
    noise = jax.random.normal(kn, (B, N_TOK, DIM), jnp.float32)

    params = init_params(kp, IN_CH, DIM, DEPTH, HEADS, MLP_RATIO, N_TOK)

    out = forward(params, x, noise, HEADS)
    out = jax.block_until_ready(out)
    assert out.shape == (B, IN_CH, H, W), out.shape
    print("KERNEL_OK")
</pallas_src>

<mosaic_0001>
module attributes {stable_mosaic.version = 11 : i64} {
  func.func @_input_proj_kernel(%arg0: i32, %arg1: memref<1x64x128xbf16, #tpu.memory_space<vmem>>, %arg2: memref<128x32xbf16, #tpu.memory_space<vmem>>, %arg3: memref<1x32xf32, #tpu.memory_space<vmem>>, %arg4: memref<64x32xf32, #tpu.memory_space<vmem>>, %arg5: memref<64x32xf32, #tpu.memory_space<vmem>>, %arg6: memref<64x32xf32, #tpu.memory_space<vmem>>, %arg7: memref<1x64x32xbf16, #tpu.memory_space<vmem>>) attributes {dimension_semantics = [#tpu.dimension_semantics<parallel>], iteration_bounds = array<i64: 2>, scalar_prefetch = 0 : i64, scratch_operands = 0 : i64, tpu.core_type = #tpu.core_type<tc>, window_params = [{transform_indices = @transform_0, window_bounds = array<i64: 1, 64, 128>}, {pipeline_mode = #tpu.pipeline_mode<synchronous>, transform_indices = @transform_1, window_bounds = array<i64: 128, 32>}, {pipeline_mode = #tpu.pipeline_mode<synchronous>, transform_indices = @transform_2, window_bounds = array<i64: 1, 32>}, {pipeline_mode = #tpu.pipeline_mode<synchronous>, transform_indices = @transform_3, window_bounds = array<i64: 64, 32>}, {pipeline_mode = #tpu.pipeline_mode<synchronous>, transform_indices = @transform_4, window_bounds = array<i64: 64, 32>}, {pipeline_mode = #tpu.pipeline_mode<synchronous>, transform_indices = @transform_5, window_bounds = array<i64: 64, 32>}, {transform_indices = @transform_6, window_bounds = array<i64: 1, 64, 32>}]} {
    %c0 = arith.constant 0 : index
    %c0_0 = arith.constant 0 : index
    %c0_1 = arith.constant 0 : index
    %0 = vector.load %arg1[%c0, %c0_0, %c0_1] : memref<1x64x128xbf16, #tpu.memory_space<vmem>>, vector<1x64x128xbf16>
    %1 = vector.shape_cast %0 : vector<1x64x128xbf16> to vector<64x128xbf16>
    %c0_2 = arith.constant 0 : index
    %c0_3 = arith.constant 0 : index
    %2 = vector.load %arg2[%c0_2, %c0_3] : memref<128x32xbf16, #tpu.memory_space<vmem>>, vector<128x32xbf16>
    %cst = arith.constant dense<0.000000e+00> : vector<64x32xf32>
    %3 = tpu.matmul %1, %2, %cst {dimension_numbers = #tpu.dot_dimension_numbers<[1], [0], [0], [1], [0, 0, 1, 1], [], []>} : vector<64x128xbf16>, vector<128x32xbf16>, vector<64x32xf32> -> vector<64x32xf32>
    %c0_4 = arith.constant 0 : index
    %c0_5 = arith.constant 0 : index
    %4 = vector.load %arg3[%c0_4, %c0_5] : memref<1x32xf32, #tpu.memory_space<vmem>>, vector<1x32xf32>
    %5 = vector.broadcast %4 : vector<1x32xf32> to vector<64x32xf32>
    %6 = arith.addf %3, %5 : vector<64x32xf32>
    %7 = vector.shape_cast %6 : vector<64x32xf32> to vector<1x64x32xf32>
    %cst_6 = arith.constant dense<0.000000e+00> : vector<1x64xf32>
    %8 = vector.multi_reduction <add>, %7, %cst_6 [2] : vector<1x64x32xf32> to vector<1x64xf32>
    %9 = vector.shape_cast %8 : vector<1x64xf32> to vector<1x64x1xf32>
    %cst_7 = arith.constant 3.200000e+01 : f32
    %10 = vector.broadcast %cst_7 : f32 to vector<1x64x1xf32>
    %11 = arith.divf %9, %10 : vector<1x64x1xf32>
    %cst_8 = arith.constant dense<0.000000e+00> : vector<1x1xf32>
    %12 = vector.multi_reduction <add>, %11, %cst_8 [1] : vector<1x64x1xf32> to vector<1x1xf32>
    %13 = vector.shape_cast %12 : vector<1x1xf32> to vector<1x1x1xf32>
    %cst_9 = arith.constant 6.400000e+01 : f32
    %14 = vector.broadcast %cst_9 : f32 to vector<1x1x1xf32>
    %15 = arith.divf %13, %14 : vector<1x1x1xf32>
    %16 = vector.broadcast %15 : vector<1x1x1xf32> to vector<1x64x32xf32>
    %17 = arith.subf %7, %16 : vector<1x64x32xf32>
    %18 = arith.mulf %17, %17 : vector<1x64x32xf32>
    %cst_10 = arith.constant dense<0.000000e+00> : vector<1x64xf32>
    %19 = vector.multi_reduction <add>, %18, %cst_10 [2] : vector<1x64x32xf32> to vector<1x64xf32>
    %20 = vector.shape_cast %19 : vector<1x64xf32> to vector<1x64x1xf32>
    %cst_11 = arith.constant 3.200000e+01 : f32
    %21 = vector.broadcast %cst_11 : f32 to vector<1x64x1xf32>
    %22 = arith.divf %20, %21 : vector<1x64x1xf32>
    %cst_12 = arith.constant dense<0.000000e+00> : vector<1x1xf32>
    %23 = vector.multi_reduction <add>, %22, %cst_12 [1] : vector<1x64x1xf32> to vector<1x1xf32>
    %24 = vector.shape_cast %23 : vector<1x1xf32> to vector<1x1x1xf32>
    %cst_13 = arith.constant 6.400000e+01 : f32
    %25 = vector.broadcast %cst_13 : f32 to vector<1x1x1xf32>
    %26 = arith.divf %24, %25 : vector<1x1x1xf32>
    %cst_14 = arith.constant 9.99999974E-6 : f32
    %27 = vector.broadcast %cst_14 : f32 to vector<1x1x1xf32>
    %28 = arith.addf %26, %27 : vector<1x1x1xf32>
    %29 = math.rsqrt %28 : vector<1x1x1xf32>
    %30 = vector.broadcast %29 : vector<1x1x1xf32> to vector<1x64x32xf32>
    %31 = arith.mulf %17, %30 : vector<1x64x32xf32>
    %c0_15 = arith.constant 0 : index
    %c0_16 = arith.constant 0 : index
    %32 = vector.load %arg4[%c0_15, %c0_16] : memref<64x32xf32, #tpu.memory_space<vmem>>, vector<64x32xf32>
    %33 = vector.shape_cast %32 : vector<64x32xf32> to vector<1x64x32xf32>
    %34 = arith.mulf %31, %33 : vector<1x64x32xf32>
    %c0_17 = arith.constant 0 : index
    %c0_18 = arith.constant 0 : index
    %35 = vector.load %arg5[%c0_17, %c0_18] : memref<64x32xf32, #tpu.memory_space<vmem>>, vector<64x32xf32>
    %36 = vector.shape_cast %35 : vector<64x32xf32> to vector<1x64x32xf32>
    %37 = arith.addf %34, %36 : vector<1x64x32xf32>
    %c0_19 = arith.constant 0 : index
    %c0_20 = arith.constant 0 : index
    %38 = vector.load %arg6[%c0_19, %c0_20] : memref<64x32xf32, #tpu.memory_space<vmem>>, vector<64x32xf32>
    %39 = vector.shape_cast %38 : vector<64x32xf32> to vector<1x64x32xf32>
    %40 = arith.addf %37, %39 : vector<1x64x32xf32>
    %41 = arith.truncf %40 : vector<1x64x32xf32> to vector<1x64x32xbf16>
    %c0_21 = arith.constant 0 : index
    %c0_22 = arith.constant 0 : index
    %c0_23 = arith.constant 0 : index
    %42 = vector.load %arg7[%c0_21, %c0_22, %c0_23] : memref<1x64x32xbf16, #tpu.memory_space<vmem>>, vector<1x64x32xbf16>
    tpu.vector_store %arg7[%c0_21, %c0_22, %c0_23], %41 {strides = array<i32>} : memref<1x64x32xbf16, #tpu.memory_space<vmem>>, vector<1x64x32xbf16>,
    return
  }
  func.func @transform_0(%arg0: i32) -> (i32, i32, i32) {
    %c0_i32 = arith.constant 0 : i32
    %c0_i32_0 = arith.constant 0 : i32
    %c0_i32_1 = arith.constant 0 : i32
    return %arg0, %c0_i32, %c0_i32_0 : i32, i32, i32
  }
  func.func @transform_1(%arg0: i32) -> (i32, i32) {
    %c0_i32 = arith.constant 0 : i32
    %c0_i32_0 = arith.constant 0 : i32
    %c0_i32_1 = arith.constant 0 : i32
    return %c0_i32, %c0_i32_0 : i32, i32
  }
  func.func @transform_2(%arg0: i32) -> (i32, i32) {
    %c0_i32 = arith.constant 0 : i32
    %c0_i32_0 = arith.constant 0 : i32
    %c0_i32_1 = arith.constant 0 : i32
    return %c0_i32, %c0_i32_0 : i32, i32
  }
  func.func @transform_3(%arg0: i32) -> (i32, i32) {
    %c0_i32 = arith.constant 0 : i32
    %c0_i32_0 = arith.constant 0 : i32
    %c0_i32_1 = arith.constant 0 : i32
    return %c0_i32, %c0_i32_0 : i32, i32
  }
  func.func @transform_4(%arg0: i32) -> (i32, i32) {
    %c0_i32 = arith.constant 0 : i32
    %c0_i32_0 = arith.constant 0 : i32
    %c0_i32_1 = arith.constant 0 : i32
    return %c0_i32, %c0_i32_0 : i32, i32
  }
  func.func @transform_5(%arg0: i32) -> (i32, i32) {
    %c0_i32 = arith.constant 0 : i32
    %c0_i32_0 = arith.constant 0 : i32
    %c0_i32_1 = arith.constant 0 : i32
    return %c0_i32, %c0_i32_0 : i32, i32
  }
  func.func @transform_6(%arg0: i32) -> (i32, i32, i32) {
    %c0_i32 = arith.constant 0 : i32
    %c0_i32_0 = arith.constant 0 : i32
    %c0_i32_1 = arith.constant 0 : i32
    return %arg0, %c0_i32, %c0_i32_0 : i32, i32, i32
  }
}

module attributes {stable_mosaic.version = 11 : i64} {
  func.func @_block_stack_kernel(%arg0: i32, %arg1: i32, %arg2: memref<1x64x32xbf16, #tpu.memory_space<vmem>>, %arg3: memref<1x1x32xf32, #tpu.memory_space<vmem>>, %arg4: memref<1x1x32xf32, #tpu.memory_space<vmem>>, %arg5: memref<1x32x96xbf16, #tpu.memory_space<vmem>>, %arg6: memref<1x1x96xf32, #tpu.memory_space<vmem>>, %arg7: memref<1x32x32xbf16, #tpu.memory_space<vmem>>, %arg8: memref<1x1x32xf32, #tpu.memory_space<vmem>>, %arg9: memref<1x1x32xf32, #tpu.memory_space<vmem>>, %arg10: memref<1x1x32xf32, #tpu.memory_space<vmem>>, %arg11: memref<1x32x128xbf16, #tpu.memory_space<vmem>>, %arg12: memref<1x1x128xf32, #tpu.memory_space<vmem>>, %arg13: memref<1x128x32xbf16, #tpu.memory_space<vmem>>, %arg14: memref<1x1x32xf32, #tpu.memory_space<vmem>>, %arg15: memref<1x64x32xbf16, #tpu.memory_space<vmem>>, %arg16: memref<1x64x32xbf16, #tpu.memory_space<vmem>>, %arg17: memref<1x64x32xf32, #tpu.memory_space<vmem>>) attributes {dimension_semantics = [#tpu.dimension_semantics<parallel>, #tpu.dimension_semantics<arbitrary>], iteration_bounds = array<i64: 2, 2>, scalar_prefetch = 0 : i64, scratch_operands = 1 : i64, tpu.core_type = #tpu.core_type<tc>, window_params = [{transform_indices = @transform_0, window_bounds = array<i64: 1, 64, 32>}, {transform_indices = @transform_1, window_bounds = array<i64: 1, 1, 32>}, {transform_indices = @transform_2, window_bounds = array<i64: 1, 1, 32>}, {transform_indices = @transform_3, window_bounds = array<i64: 1, 32, 96>}, {transform_indices = @transform_4, window_bounds = array<i64: 1, 1, 96>}, {transform_indices = @transform_5, window_bounds = array<i64: 1, 32, 32>}, {transform_indices = @transform_6, window_bounds = array<i64: 1, 1, 32>}, {transform_indices = @transform_7, window_bounds = array<i64: 1, 1, 32>}, {transform_indices = @transform_8, window_bounds = array<i64: 1, 1, 32>}, {transform_indices = @transform_9, window_bounds = array<i64: 1, 32, 128>}, {transform_indices = @transform_10, window_bounds = array<i64: 1, 1, 128>}, {transform_indices = @transform_11, window_bounds = array<i64: 1, 128, 32>}, {transform_indices = @transform_12, window_bounds = array<i64: 1, 1, 32>}, {transform_indices = @transform_13, window_bounds = array<i64: 1, 64, 32>}, {transform_indices = @transform_14, window_bounds = array<i64: 1, 64, 32>}]} {
    %c0_i32 = arith.constant 0 : i32
    %0 = arith.cmpi eq, %arg1, %c0_i32 : i32
    %1 = arith.extui %0 : i1 to i32
    %c0_i32_0 = arith.constant 0 : i32
    %2 = arith.cmpi ne, %1, %c0_i32_0 : i32
    scf.if %2 {
      %c0_79 = arith.constant 0 : index
      %c0_80 = arith.constant 0 : index
      %c0_81 = arith.constant 0 : index
      %188 = vector.load %arg2[%c0_79, %c0_80, %c0_81] : memref<1x64x32xbf16, #tpu.memory_space<vmem>>, vector<1x64x32xbf16>
      %189 = arith.extf %188 : vector<1x64x32xbf16> to vector<1x64x32xf32>
      %c0_82 = arith.constant 0 : index
      %c0_83 = arith.constant 0 : index
      %c0_84 = arith.constant 0 : index
      %190 = vector.load %arg17[%c0_82, %c0_83, %c0_84] : memref<1x64x32xf32, #tpu.memory_space<vmem>>, vector<1x64x32xf32>
      tpu.vector_store %arg17[%c0_82, %c0_83, %c0_84], %189 {strides = array<i32>} : memref<1x64x32xf32, #tpu.memory_space<vmem>>, vector<1x64x32xf32>,
    } else {
    }
    %c0 = arith.constant 0 : index
    %c0_1 = arith.constant 0 : index
    %c0_2 = arith.constant 0 : index
    %3 = vector.load %arg17[%c0, %c0_1, %c0_2] : memref<1x64x32xf32, #tpu.memory_space<vmem>>, vector<1x64x32xf32>
    %4 = vector.shape_cast %3 : vector<1x64x32xf32> to vector<64x32xf32>
    %c0_3 = arith.constant 0 : index
    %c0_4 = arith.constant 0 : index
    %c0_5 = arith.constant 0 : index
    %5 = vector.load %arg3[%c0_3, %c0_4, %c0_5] : memref<1x1x32xf32, #tpu.memory_space<vmem>>, vector<1x1x32xf32>
    %6 = vector.shape_cast %5 : vector<1x1x32xf32> to vector<1x32xf32>
    %c0_6 = arith.constant 0 : index
    %c0_7 = arith.constant 0 : index
    %c0_8 = arith.constant 0 : index
    %7 = vector.load %arg4[%c0_6, %c0_7, %c0_8] : memref<1x1x32xf32, #tpu.memory_space<vmem>>, vector<1x1x32xf32>
    %8 = vector.shape_cast %7 : vector<1x1x32xf32> to vector<1x32xf32>
    %cst = arith.constant dense<0.000000e+00> : vector<64xf32>
    %9 = vector.multi_reduction <add>, %4, %cst [1] : vector<64x32xf32> to vector<64xf32>
    %10 = vector.shape_cast %9 : vector<64xf32> to vector<64x1xf32>
    %cst_9 = arith.constant 3.200000e+01 : f32
    %11 = vector.broadcast %cst_9 : f32 to vector<64x1xf32>
    %12 = arith.divf %10, %11 : vector<64x1xf32>
    %13 = vector.broadcast %12 : vector<64x1xf32> to vector<64x32xf32>
    %14 = arith.subf %4, %13 : vector<64x32xf32>
    %15 = arith.mulf %14, %14 : vector<64x32xf32>
    %cst_10 = arith.constant dense<0.000000e+00> : vector<64xf32>
    %16 = vector.multi_reduction <add>, %15, %cst_10 [1] : vector<64x32xf32> to vector<64xf32>
    %17 = vector.shape_cast %16 : vector<64xf32> to vector<64x1xf32>
    %cst_11 = arith.constant 3.200000e+01 : f32
    %18 = vector.broadcast %cst_11 : f32 to vector<64x1xf32>
    %19 = arith.divf %17, %18 : vector<64x1xf32>
    %20 = vector.broadcast %12 : vector<64x1xf32> to vector<64x32xf32>
    %21 = arith.subf %4, %20 : vector<64x32xf32>
    %cst_12 = arith.constant 9.99999974E-6 : f32
    %22 = vector.broadcast %cst_12 : f32 to vector<64x1xf32>
    %23 = arith.addf %19, %22 : vector<64x1xf32>
    %24 = math.rsqrt %23 : vector<64x1xf32>
    %25 = vector.broadcast %24 : vector<64x1xf32> to vector<64x32xf32>
    %26 = arith.mulf %21, %25 : vector<64x32xf32>
    %27 = vector.broadcast %6 : vector<1x32xf32> to vector<64x32xf32>
    %28 = arith.mulf %26, %27 : vector<64x32xf32>
    %29 = vector.broadcast %8 : vector<1x32xf32> to vector<64x32xf32>
    %30 = arith.addf %28, %29 : vector<64x32xf32>
    %31 = arith.truncf %30 : vector<64x32xf32> to vector<64x32xbf16>
    %c0_13 = arith.constant 0 : index
    %c0_14 = arith.constant 0 : index
    %c0_15 = arith.constant 0 : index
    %32 = vector.load %arg5[%c0_13, %c0_14, %c0_15] : memref<1x32x96xbf16, #tpu.memory_space<vmem>>, vector<1x32x96xbf16>
    %33 = vector.shape_cast %32 : vector<1x32x96xbf16> to vector<32x96xbf16>
    %cst_16 = arith.constant dense<0.000000e+00> : vector<64x96xf32>
    %34 = tpu.matmul %31, %33, %cst_16 {dimension_numbers = #tpu.dot_dimension_numbers<[1], [0], [0], [1], [0, 0, 1, 1], [], []>} : vector<64x32xbf16>, vector<32x96xbf16>, vector<64x96xf32> -> vector<64x96xf32>
    %c0_17 = arith.constant 0 : index
    %c0_18 = arith.constant 0 : index
    %c0_19 = arith.constant 0 : index
    %35 = vector.load %arg6[%c0_17, %c0_18, %c0_19] : memref<1x1x96xf32, #tpu.memory_space<vmem>>, vector<1x1x96xf32>
    %36 = vector.shape_cast %35 : vector<1x1x96xf32> to vector<1x96xf32>
    %37 = vector.broadcast %36 : vector<1x96xf32> to vector<64x96xf32>
    %38 = arith.addf %34, %37 : vector<64x96xf32>
    %39 = vector.extract_strided_slice %38 {offsets = [0, 0], sizes = [64, 8], strides = [1, 1]} : vector<64x96xf32> to vector<64x8xf32>
    %40 = vector.extract_strided_slice %38 {offsets = [0, 32], sizes = [64, 8], strides = [1, 1]} : vector<64x96xf32> to vector<64x8xf32>
    %41 = vector.extract_strided_slice %38 {offsets = [0, 64], sizes = [64, 8], strides = [1, 1]} : vector<64x96xf32> to vector<64x8xf32>
    %42 = arith.truncf %39 : vector<64x8xf32> to vector<64x8xbf16>
    %43 = arith.truncf %40 : vector<64x8xf32> to vector<64x8xbf16>
    %cst_20 = arith.constant dense<0.000000e+00> : vector<64x64xf32>
    %44 = tpu.matmul %42, %43, %cst_20 {dimension_numbers = #tpu.dot_dimension_numbers<[1], [1], [0], [0], [0, 0, 1, 0], [], []>} : vector<64x8xbf16>, vector<64x8xbf16>, vector<64x64xf32> -> vector<64x64xf32>
    %cst_21 = arith.constant 0.353553385 : f32
    %45 = vector.broadcast %cst_21 : f32 to vector<64x64xf32>
    %46 = arith.mulf %44, %45 : vector<64x64xf32>
    %cst_22 = arith.constant dense<0xFF800000> : vector<64xf32>
    %47 = vector.multi_reduction <maximumf>, %46, %cst_22 [1] : vector<64x64xf32> to vector<64xf32>
    %48 = vector.shape_cast %47 : vector<64xf32> to vector<64x1xf32>
    %49 = vector.broadcast %48 : vector<64x1xf32> to vector<64x64xf32>
    %50 = arith.subf %46, %49 : vector<64x64xf32>
    %51 = math.exp %50 : vector<64x64xf32>
    %cst_23 = arith.constant dense<0.000000e+00> : vector<64xf32>
    %52 = vector.multi_reduction <add>, %51, %cst_23 [1] : vector<64x64xf32> to vector<64xf32>
    %53 = vector.shape_cast %52 : vector<64xf32> to vector<64x1xf32>
    %54 = tpu.reciprocal %53 {approx = true} : vector<64x1xf32> -> vector<64x1xf32>
    %55 = vector.broadcast %54 : vector<64x1xf32> to vector<64x64xf32>
    %56 = arith.mulf %51, %55 : vector<64x64xf32>
    %57 = arith.truncf %56 : vector<64x64xf32> to vector<64x64xbf16>
    %58 = arith.truncf %41 : vector<64x8xf32> to vector<64x8xbf16>
    %cst_24 = arith.constant dense<0.000000e+00> : vector<64x8xf32>
    %59 = tpu.matmul %57, %58, %cst_24 {dimension_numbers = #tpu.dot_dimension_numbers<[1], [0], [0], [1], [0, 0, 1, 1], [], []>} : vector<64x64xbf16>, vector<64x8xbf16>, vector<64x8xf32> -> vector<64x8xf32>
    %60 = vector.extract_strided_slice %38 {offsets = [0, 8], sizes = [64, 8], strides = [1, 1]} : vector<64x96xf32> to vector<64x8xf32>
    %61 = vector.extract_strided_slice %38 {offsets = [0, 40], sizes = [64, 8], strides = [1, 1]} : vector<64x96xf32> to vector<64x8xf32>
    %62 = vector.extract_strided_slice %38 {offsets = [0, 72], sizes = [64, 8], strides = [1, 1]} : vector<64x96xf32> to vector<64x8xf32>
    %63 = arith.truncf %60 : vector<64x8xf32> to vector<64x8xbf16>
    %64 = arith.truncf %61 : vector<64x8xf32> to vector<64x8xbf16>
    %cst_25 = arith.constant dense<0.000000e+00> : vector<64x64xf32>
    %65 = tpu.matmul %63, %64, %cst_25 {dimension_numbers = #tpu.dot_dimension_numbers<[1], [1], [0], [0], [0, 0, 1, 0], [], []>} : vector<64x8xbf16>, vector<64x8xbf16>, vector<64x64xf32> -> vector<64x64xf32>
    %cst_26 = arith.constant 0.353553385 : f32
    %66 = vector.broadcast %cst_26 : f32 to vector<64x64xf32>
    %67 = arith.mulf %65, %66 : vector<64x64xf32>
    %cst_27 = arith.constant dense<0xFF800000> : vector<64xf32>
    %68 = vector.multi_reduction <maximumf>, %67, %cst_27 [1] : vector<64x64xf32> to vector<64xf32>
    %69 = vector.shape_cast %68 : vector<64xf32> to vector<64x1xf32>
    %70 = vector.broadcast %69 : vector<64x1xf32> to vector<64x64xf32>
    %71 = arith.subf %67, %70 : vector<64x64xf32>
    %72 = math.exp %71 : vector<64x64xf32>
    %cst_28 = arith.constant dense<0.000000e+00> : vector<64xf32>
    %73 = vector.multi_reduction <add>, %72, %cst_28 [1] : vector<64x64xf32> to vector<64xf32>
    %74 = vector.shape_cast %73 : vector<64xf32> to vector<64x1xf32>
    %75 = tpu.reciprocal %74 {approx = true} : vector<64x1xf32> -> vector<64x1xf32>
    %76 = vector.broadcast %75 : vector<64x1xf32> to vector<64x64xf32>
    %77 = arith.mulf %72, %76 : vector<64x64xf32>
    %78 = arith.truncf %77 : vector<64x64xf32> to vector<64x64xbf16>
    %79 = arith.truncf %62 : vector<64x8xf32> to vector<64x8xbf16>
    %cst_29 = arith.constant dense<0.000000e+00> : vector<64x8xf32>
    %80 = tpu.matmul %78, %79, %cst_29 {dimension_numbers = #tpu.dot_dimension_numbers<[1], [0], [0], [1], [0, 0, 1, 1], [], []>} : vector<64x64xbf16>, vector<64x8xbf16>, vector<64x8xf32> -> vector<64x8xf32>
    %81 = vector.extract_strided_slice %38 {offsets = [0, 16], sizes = [64, 8], strides = [1, 1]} : vector<64x96xf32> to vector<64x8xf32>
    %82 = vector.extract_strided_slice %38 {offsets = [0, 48], sizes = [64, 8], strides = [1, 1]} : vector<64x96xf32> to vector<64x8xf32>
    %83 = vector.extract_strided_slice %38 {offsets = [0, 80], sizes = [64, 8], strides = [1, 1]} : vector<64x96xf32> to vector<64x8xf32>
    %84 = arith.truncf %81 : vector<64x8xf32> to vector<64x8xbf16>
    %85 = arith.truncf %82 : vector<64x8xf32> to vector<64x8xbf16>
    %cst_30 = arith.constant dense<0.000000e+00> : vector<64x64xf32>
    %86 = tpu.matmul %84, %85, %cst_30 {dimension_numbers = #tpu.dot_dimension_numbers<[1], [1], [0], [0], [0, 0, 1, 0], [], []>} : vector<64x8xbf16>, vector<64x8xbf16>, vector<64x64xf32> -> vector<64x64xf32>
    %cst_31 = arith.constant 0.353553385 : f32
    %87 = vector.broadcast %cst_31 : f32 to vector<64x64xf32>
    %88 = arith.mulf %86, %87 : vector<64x64xf32>
    %cst_32 = arith.constant dense<0xFF800000> : vector<64xf32>
    %89 = vector.multi_reduction <maximumf>, %88, %cst_32 [1] : vector<64x64xf32> to vector<64xf32>
    %90 = vector.shape_cast %89 : vector<64xf32> to vector<64x1xf32>
    %91 = vector.broadcast %90 : vector<64x1xf32> to vector<64x64xf32>
    %92 = arith.subf %88, %91 : vector<64x64xf32>
    %93 = math.exp %92 : vector<64x64xf32>
    %cst_33 = arith.constant dense<0.000000e+00> : vector<64xf32>
    %94 = vector.multi_reduction <add>, %93, %cst_33 [1] : vector<64x64xf32> to vector<64xf32>
    %95 = vector.shape_cast %94 : vector<64xf32> to vector<64x1xf32>
    %96 = tpu.reciprocal %95 {approx = true} : vector<64x1xf32> -> vector<64x1xf32>
    %97 = vector.broadcast %96 : vector<64x1xf32> to vector<64x64xf32>
    %98 = arith.mulf %93, %97 : vector<64x64xf32>
    %99 = arith.truncf %98 : vector<64x64xf32> to vector<64x64xbf16>
    %100 = arith.truncf %83 : vector<64x8xf32> to vector<64x8xbf16>
    %cst_34 = arith.constant dense<0.000000e+00> : vector<64x8xf32>
    %101 = tpu.matmul %99, %100, %cst_34 {dimension_numbers = #tpu.dot_dimension_numbers<[1], [0], [0], [1], [0, 0, 1, 1], [], []>} : vector<64x64xbf16>, vector<64x8xbf16>, vector<64x8xf32> -> vector<64x8xf32>
    %102 = vector.extract_strided_slice %38 {offsets = [0, 24], sizes = [64, 8], strides = [1, 1]} : vector<64x96xf32> to vector<64x8xf32>
    %103 = vector.extract_strided_slice %38 {offsets = [0, 56], sizes = [64, 8], strides = [1, 1]} : vector<64x96xf32> to vector<64x8xf32>
    %104 = vector.extract_strided_slice %38 {offsets = [0, 88], sizes = [64, 8], strides = [1, 1]} : vector<64x96xf32> to vector<64x8xf32>
    %105 = arith.truncf %102 : vector<64x8xf32> to vector<64x8xbf16>
    %106 = arith.truncf %103 : vector<64x8xf32> to vector<64x8xbf16>
    %cst_35 = arith.constant dense<0.000000e+00> : vector<64x64xf32>
    %107 = tpu.matmul %105, %106, %cst_35 {dimension_numbers = #tpu.dot_dimension_numbers<[1], [1], [0], [0], [0, 0, 1, 0], [], []>} : vector<64x8xbf16>, vector<64x8xbf16>, vector<64x64xf32> -> vector<64x64xf32>
    %cst_36 = arith.constant 0.353553385 : f32
    %108 = vector.broadcast %cst_36 : f32 to vector<64x64xf32>
    %109 = arith.mulf %107, %108 : vector<64x64xf32>
    %cst_37 = arith.constant dense<0xFF800000> : vector<64xf32>
    %110 = vector.multi_reduction <maximumf>, %109, %cst_37 [1] : vector<64x64xf32> to vector<64xf32>
    %111 = vector.shape_cast %110 : vector<64xf32> to vector<64x1xf32>
    %112 = vector.broadcast %111 : vector<64x1xf32> to vector<64x64xf32>
    %113 = arith.subf %109, %112 : vector<64x64xf32>
    %114 = math.exp %113 : vector<64x64xf32>
    %cst_38 = arith.constant dense<0.000000e+00> : vector<64xf32>
    %115 = vector.multi_reduction <add>, %114, %cst_38 [1] : vector<64x64xf32> to vector<64xf32>
    %116 = vector.shape_cast %115 : vector<64xf32> to vector<64x1xf32>
    %117 = tpu.reciprocal %116 {approx = true} : vector<64x1xf32> -> vector<64x1xf32>
    %118 = vector.broadcast %117 : vector<64x1xf32> to vector<64x64xf32>
    %119 = arith.mulf %114, %118 : vector<64x64xf32>
    %120 = arith.truncf %119 : vector<64x64xf32> to vector<64x64xbf16>
    %121 = arith.truncf %104 : vector<64x8xf32> to vector<64x8xbf16>
    %cst_39 = arith.constant dense<0.000000e+00> : vector<64x8xf32>
    %122 = tpu.matmul %120, %121, %cst_39 {dimension_numbers = #tpu.dot_dimension_numbers<[1], [0], [0], [1], [0, 0, 1, 1], [], []>} : vector<64x64xbf16>, vector<64x8xbf16>, vector<64x8xf32> -> vector<64x8xf32>
    %123 = tpu.concatenate %59, %80, %101, %122 in 1 : vector<64x8xf32>, vector<64x8xf32>, vector<64x8xf32>, vector<64x8xf32> -> vector<64x32xf32>
    %124 = arith.truncf %123 : vector<64x32xf32> to vector<64x32xbf16>
    %c0_40 = arith.constant 0 : index
    %c0_41 = arith.constant 0 : index
    %c0_42 = arith.constant 0 : index
    %125 = vector.load %arg7[%c0_40, %c0_41, %c0_42] : memref<1x32x32xbf16, #tpu.memory_space<vmem>>, vector<1x32x32xbf16>
    %126 = vector.shape_cast %125 : vector<1x32x32xbf16> to vector<32x32xbf16>
    %cst_43 = arith.constant dense<0.000000e+00> : vector<64x32xf32>
    %127 = tpu.matmul %124, %126, %cst_43 {dimension_numbers = #tpu.dot_dimension_numbers<[1], [0], [0], [1], [0, 0, 1, 1], [], []>} : vector<64x32xbf16>, vector<32x32xbf16>, vector<64x32xf32> -> vector<64x32xf32>
    %c0_44 = arith.constant 0 : index
    %c0_45 = arith.constant 0 : index
    %c0_46 = arith.constant 0 : index
    %128 = vector.load %arg8[%c0_44, %c0_45, %c0_46] : memref<1x1x32xf32, #tpu.memory_space<vmem>>, vector<1x1x32xf32>
    %129 = vector.shape_cast %128 : vector<1x1x32xf32> to vector<1x32xf32>
    %130 = vector.broadcast %129 : vector<1x32xf32> to vector<64x32xf32>
    %131 = arith.addf %127, %130 : vector<64x32xf32>
    %c0_47 = arith.constant 0 : index
    %c0_48 = arith.constant 0 : index
    %c0_49 = arith.constant 0 : index
    %132 = vector.load %arg9[%c0_47, %c0_48, %c0_49] : memref<1x1x32xf32, #tpu.memory_space<vmem>>, vector<1x1x32xf32>
    %133 = vector.shape_cast %132 : vector<1x1x32xf32> to vector<1x32xf32>
    %c0_50 = arith.constant 0 : index
    %c0_51 = arith.constant 0 : index
    %c0_52 = arith.constant 0 : index
    %134 = vector.load %arg10[%c0_50, %c0_51, %c0_52] : memref<1x1x32xf32, #tpu.memory_space<vmem>>, vector<1x1x32xf32>
    %135 = vector.shape_cast %134 : vector<1x1x32xf32> to vector<1x32xf32>
    %cst_53 = arith.constant dense<0.000000e+00> : vector<64xf32>
    %136 = vector.multi_reduction <add>, %131, %cst_53 [1] : vector<64x32xf32> to vector<64xf32>
    %137 = vector.shape_cast %136 : vector<64xf32> to vector<64x1xf32>
    %cst_54 = arith.constant 3.200000e+01 : f32
    %138 = vector.broadcast %cst_54 : f32 to vector<64x1xf32>
    %139 = arith.divf %137, %138 : vector<64x1xf32>
    %140 = vector.broadcast %139 : vector<64x1xf32> to vector<64x32xf32>
    %141 = arith.subf %131, %140 : vector<64x32xf32>
    %142 = arith.mulf %141, %141 : vector<64x32xf32>
    %cst_55 = arith.constant dense<0.000000e+00> : vector<64xf32>
    %143 = vector.multi_reduction <add>, %142, %cst_55 [1] : vector<64x32xf32> to vector<64xf32>
    %144 = vector.shape_cast %143 : vector<64xf32> to vector<64x1xf32>
    %cst_56 = arith.constant 3.200000e+01 : f32
    %145 = vector.broadcast %cst_56 : f32 to vector<64x1xf32>
    %146 = arith.divf %144, %145 : vector<64x1xf32>
    %147 = vector.broadcast %139 : vector<64x1xf32> to vector<64x32xf32>
    %148 = arith.subf %131, %147 : vector<64x32xf32>
    %cst_57 = arith.constant 9.99999974E-6 : f32
    %149 = vector.broadcast %cst_57 : f32 to vector<64x1xf32>
    %150 = arith.addf %146, %149 : vector<64x1xf32>
    %151 = math.rsqrt %150 : vector<64x1xf32>
    %152 = vector.broadcast %151 : vector<64x1xf32> to vector<64x32xf32>
    %153 = arith.mulf %148, %152 : vector<64x32xf32>
    %154 = vector.broadcast %133 : vector<1x32xf32> to vector<64x32xf32>
    %155 = arith.mulf %153, %154 : vector<64x32xf32>
    %156 = vector.broadcast %135 : vector<1x32xf32> to vector<64x32xf32>
    %157 = arith.addf %155, %156 : vector<64x32xf32>
    %158 = arith.truncf %157 : vector<64x32xf32> to vector<64x32xbf16>
    %c0_58 = arith.constant 0 : index
    %c0_59 = arith.constant 0 : index
    %c0_60 = arith.constant 0 : index
    %159 = vector.load %arg11[%c0_58, %c0_59, %c0_60] : memref<1x32x128xbf16, #tpu.memory_space<vmem>>, vector<1x32x128xbf16>
    %160 = vector.shape_cast %159 : vector<1x32x128xbf16> to vector<32x128xbf16>
    %cst_61 = arith.constant dense<0.000000e+00> : vector<64x128xf32>
    %161 = tpu.matmul %158, %160, %cst_61 {dimension_numbers = #tpu.dot_dimension_numbers<[1], [0], [0], [1], [0, 0, 1, 1], [], []>} : vector<64x32xbf16>, vector<32x128xbf16>, vector<64x128xf32> -> vector<64x128xf32>
    %c0_62 = arith.constant 0 : index
    %c0_63 = arith.constant 0 : index
    %c0_64 = arith.constant 0 : index
    %162 = vector.load %arg12[%c0_62, %c0_63, %c0_64] : memref<1x1x128xf32, #tpu.memory_space<vmem>>, vector<1x1x128xf32>
    %163 = vector.shape_cast %162 : vector<1x1x128xf32> to vector<1x128xf32>
    %164 = vector.broadcast %163 : vector<1x128xf32> to vector<64x128xf32>
    %165 = arith.addf %161, %164 : vector<64x128xf32>
    %cst_65 = arith.constant 5.000000e-01 : f32
    %166 = vector.broadcast %cst_65 : f32 to vector<64x128xf32>
    %167 = arith.mulf %166, %165 : vector<64x128xf32>
    %cst_66 = arith.constant 0.707106769 : f32
    %168 = vector.broadcast %cst_66 : f32 to vector<64x128xf32>
    %169 = arith.mulf %165, %168 : vector<64x128xf32>
    %170 = math.erf %169 : vector<64x128xf32>
    %cst_67 = arith.constant 1.000000e+00 : f32
    %171 = vector.broadcast %cst_67 : f32 to vector<64x128xf32>
    %172 = arith.addf %171, %170 : vector<64x128xf32>
    %173 = arith.mulf %167, %172 : vector<64x128xf32>
    %174 = arith.truncf %173 : vector<64x128xf32> to vector<64x128xbf16>
    %c0_68 = arith.constant 0 : index
    %c0_69 = arith.constant 0 : index
    %c0_70 = arith.constant 0 : index
    %175 = vector.load %arg13[%c0_68, %c0_69, %c0_70] : memref<1x128x32xbf16, #tpu.memory_space<vmem>>, vector<1x128x32xbf16>
    %176 = vector.shape_cast %175 : vector<1x128x32xbf16> to vector<128x32xbf16>
    %cst_71 = arith.constant dense<0.000000e+00> : vector<64x32xf32>
    %177 = tpu.matmul %174, %176, %cst_71 {dimension_numbers = #tpu.dot_dimension_numbers<[1], [0], [0], [1], [0, 0, 1, 1], [], []>} : vector<64x128xbf16>, vector<128x32xbf16>, vector<64x32xf32> -> vector<64x32xf32>
    %c0_72 = arith.constant 0 : index
    %c0_73 = arith.constant 0 : index
    %c0_74 = arith.constant 0 : index
    %178 = vector.load %arg14[%c0_72, %c0_73, %c0_74] : memref<1x1x32xf32, #tpu.memory_space<vmem>>, vector<1x1x32xf32>
    %179 = vector.shape_cast %178 : vector<1x1x32xf32> to vector<1x32xf32>
    %180 = vector.broadcast %179 : vector<1x32xf32> to vector<64x32xf32>
    %181 = arith.addf %177, %180 : vector<64x32xf32>
    %182 = arith.addf %4, %181 : vector<64x32xf32>
    %183 = vector.shape_cast %182 : vector<64x32xf32> to vector<1x64x32xf32>
    %c0_75 = arith.constant 0 : index
    %c0_76 = arith.constant 0 : index
    %c0_77 = arith.constant 0 : index
    %184 = vector.load %arg17[%c0_75, %c0_76, %c0_77] : memref<1x64x32xf32, #tpu.memory_space<vmem>>, vector<1x64x32xf32>
    tpu.vector_store %arg17[%c0_75, %c0_76, %c0_77], %183 {strides = array<i32>} : memref<1x64x32xf32, #tpu.memory_space<vmem>>, vector<1x64x32xf32>,
    %c1_i32 = arith.constant 1 : i32
    %185 = arith.cmpi eq, %arg1, %c1_i32 : i32
    %186 = arith.extui %185 : i1 to i32
    %c0_i32_78 = arith.constant 0 : i32
    %187 = arith.cmpi ne, %186, %c0_i32_78 : i32
    scf.if %187 {
      %188 = math.sqrt %183 : vector<1x64x32xf32>
      %cst_79 = arith.constant 1.000000e-01 : f32
      %189 = vector.broadcast %cst_79 : f32 to vector<1x64x32xf32>
      %190 = arith.mulf %189, %188 : vector<1x64x32xf32>
      %c0_80 = arith.constant 0 : index
      %c0_81 = arith.constant 0 : index
      %c0_82 = arith.constant 0 : index
      %191 = vector.load %arg15[%c0_80, %c0_81, %c0_82] : memref<1x64x32xbf16, #tpu.memory_space<vmem>>, vector<1x64x32xbf16>
      %192 = arith.extf %191 : vector<1x64x32xbf16> to vector<1x64x32xf32>
      %193 = arith.mulf %190, %192 : vector<1x64x32xf32>
      %194 = arith.addf %183, %193 : vector<1x64x32xf32>
      %195 = arith.truncf %194 : vector<1x64x32xf32> to vector<1x64x32xbf16>
      %c0_83 = arith.constant 0 : index
      %c0_84 = arith.constant 0 : index
      %c0_85 = arith.constant 0 : index
      %196 = vector.load %arg16[%c0_83, %c0_84, %c0_85] : memref<1x64x32xbf16, #tpu.memory_space<vmem>>, vector<1x64x32xbf16>
      tpu.vector_store %arg16[%c0_83, %c0_84, %c0_85], %195 {strides = array<i32>} : memref<1x64x32xbf16, #tpu.memory_space<vmem>>, vector<1x64x32xbf16>,
    } else {
    }
    return
  }
  func.func @transform_0(%arg0: i32, %arg1: i32) -> (i32, i32, i32) {
    %c0_i32 = arith.constant 0 : i32
    %c0_i32_0 = arith.constant 0 : i32
    %c0_i32_1 = arith.constant 0 : i32
    return %arg0, %c0_i32, %c0_i32_0 : i32, i32, i32
  }
  func.func @transform_1(%arg0: i32, %arg1: i32) -> (i32, i32, i32) {
    %c0_i32 = arith.constant 0 : i32
    %c0_i32_0 = arith.constant 0 : i32
    %c0_i32_1 = arith.constant 0 : i32
    return %arg1, %c0_i32, %c0_i32_0 : i32, i32, i32
  }
  func.func @transform_2(%arg0: i32, %arg1: i32) -> (i32, i32, i32) {
    %c0_i32 = arith.constant 0 : i32
    %c0_i32_0 = arith.constant 0 : i32
    %c0_i32_1 = arith.constant 0 : i32
    return %arg1, %c0_i32, %c0_i32_0 : i32, i32, i32
  }
  func.func @transform_3(%arg0: i32, %arg1: i32) -> (i32, i32, i32) {
    %c0_i32 = arith.constant 0 : i32
    %c0_i32_0 = arith.constant 0 : i32
    %c0_i32_1 = arith.constant 0 : i32
    return %arg1, %c0_i32, %c0_i32_0 : i32, i32, i32
  }
  func.func @transform_4(%arg0: i32, %arg1: i32) -> (i32, i32, i32) {
    %c0_i32 = arith.constant 0 : i32
    %c0_i32_0 = arith.constant 0 : i32
    %c0_i32_1 = arith.constant 0 : i32
    return %arg1, %c0_i32, %c0_i32_0 : i32, i32, i32
  }
  func.func @transform_5(%arg0: i32, %arg1: i32) -> (i32, i32, i32) {
    %c0_i32 = arith.constant 0 : i32
    %c0_i32_0 = arith.constant 0 : i32
    %c0_i32_1 = arith.constant 0 : i32
    return %arg1, %c0_i32, %c0_i32_0 : i32, i32, i32
  }
  func.func @transform_6(%arg0: i32, %arg1: i32) -> (i32, i32, i32) {
    %c0_i32 = arith.constant 0 : i32
    %c0_i32_0 = arith.constant 0 : i32
    %c0_i32_1 = arith.constant 0 : i32
    return %arg1, %c0_i32, %c0_i32_0 : i32, i32, i32
  }
  func.func @transform_7(%arg0: i32, %arg1: i32) -> (i32, i32, i32) {
    %c0_i32 = arith.constant 0 : i32
    %c0_i32_0 = arith.constant 0 : i32
    %c0_i32_1 = arith.constant 0 : i32
    return %arg1, %c0_i32, %c0_i32_0 : i32, i32, i32
  }
  func.func @transform_8(%arg0: i32, %arg1: i32) -> (i32, i32, i32) {
    %c0_i32 = arith.constant 0 : i32
    %c0_i32_0 = arith.constant 0 : i32
    %c0_i32_1 = arith.constant 0 : i32
    return %arg1, %c0_i32, %c0_i32_0 : i32, i32, i32
  }
  func.func @transform_9(%arg0: i32, %arg1: i32) -> (i32, i32, i32) {
    %c0_i32 = arith.constant 0 : i32
    %c0_i32_0 = arith.constant 0 : i32
    %c0_i32_1 = arith.constant 0 : i32
    return %arg1, %c0_i32, %c0_i32_0 : i32, i32, i32
  }
  func.func @transform_10(%arg0: i32, %arg1: i32) -> (i32, i32, i32) {
    %c0_i32 = arith.constant 0 : i32
    %c0_i32_0 = arith.constant 0 : i32
    %c0_i32_1 = arith.constant 0 : i32
    return %arg1, %c0_i32, %c0_i32_0 : i32, i32, i32
  }
  func.func @transform_11(%arg0: i32, %arg1: i32) -> (i32, i32, i32) {
    %c0_i32 = arith.constant 0 : i32
    %c0_i32_0 = arith.constant 0 : i32
    %c0_i32_1 = arith.constant 0 : i32
    return %arg1, %c0_i32, %c0_i32_0 : i32, i32, i32
  }
  func.func @transform_12(%arg0: i32, %arg1: i32) -> (i32, i32, i32) {
    %c0_i32 = arith.constant 0 : i32
    %c0_i32_0 = arith.constant 0 : i32
    %c0_i32_1 = arith.constant 0 : i32
    return %arg1, %c0_i32, %c0_i32_0 : i32, i32, i32
  }
  func.func @transform_13(%arg0: i32, %arg1: i32) -> (i32, i32, i32) {
    %c0_i32 = arith.constant 0 : i32
    %c0_i32_0 = arith.constant 0 : i32
    %c0_i32_1 = arith.constant 0 : i32
    return %arg0, %c0_i32, %c0_i32_0 : i32, i32, i32
  }
  func.func @transform_14(%arg0: i32, %arg1: i32) -> (i32, i32, i32) {
    %c0_i32 = arith.constant 0 : i32
    %c0_i32_0 = arith.constant 0 : i32
    %c0_i32_1 = arith.constant 0 : i32
    return %arg0, %c0_i32, %c0_i32_0 : i32, i32, i32
  }
}

module attributes {stable_mosaic.version = 11 : i64} {
  func.func @_deconv_kernel(%arg0: i32, %arg1: memref<1x11x11x32xbf16, #tpu.memory_space<vmem>>, %arg2: memref<16x8x32xbf16, #tpu.memory_space<vmem>>, %arg3: memref<8x1xf32, #tpu.memory_space<vmem>>, %arg4: memref<1x8x64xf32, #tpu.memory_space<vmem>>) attributes {dimension_semantics = [#tpu.dimension_semantics<parallel>], iteration_bounds = array<i64: 2>, scalar_prefetch = 0 : i64, scratch_operands = 0 : i64, tpu.core_type = #tpu.core_type<tc>, window_params = [{transform_indices = @transform_0, window_bounds = array<i64: 1, 11, 11, 32>}, {pipeline_mode = #tpu.pipeline_mode<synchronous>, transform_indices = @transform_1, window_bounds = array<i64: 16, 8, 32>}, {pipeline_mode = #tpu.pipeline_mode<synchronous>, transform_indices = @transform_2, window_bounds = array<i64: 8, 1>}, {transform_indices = @transform_3, window_bounds = array<i64: 1, 8, 64>}]} {
    %c0 = arith.constant 0 : index
    %c0_0 = arith.constant 0 : index
    %c0_1 = arith.constant 0 : index
    %c0_2 = arith.constant 0 : index
    %0 = vector.load %arg1[%c0, %c0_0, %c0_1, %c0_2] : memref<1x11x11x32xbf16, #tpu.memory_space<vmem>>, vector<1x11x11x32xbf16>
    %1 = vector.shape_cast %0 : vector<1x11x11x32xbf16> to vector<11x11x32xbf16>
    %2 = arith.extf %1 : vector<11x11x32xbf16> to vector<11x11x32xf32>
    %cst = arith.constant 0.000000e+00 : f32
    %3 = vector.broadcast %cst : f32 to vector<8x64xf32>
    %4 = vector.extract_strided_slice %2 {offsets = [0, 0, 0], sizes = [8, 8, 32], strides = [1, 1, 1]} : vector<11x11x32xf32> to vector<8x8x32xf32>
    %5 = vector.shape_cast %4 : vector<8x8x32xf32> to vector<64x32xf32>
    %c0_3 = arith.constant 0 : index
    %c0_4 = arith.constant 0 : index
    %c0_5 = arith.constant 0 : index
    %6 = vector.load %arg2[%c0_3, %c0_4, %c0_5] : memref<16x8x32xbf16, #tpu.memory_space<vmem>>, vector<1x8x32xbf16>
    %7 = vector.shape_cast %6 : vector<1x8x32xbf16> to vector<8x32xbf16>
    %8 = arith.truncf %5 : vector<64x32xf32> to vector<64x32xbf16>
    %cst_6 = arith.constant dense<0.000000e+00> : vector<8x64xf32>
    %9 = tpu.matmul %7, %8, %cst_6 {dimension_numbers = #tpu.dot_dimension_numbers<[1], [1], [0], [0], [0, 0, 1, 0], [], []>} : vector<8x32xbf16>, vector<64x32xbf16>, vector<8x64xf32> -> vector<8x64xf32>
    %10 = arith.addf %3, %9 : vector<8x64xf32>
    %11 = vector.extract_strided_slice %2 {offsets = [0, 1, 0], sizes = [8, 8, 32], strides = [1, 1, 1]} : vector<11x11x32xf32> to vector<8x8x32xf32>
    %12 = vector.shape_cast %11 : vector<8x8x32xf32> to vector<64x32xf32>
    %c1 = arith.constant 1 : index
    %c0_7 = arith.constant 0 : index
    %c0_8 = arith.constant 0 : index
    %13 = vector.load %arg2[%c1, %c0_7, %c0_8] : memref<16x8x32xbf16, #tpu.memory_space<vmem>>, vector<1x8x32xbf16>
    %14 = vector.shape_cast %13 : vector<1x8x32xbf16> to vector<8x32xbf16>
    %15 = arith.truncf %12 : vector<64x32xf32> to vector<64x32xbf16>
    %cst_9 = arith.constant dense<0.000000e+00> : vector<8x64xf32>
    %16 = tpu.matmul %14, %15, %cst_9 {dimension_numbers = #tpu.dot_dimension_numbers<[1], [1], [0], [0], [0, 0, 1, 0], [], []>} : vector<8x32xbf16>, vector<64x32xbf16>, vector<8x64xf32> -> vector<8x64xf32>
    %17 = arith.addf %10, %16 : vector<8x64xf32>
    %18 = vector.extract_strided_slice %2 {offsets = [0, 2, 0], sizes = [8, 8, 32], strides = [1, 1, 1]} : vector<11x11x32xf32> to vector<8x8x32xf32>
    %19 = vector.shape_cast %18 : vector<8x8x32xf32> to vector<64x32xf32>
    %c2 = arith.constant 2 : index
    %c0_10 = arith.constant 0 : index
    %c0_11 = arith.constant 0 : index
    %20 = vector.load %arg2[%c2, %c0_10, %c0_11] : memref<16x8x32xbf16, #tpu.memory_space<vmem>>, vector<1x8x32xbf16>
    %21 = vector.shape_cast %20 : vector<1x8x32xbf16> to vector<8x32xbf16>
    %22 = arith.truncf %19 : vector<64x32xf32> to vector<64x32xbf16>
    %cst_12 = arith.constant dense<0.000000e+00> : vector<8x64xf32>
    %23 = tpu.matmul %21, %22, %cst_12 {dimension_numbers = #tpu.dot_dimension_numbers<[1], [1], [0], [0], [0, 0, 1, 0], [], []>} : vector<8x32xbf16>, vector<64x32xbf16>, vector<8x64xf32> -> vector<8x64xf32>
    %24 = arith.addf %17, %23 : vector<8x64xf32>
    %25 = vector.extract_strided_slice %2 {offsets = [0, 3, 0], sizes = [8, 8, 32], strides = [1, 1, 1]} : vector<11x11x32xf32> to vector<8x8x32xf32>
    %26 = vector.shape_cast %25 : vector<8x8x32xf32> to vector<64x32xf32>
    %c3 = arith.constant 3 : index
    %c0_13 = arith.constant 0 : index
    %c0_14 = arith.constant 0 : index
    %27 = vector.load %arg2[%c3, %c0_13, %c0_14] : memref<16x8x32xbf16, #tpu.memory_space<vmem>>, vector<1x8x32xbf16>
    %28 = vector.shape_cast %27 : vector<1x8x32xbf16> to vector<8x32xbf16>
    %29 = arith.truncf %26 : vector<64x32xf32> to vector<64x32xbf16>
    %cst_15 = arith.constant dense<0.000000e+00> : vector<8x64xf32>
    %30 = tpu.matmul %28, %29, %cst_15 {dimension_numbers = #tpu.dot_dimension_numbers<[1], [1], [0], [0], [0, 0, 1, 0], [], []>} : vector<8x32xbf16>, vector<64x32xbf16>, vector<8x64xf32> -> vector<8x64xf32>
    %31 = arith.addf %24, %30 : vector<8x64xf32>
    %32 = vector.extract_strided_slice %2 {offsets = [1, 0, 0], sizes = [8, 8, 32], strides = [1, 1, 1]} : vector<11x11x32xf32> to vector<8x8x32xf32>
    %33 = vector.shape_cast %32 : vector<8x8x32xf32> to vector<64x32xf32>
    %c4 = arith.constant 4 : index
    %c0_16 = arith.constant 0 : index
    %c0_17 = arith.constant 0 : index
    %34 = vector.load %arg2[%c4, %c0_16, %c0_17] : memref<16x8x32xbf16, #tpu.memory_space<vmem>>, vector<1x8x32xbf16>
    %35 = vector.shape_cast %34 : vector<1x8x32xbf16> to vector<8x32xbf16>
    %36 = arith.truncf %33 : vector<64x32xf32> to vector<64x32xbf16>
    %cst_18 = arith.constant dense<0.000000e+00> : vector<8x64xf32>
    %37 = tpu.matmul %35, %36, %cst_18 {dimension_numbers = #tpu.dot_dimension_numbers<[1], [1], [0], [0], [0, 0, 1, 0], [], []>} : vector<8x32xbf16>, vector<64x32xbf16>, vector<8x64xf32> -> vector<8x64xf32>
    %38 = arith.addf %31, %37 : vector<8x64xf32>
    %39 = vector.extract_strided_slice %2 {offsets = [1, 1, 0], sizes = [8, 8, 32], strides = [1, 1, 1]} : vector<11x11x32xf32> to vector<8x8x32xf32>
    %40 = vector.shape_cast %39 : vector<8x8x32xf32> to vector<64x32xf32>
    %c5 = arith.constant 5 : index
    %c0_19 = arith.constant 0 : index
    %c0_20 = arith.constant 0 : index
    %41 = vector.load %arg2[%c5, %c0_19, %c0_20] : memref<16x8x32xbf16, #tpu.memory_space<vmem>>, vector<1x8x32xbf16>
    %42 = vector.shape_cast %41 : vector<1x8x32xbf16> to vector<8x32xbf16>
    %43 = arith.truncf %40 : vector<64x32xf32> to vector<64x32xbf16>
    %cst_21 = arith.constant dense<0.000000e+00> : vector<8x64xf32>
    %44 = tpu.matmul %42, %43, %cst_21 {dimension_numbers = #tpu.dot_dimension_numbers<[1], [1], [0], [0], [0, 0, 1, 0], [], []>} : vector<8x32xbf16>, vector<64x32xbf16>, vector<8x64xf32> -> vector<8x64xf32>
    %45 = arith.addf %38, %44 : vector<8x64xf32>
    %46 = vector.extract_strided_slice %2 {offsets = [1, 2, 0], sizes = [8, 8, 32], strides = [1, 1, 1]} : vector<11x11x32xf32> to vector<8x8x32xf32>
    %47 = vector.shape_cast %46 : vector<8x8x32xf32> to vector<64x32xf32>
    %c6 = arith.constant 6 : index
    %c0_22 = arith.constant 0 : index
    %c0_23 = arith.constant 0 : index
    %48 = vector.load %arg2[%c6, %c0_22, %c0_23] : memref<16x8x32xbf16, #tpu.memory_space<vmem>>, vector<1x8x32xbf16>
    %49 = vector.shape_cast %48 : vector<1x8x32xbf16> to vector<8x32xbf16>
    %50 = arith.truncf %47 : vector<64x32xf32> to vector<64x32xbf16>
    %cst_24 = arith.constant dense<0.000000e+00> : vector<8x64xf32>
    %51 = tpu.matmul %49, %50, %cst_24 {dimension_numbers = #tpu.dot_dimension_numbers<[1], [1], [0], [0], [0, 0, 1, 0], [], []>} : vector<8x32xbf16>, vector<64x32xbf16>, vector<8x64xf32> -> vector<8x64xf32>
    %52 = arith.addf %45, %51 : vector<8x64xf32>
    %53 = vector.extract_strided_slice %2 {offsets = [1, 3, 0], sizes = [8, 8, 32], strides = [1, 1, 1]} : vector<11x11x32xf32> to vector<8x8x32xf32>
    %54 = vector.shape_cast %53 : vector<8x8x32xf32> to vector<64x32xf32>
    %c7 = arith.constant 7 : index
    %c0_25 = arith.constant 0 : index
    %c0_26 = arith.constant 0 : index
    %55 = vector.load %arg2[%c7, %c0_25, %c0_26] : memref<16x8x32xbf16, #tpu.memory_space<vmem>>, vector<1x8x32xbf16>
    %56 = vector.shape_cast %55 : vector<1x8x32xbf16> to vector<8x32xbf16>
    %57 = arith.truncf %54 : vector<64x32xf32> to vector<64x32xbf16>
    %cst_27 = arith.constant dense<0.000000e+00> : vector<8x64xf32>
    %58 = tpu.matmul %56, %57, %cst_27 {dimension_numbers = #tpu.dot_dimension_numbers<[1], [1], [0], [0], [0, 0, 1, 0], [], []>} : vector<8x32xbf16>, vector<64x32xbf16>, vector<8x64xf32> -> vector<8x64xf32>
    %59 = arith.addf %52, %58 : vector<8x64xf32>
    %60 = vector.extract_strided_slice %2 {offsets = [2, 0, 0], sizes = [8, 8, 32], strides = [1, 1, 1]} : vector<11x11x32xf32> to vector<8x8x32xf32>
    %61 = vector.shape_cast %60 : vector<8x8x32xf32> to vector<64x32xf32>
    %c8 = arith.constant 8 : index
    %c0_28 = arith.constant 0 : index
    %c0_29 = arith.constant 0 : index
    %62 = vector.load %arg2[%c8, %c0_28, %c0_29] : memref<16x8x32xbf16, #tpu.memory_space<vmem>>, vector<1x8x32xbf16>
    %63 = vector.shape_cast %62 : vector<1x8x32xbf16> to vector<8x32xbf16>
    %64 = arith.truncf %61 : vector<64x32xf32> to vector<64x32xbf16>
    %cst_30 = arith.constant dense<0.000000e+00> : vector<8x64xf32>
    %65 = tpu.matmul %63, %64, %cst_30 {dimension_numbers = #tpu.dot_dimension_numbers<[1], [1], [0], [0], [0, 0, 1, 0], [], []>} : vector<8x32xbf16>, vector<64x32xbf16>, vector<8x64xf32> -> vector<8x64xf32>
    %66 = arith.addf %59, %65 : vector<8x64xf32>
    %67 = vector.extract_strided_slice %2 {offsets = [2, 1, 0], sizes = [8, 8, 32], strides = [1, 1, 1]} : vector<11x11x32xf32> to vector<8x8x32xf32>
    %68 = vector.shape_cast %67 : vector<8x8x32xf32> to vector<64x32xf32>
    %c9 = arith.constant 9 : index
    %c0_31 = arith.constant 0 : index
    %c0_32 = arith.constant 0 : index
    %69 = vector.load %arg2[%c9, %c0_31, %c0_32] : memref<16x8x32xbf16, #tpu.memory_space<vmem>>, vector<1x8x32xbf16>
    %70 = vector.shape_cast %69 : vector<1x8x32xbf16> to vector<8x32xbf16>
    %71 = arith.truncf %68 : vector<64x32xf32> to vector<64x32xbf16>
    %cst_33 = arith.constant dense<0.000000e+00> : vector<8x64xf32>
    %72 = tpu.matmul %70, %71, %cst_33 {dimension_numbers = #tpu.dot_dimension_numbers<[1], [1], [0], [0], [0, 0, 1, 0], [], []>} : vector<8x32xbf16>, vector<64x32xbf16>, vector<8x64xf32> -> vector<8x64xf32>
    %73 = arith.addf %66, %72 : vector<8x64xf32>
    %74 = vector.extract_strided_slice %2 {offsets = [2, 2, 0], sizes = [8, 8, 32], strides = [1, 1, 1]} : vector<11x11x32xf32> to vector<8x8x32xf32>
    %75 = vector.shape_cast %74 : vector<8x8x32xf32> to vector<64x32xf32>
    %c10 = arith.constant 10 : index
    %c0_34 = arith.constant 0 : index
    %c0_35 = arith.constant 0 : index
    %76 = vector.load %arg2[%c10, %c0_34, %c0_35] : memref<16x8x32xbf16, #tpu.memory_space<vmem>>, vector<1x8x32xbf16>
    %77 = vector.shape_cast %76 : vector<1x8x32xbf16> to vector<8x32xbf16>
    %78 = arith.truncf %75 : vector<64x32xf32> to vector<64x32xbf16>
    %cst_36 = arith.constant dense<0.000000e+00> : vector<8x64xf32>
    %79 = tpu.matmul %77, %78, %cst_36 {dimension_numbers = #tpu.dot_dimension_numbers<[1], [1], [0], [0], [0, 0, 1, 0], [], []>} : vector<8x32xbf16>, vector<64x32xbf16>, vector<8x64xf32> -> vector<8x64xf32>
    %80 = arith.addf %73, %79 : vector<8x64xf32>
    %81 = vector.extract_strided_slice %2 {offsets = [2, 3, 0], sizes = [8, 8, 32], strides = [1, 1, 1]} : vector<11x11x32xf32> to vector<8x8x32xf32>
    %82 = vector.shape_cast %81 : vector<8x8x32xf32> to vector<64x32xf32>
    %c11 = arith.constant 11 : index
    %c0_37 = arith.constant 0 : index
    %c0_38 = arith.constant 0 : index
    %83 = vector.load %arg2[%c11, %c0_37, %c0_38] : memref<16x8x32xbf16, #tpu.memory_space<vmem>>, vector<1x8x32xbf16>
    %84 = vector.shape_cast %83 : vector<1x8x32xbf16> to vector<8x32xbf16>
    %85 = arith.truncf %82 : vector<64x32xf32> to vector<64x32xbf16>
    %cst_39 = arith.constant dense<0.000000e+00> : vector<8x64xf32>
    %86 = tpu.matmul %84, %85, %cst_39 {dimension_numbers = #tpu.dot_dimension_numbers<[1], [1], [0], [0], [0, 0, 1, 0], [], []>} : vector<8x32xbf16>, vector<64x32xbf16>, vector<8x64xf32> -> vector<8x64xf32>
    %87 = arith.addf %80, %86 : vector<8x64xf32>
    %88 = vector.extract_strided_slice %2 {offsets = [3, 0, 0], sizes = [8, 8, 32], strides = [1, 1, 1]} : vector<11x11x32xf32> to vector<8x8x32xf32>
    %89 = vector.shape_cast %88 : vector<8x8x32xf32> to vector<64x32xf32>
    %c12 = arith.constant 12 : index
    %c0_40 = arith.constant 0 : index
    %c0_41 = arith.constant 0 : index
    %90 = vector.load %arg2[%c12, %c0_40, %c0_41] : memref<16x8x32xbf16, #tpu.memory_space<vmem>>, vector<1x8x32xbf16>
    %91 = vector.shape_cast %90 : vector<1x8x32xbf16> to vector<8x32xbf16>
    %92 = arith.truncf %89 : vector<64x32xf32> to vector<64x32xbf16>
    %cst_42 = arith.constant dense<0.000000e+00> : vector<8x64xf32>
    %93 = tpu.matmul %91, %92, %cst_42 {dimension_numbers = #tpu.dot_dimension_numbers<[1], [1], [0], [0], [0, 0, 1, 0], [], []>} : vector<8x32xbf16>, vector<64x32xbf16>, vector<8x64xf32> -> vector<8x64xf32>
    %94 = arith.addf %87, %93 : vector<8x64xf32>
    %95 = vector.extract_strided_slice %2 {offsets = [3, 1, 0], sizes = [8, 8, 32], strides = [1, 1, 1]} : vector<11x11x32xf32> to vector<8x8x32xf32>
    %96 = vector.shape_cast %95 : vector<8x8x32xf32> to vector<64x32xf32>
    %c13 = arith.constant 13 : index
    %c0_43 = arith.constant 0 : index
    %c0_44 = arith.constant 0 : index
    %97 = vector.load %arg2[%c13, %c0_43, %c0_44] : memref<16x8x32xbf16, #tpu.memory_space<vmem>>, vector<1x8x32xbf16>
    %98 = vector.shape_cast %97 : vector<1x8x32xbf16> to vector<8x32xbf16>
    %99 = arith.truncf %96 : vector<64x32xf32> to vector<64x32xbf16>
    %cst_45 = arith.constant dense<0.000000e+00> : vector<8x64xf32>
    %100 = tpu.matmul %98, %99, %cst_45 {dimension_numbers = #tpu.dot_dimension_numbers<[1], [1], [0], [0], [0, 0, 1, 0], [], []>} : vector<8x32xbf16>, vector<64x32xbf16>, vector<8x64xf32> -> vector<8x64xf32>
    %101 = arith.addf %94, %100 : vector<8x64xf32>
    %102 = vector.extract_strided_slice %2 {offsets = [3, 2, 0], sizes = [8, 8, 32], strides = [1, 1, 1]} : vector<11x11x32xf32> to vector<8x8x32xf32>
    %103 = vector.shape_cast %102 : vector<8x8x32xf32> to vector<64x32xf32>
    %c14 = arith.constant 14 : index
    %c0_46 = arith.constant 0 : index
    %c0_47 = arith.constant 0 : index
    %104 = vector.load %arg2[%c14, %c0_46, %c0_47] : memref<16x8x32xbf16, #tpu.memory_space<vmem>>, vector<1x8x32xbf16>
    %105 = vector.shape_cast %104 : vector<1x8x32xbf16> to vector<8x32xbf16>
    %106 = arith.truncf %103 : vector<64x32xf32> to vector<64x32xbf16>
    %cst_48 = arith.constant dense<0.000000e+00> : vector<8x64xf32>
    %107 = tpu.matmul %105, %106, %cst_48 {dimension_numbers = #tpu.dot_dimension_numbers<[1], [1], [0], [0], [0, 0, 1, 0], [], []>} : vector<8x32xbf16>, vector<64x32xbf16>, vector<8x64xf32> -> vector<8x64xf32>
    %108 = arith.addf %101, %107 : vector<8x64xf32>
    %109 = vector.extract_strided_slice %2 {offsets = [3, 3, 0], sizes = [8, 8, 32], strides = [1, 1, 1]} : vector<11x11x32xf32> to vector<8x8x32xf32>
    %110 = vector.shape_cast %109 : vector<8x8x32xf32> to vector<64x32xf32>
    %c15 = arith.constant 15 : index
    %c0_49 = arith.constant 0 : index
    %c0_50 = arith.constant 0 : index
    %111 = vector.load %arg2[%c15, %c0_49, %c0_50] : memref<16x8x32xbf16, #tpu.memory_space<vmem>>, vector<1x8x32xbf16>
    %112 = vector.shape_cast %111 : vector<1x8x32xbf16> to vector<8x32xbf16>
    %113 = arith.truncf %110 : vector<64x32xf32> to vector<64x32xbf16>
    %cst_51 = arith.constant dense<0.000000e+00> : vector<8x64xf32>
    %114 = tpu.matmul %112, %113, %cst_51 {dimension_numbers = #tpu.dot_dimension_numbers<[1], [1], [0], [0], [0, 0, 1, 0], [], []>} : vector<8x32xbf16>, vector<64x32xbf16>, vector<8x64xf32> -> vector<8x64xf32>
    %115 = arith.addf %108, %114 : vector<8x64xf32>
    %c0_52 = arith.constant 0 : index
    %c0_53 = arith.constant 0 : index
    %116 = vector.load %arg3[%c0_52, %c0_53] : memref<8x1xf32, #tpu.memory_space<vmem>>, vector<8x1xf32>
    %117 = vector.broadcast %116 : vector<8x1xf32> to vector<8x64xf32>
    %118 = arith.addf %115, %117 : vector<8x64xf32>
    %119 = math.tanh %118 : vector<8x64xf32>
    %c0_54 = arith.constant 0 : index
    %c0_55 = arith.constant 0 : index
    %c0_56 = arith.constant 0 : index
    %120 = vector.load %arg4[%c0_54, %c0_55, %c0_56] : memref<1x8x64xf32, #tpu.memory_space<vmem>>, vector<1x8x64xf32>
    %121 = vector.shape_cast %120 : vector<1x8x64xf32> to vector<8x64xf32>
    %122 = vector.shape_cast %119 : vector<8x64xf32> to vector<1x8x64xf32>
    tpu.vector_store %arg4[%c0_54, %c0_55, %c0_56], %122 {strides = array<i32>} : memref<1x8x64xf32, #tpu.memory_space<vmem>>, vector<1x8x64xf32>,
    return
  }
  func.func @transform_0(%arg0: i32) -> (i32, i32, i32, i32) {
    %c0_i32 = arith.constant 0 : i32
    %c0_i32_0 = arith.constant 0 : i32
    %c0_i32_1 = arith.constant 0 : i32
    %c0_i32_2 = arith.constant 0 : i32
    return %arg0, %c0_i32, %c0_i32_0, %c0_i32_1 : i32, i32, i32, i32
  }
  func.func @transform_1(%arg0: i32) -> (i32, i32, i32) {
    %c0_i32 = arith.constant 0 : i32
    %c0_i32_0 = arith.constant 0 : i32
    %c0_i32_1 = arith.constant 0 : i32
    %c0_i32_2 = arith.constant 0 : i32
    return %c0_i32, %c0_i32_0, %c0_i32_1 : i32, i32, i32
  }
  func.func @transform_2(%arg0: i32) -> (i32, i32) {
    %c0_i32 = arith.constant 0 : i32
    %c0_i32_0 = arith.constant 0 : i32
    %c0_i32_1 = arith.constant 0 : i32
    return %c0_i32, %c0_i32_0 : i32, i32
  }
  func.func @transform_3(%arg0: i32) -> (i32, i32, i32) {
    %c0_i32 = arith.constant 0 : i32
    %c0_i32_0 = arith.constant 0 : i32
    %c0_i32_1 = arith.constant 0 : i32
    return %arg0, %c0_i32, %c0_i32_0 : i32, i32, i32
  }
}

</mosaic_0001>

<bundles_post_ra>
// kernel: _forward.3
= control target key start
LH: loop header
LB: loop body
LE: loop exit
PB: predicated region body
PF: predicated region fallthrough
CT: control target
= control target key end

     0   :  { %s802_s21 = smov 0   ;;  %s1043_s0 = inlined_call_operand.vmem [shape: bf16[2,64,128], index: 0, kind: input, shape index: {}]   ;;  %s1044_s1 = inlined_call_operand.vmem [shape: bf16[128,32], index: 1, kind: input, shape index: {}]   ;;  %s1045_s2 = inlined_call_operand.vmem [shape: f32[1,32], index: 2, kind: input, shape index: {}]   ;;  %s1046_s3 = inlined_call_operand.vmem [shape: f32[64,32], index: 3, kind: input, shape index: {}]   ;;  %s1047_s4 = inlined_call_operand.vmem [shape: f32[64,32], index: 4, kind: input, shape index: {}]   ;;  %s1048_s5 = inlined_call_operand.vmem [shape: f32[64,32], index: 5, kind: input, shape index: {}]   ;;  %s1049_s6 = inlined_call_operand.vmem [shape: bf16[2,64,32], index: 6, kind: output, shape index: {}]  }
   0x1 LB: > { %s643_s22 = sadd.s32 4294967295, %s763_s21   ;;  %p647_p0 = scmp.ge.s32.totalorder %s763_s21, 1  ;;  %s763_s21 = sphi %s802_s21, %s16_s21  }
   0x2   : > { %p212_p1 = scmp.lt.s32.totalorder %s763_s21, 3 }
   0x4   : > { %p213_p2 = pnand %p647_p0, %p212_p1 }
   0x5   : > { %p242_p3 = scmp.lt.s32.totalorder (!%p213_p2), %s643_s22, 1 }
   0x6   : > { %216 = sbr.rel (%p213_p2) target bundleno = 522 (0x20a), region = 44 }
   0xb   : > { %v715_v0 = vld [vmem:[%s1044_s1 + $0x38] sm:$0xff]  ;;  %v714_v1 = vld [vmem:[%s1044_s1 + $0x30] sm:$0xff]  ;;  %v713_v2 = vld [vmem:[%s1044_s1 + $0x28] sm:$0xff]  ;;  %s1051_s22 = smov (!%p242_p3, %s643_s22), 1  ;;  %vm381_vm0 = vcmask 261120   ;;  %v765_v37 = vmov 32.0  }
   0xc   : > { %352 = vmatpush.bf16.msra.mxu0 %v715_v0  ;;  %716 = vmatpush.bf16.msra.mxu1 %v715_v0  ;;  %v712_v3 = vld [vmem:[%s1044_s1 + $0x20] sm:$0xff]  ;;  %v711_v4 = vld [vmem:[%s1044_s1 + $0x18] sm:$0xff]  ;;  %v710_v5 = vld [vmem:[%s1044_s1 + $0x10] sm:$0xff]  ;;  %s702_s13 = sshll.u32 %s1051_s22, 5  ;;  %751 = vrcp.f32 %v765_v37  ;;  %v766_v51 = vmov 64.0   ;;  %vm579_vm6 = vcmask 257024  }
   0xd   : > { %717 = vmatpush.bf16.msra.mxu2 %v715_v0  ;;  %718 = vmatpush.bf16.msra.mxu3 %v715_v0  ;;  %v709_v6 = vld [vmem:[%s1044_s1 + $0x8] sm:$0xff]  ;;  %v708_v7 = vld [vmem:[%s1044_s1] sm:$0xff]  ;;  %s246_s18 = scalar_lea.vmem %s1043_s0, %s702_s13  ;;  %753 = vrcp.f32 %v766_v51  ;;  %s251_s7 = scalar_lea.vmem %s1049_s6, %s702_s13 }
   0xe   : > { %v704_v8 = vld [vmem:[%s246_s18] sm:$0xff]  ;;  %v705_v9 = vld [vmem:[%s246_s18 + $0x8] sm:$0xff]  ;;  %v706_v10 = vld [vmem:[%s246_s18 + $0x10] sm:$0xff] }
   0xf   : > { %v707_v11 = vld [vmem:[%s246_s18 + $0x18] sm:$0xff]  ;;  %v750_v12 = vld [vmem:[%s1045_s2] ss:$0 sm:$0xff] }
  0x10   : > { %353 = vmatpush.bf16.msra.mxu0 %v714_v1  ;;  %719 = vmatpush.bf16.msra.mxu1 %v714_v1 }
  0x11   : > { %720 = vmatpush.bf16.msra.mxu2 %v714_v1  ;;  %721 = vmatpush.bf16.msra.mxu3 %v714_v1 }
  0x12   : > { %v752_v38 = vpop.eup %751 }
  0x13   : > { %v407_v39 = vmul.f32 32.0, %v752_v38  ;;  %vm411_vm1 = vweird.f32 %v752_v38  ;;  %v754_v56 = vpop.eup %753 }
  0x14   : > { %354 = vmatpush.bf16.msra.mxu0 %v713_v2  ;;  %722 = vmatpush.bf16.msra.mxu1 %v713_v2  ;;  %v435_v0 = vmul.f32 64.0, %v754_v56  ;;  %vm439_vm2 = vweird.f32 %v754_v56 }
  0x15   : > { %723 = vmatpush.bf16.msra.mxu2 %v713_v2  ;;  %724 = vmatpush.bf16.msra.mxu3 %v713_v2  ;;  %v408_v40 = vsub.f32 1.0, %v407_v39 }
  0x17   : > { %v409_v41 = vmul.f32 %v752_v38, %v408_v40 }
  0x18   : > { %355 = vmatpush.bf16.msra.mxu0 %v712_v3  ;;  %725 = vmatpush.bf16.msra.mxu1 %v712_v3 }
  0x19   : > { %726 = vmatpush.bf16.msra.mxu2 %v712_v3  ;;  %727 = vmatpush.bf16.msra.mxu3 %v712_v3  ;;  %v410_v44 = vadd.f32 %v752_v38, %v409_v41 }
  0x1b   : > { %v878_v45 = vsel %vm411_vm1, %v752_v38, %v410_v44 }
  0x1c   : > { %356 = vmatpush.bf16.msra.mxu0 %v711_v4  ;;  %728 = vmatpush.bf16.msra.mxu1 %v711_v4 }
  0x1d   : > { %729 = vmatpush.bf16.msra.mxu2 %v711_v4  ;;  %730 = vmatpush.bf16.msra.mxu3 %v711_v4 }
  0x20   : > { %357 = vmatpush.bf16.msra.mxu0 %v710_v5  ;;  %731 = vmatpush.bf16.msra.mxu1 %v710_v5 }
  0x21   : > { %732 = vmatpush.bf16.msra.mxu2 %v710_v5  ;;  %733 = vmatpush.bf16.msra.mxu3 %v710_v5  ;;  %v436_v5 = vsub.f32 1.0, %v435_v0 }
  0x24   : > { %358 = vmatpush.bf16.msra.mxu0 %v709_v6  ;;  %734 = vmatpush.bf16.msra.mxu1 %v709_v6 }
  0x25   : > { %735 = vmatpush.bf16.msra.mxu2 %v709_v6  ;;  %736 = vmatpush.bf16.msra.mxu3 %v709_v6 }
  0x28   : > { %359 = vmatpush.bf16.msra.mxu0 %v708_v7  ;;  %737 = vmatpush.bf16.msra.mxu1 %v708_v7 }
  0x29   : > { %738 = vmatpush.bf16.msra.mxu2 %v708_v7  ;;  %739 = vmatpush.bf16.msra.mxu3 %v708_v7 }
  0x2b   : > { %360 = vmatmul.bf16.vlgmr.msra.gmra.mxu0 %v704_v8  ;;  %365 = vmatmul.bf16.vlgmr.msra.gmra.mxu1 %v705_v9  ;;  %v437_v8 = vmul.f32 %v754_v56, %v436_v5 }
  0x2c   : > { %370 = vmatmul.bf16.vlgmr.msra.gmra.mxu2 %v706_v10  ;;  %375 = vmatmul.bf16.vlgmr.msra.gmra.mxu3 %v707_v11 }
  0x2d   : > { %v438_v11 = vadd.f32 %v754_v56, %v437_v8 }
  0xa8   : > { %v361_v13 = vpop.f32.mrf.mxu0  ;;  %v366_v14 = vpop.f32.mrf.mxu1 }
  0xa9   : > { %v849_v15 = vadd.f32 %v750_v12, %v361_v13  ;;  %v851_v16 = vadd.f32 %v750_v12, %v366_v14  ;;  %v888_v14 = vsel %vm439_vm2, %v754_v56, %v438_v11 }
  0xab   : > { %v388_v17 = vsel %vm381_vm0, %v851_v16, 0.0  ;;  %v382_v18 = vsel %vm381_vm0, %v849_v15, 0.0 }
  0xac   : > { %389 = vadd.xlane.f32.xlu1 %v388_v17  ;;  %383 = vadd.xlane.f32.xlu0 %v382_v18 }
  0xaf   : > { %v371_v19 = vpop.f32.mrf.mxu2  ;;  %v376_v20 = vpop.f32.mrf.mxu3 }
  0xb0   : > { %v857_v21 = vadd.f32 %v750_v12, %v371_v19  ;;  %v363_v22 = vpop.f32.mrf.mxu0  ;;  %v368_v23 = vpop.f32.mrf.mxu1  ;;  %v869_v29 = vadd.f32 %v750_v12, %v376_v20 }
  0xb1   : > { %v859_v24 = vadd.f32 %v750_v12, %v363_v22  ;;  %v861_v25 = vadd.f32 %v750_v12, %v368_v23 }
  0xb2   : > { %v394_v26 = vsel %vm381_vm0, %v857_v21, 0.0  ;;  %v400_v36 = vsel %vm381_vm0, %v869_v29, 0.0 }
  0xb3   : > { %395 = vadd.xlane.f32.xlu2 %v394_v26  ;;  %v391_v27 = vsel %vm381_vm0, %v861_v25, 0.0  ;;  %v385_v28 = vsel %vm381_vm0, %v859_v24, 0.0 }
  0xb4   : > { %392 = vadd.xlane.f32.xlu1 %v391_v27  ;;  %386 = vadd.xlane.f32.xlu0 %v385_v28 }
  0xb7   : > { %v373_v30 = vpop.f32.mrf.mxu2  ;;  %v378_v31 = vpop.f32.mrf.mxu3 }
  0xb8   : > { %v374_v32 = vadd.f32 %v750_v12, %v373_v30  ;;  %v871_v33 = vadd.f32 %v750_v12, %v378_v31 }
  0xba   : > { %v397_v34 = vsel %vm381_vm0, %v374_v32, 0.0  ;;  %v403_v35 = vsel %vm381_vm0, %v871_v33, 0.0 }
  0xbb   : > { %398 = vadd.xlane.f32.xlu2 %v397_v34 }
  0xbc   : > { %404 = vadd.xlane.f32.xlu1 %v403_v35  ;;  %401 = vadd.xlane.f32.xlu0 %v400_v36 }
 0x11f   : > { %v390_v42 = vpop.xlane.xlu1 %389  ;;  %v384_v43 = vpop.xlane.xlu0 %383 }
 0x120   : > { %v413_v49 = vmul.f32 %v878_v45, %v384_v43  ;;  %v415_v52 = vmul.f32 %v878_v45, %v390_v42 }
 0x126   : > { %v396_v46 = vpop.xlane.xlu2 %395 }
 0x127   : > { %v393_v47 = vpop.xlane.xlu1 %392  ;;  %v387_v48 = vpop.xlane.xlu0 %386  ;;  %v417_v57 = vmul.f32 %v878_v45, %v396_v46 }
 0x128   : > { %v414_v50 = vmul.f32 %v878_v45, %v387_v48  ;;  %v416_v54 = vmul.f32 %v878_v45, %v393_v47 }
 0x12a   : > { %v421_v53 = vadd.f32 %v414_v50, %v413_v49 }
 0x12c   : > { %v422_v55 = vadd.f32 %v421_v53, %v415_v52 }
 0x12e   : > { %v399_v58 = vpop.xlane.xlu2 %398  ;;  %v423_v59 = vadd.f32 %v422_v55, %v416_v54 }
 0x12f   : > { %v402_v60 = vpop.xlane.xlu0 %401  ;;  %v418_v61 = vmul.f32 %v878_v45, %v399_v58  ;;  %v405_v63 = vpop.xlane.xlu1 %404 }
 0x130   : > { %v424_v62 = vadd.f32 %v423_v59, %v417_v57  ;;  %v419_v2 = vmul.f32 %v878_v45, %v402_v60  ;;  %v420_v3 = vmul.f32 %v878_v45, %v405_v63 }
 0x132   : > { %v425_v1 = vadd.f32 %v424_v62, %v418_v61 }
 0x134   : > { %v426_v4 = vadd.f32 %v425_v1, %v419_v2 }
 0x136   : > { %v427_v6 = vadd.f32 %v426_v4, %v420_v3 }
 0x138   : > { %v428_v7 = vrot.slane %v427_v6, 4 }
 0x13a   : > { %v429_v9 = vadd.f32 %v428_v7, %v427_v6 }
 0x13c   : > { %v430_v10 = vrot.slane %v429_v9, 2 }
 0x13e   : > { %v431_v12 = vadd.f32 %v430_v10, %v429_v9 }
 0x140   : > { %v432_v13 = vrot.slane %v431_v12, 1 }
 0x142   : > { %v433_v17 = vadd.f32 %v432_v13, %v431_v12 }
 0x144   : > { %v441_v18 = vmul.f32 %v888_v14, %v433_v17  ;;  %v524_v17 = vld [vmem:[%s1046_s3 + $0x8] sm:$0xff] }
 0x146   : > { %v892_v19 = vsub.f32 %v851_v16, %v441_v18  ;;  %v895_v20 = vsub.f32 %v859_v24, %v441_v18  ;;  %v898_v22 = vsub.f32 %v849_v15, %v441_v18  ;;  %v906_v28 = vsub.f32 %v374_v32, %v441_v18 }
 0x147   : > { %v912_v15 = vsub.f32 %v857_v21, %v441_v18  ;;  %v915_v31 = vsub.f32 %v861_v25, %v441_v18  ;;  %v926_v37 = vsub.f32 %v871_v33, %v441_v18  ;;  %v930_v38 = vsub.f32 %v869_v29, %v441_v18 }
 0x148   : > { %v452_v23 = vmul.f32 %v892_v19, %v892_v19  ;;  %v451_v26 = vmul.f32 %v895_v20, %v895_v20  ;;  %v450_v27 = vmul.f32 %v898_v22, %v898_v22  ;;  %v455_v34 = vmul.f32 %v906_v28, %v906_v28 }
 0x149   : > { %v454_v32 = vmul.f32 %v912_v15, %v912_v15  ;;  %v453_v35 = vmul.f32 %v915_v31, %v915_v31  ;;  %v457_v39 = vmul.f32 %v926_v37, %v926_v37  ;;  %v456_v40 = vmul.f32 %v930_v38, %v930_v38 }
 0x14a   : > { %v464_v16 = vsel %vm381_vm0, %v452_v23, 0.0  ;;  %v461_v30 = vsel %vm381_vm0, %v451_v26, 0.0  ;;  %v458_v24 = vsel %vm381_vm0, %v450_v27, 0.0  ;;  %v473_v36 = vsel %vm381_vm0, %v455_v34, 0.0  ;;  %v526_v23 = vld [vmem:[%s1046_s3 + $0x18] sm:$0xff]  ;;  %v527_v26 = vld [vmem:[%s1046_s3 + $0x20] sm:$0xff] }
 0x14b   : > { %465 = vadd.xlane.f32.xlu1 %v464_v16  ;;  %462 = vadd.xlane.f32.xlu0 %v461_v30  ;;  %v470_v21 = vsel %vm381_vm0, %v454_v32, 0.0  ;;  %v467_v25 = vsel %vm381_vm0, %v453_v35, 0.0  ;;  %v479_v41 = vsel %vm381_vm0, %v457_v39, 0.0  ;;  %v476_v33 = vsel %vm381_vm0, %v456_v40, 0.0  ;;  %v528_v27 = vld [vmem:[%s1046_s3 + $0x28] sm:$0xff]  ;;  %v529_v16 = vld [vmem:[%s1046_s3 + $0x30] sm:$0xff] }
 0x14c   : > { %459 = vadd.xlane.f32.xlu2 %v458_v24  ;;  %v530_v30 = vld [vmem:[%s1046_s3 + $0x38] sm:$0xff]  ;;  %v539_v34 = vld [vmem:[%s1047_s4] sm:$0xff]  ;;  %v540_v32 = vld [vmem:[%s1047_s4 + $0x8] sm:$0xff] }
 0x14d   : > { %v541_v35 = vld [vmem:[%s1047_s4 + $0x10] sm:$0xff]  ;;  %v542_v40 = vld [vmem:[%s1047_s4 + $0x18] sm:$0xff] }
 0x153   : > { %474 = vadd.xlane.f32.xlu1 %v473_v36  ;;  %471 = vadd.xlane.f32.xlu0 %v470_v21 }
 0x154   : > { %468 = vadd.xlane.f32.xlu2 %v467_v25 }
 0x15b   : > { %480 = vadd.xlane.f32.xlu0 %v479_v41  ;;  %v543_v41 = vld [vmem:[%s1047_s4 + $0x20] sm:$0xff] }
 0x15c   : > { %477 = vadd.xlane.f32.xlu2 %v476_v33  ;;  %v544_v33 = vld [vmem:[%s1047_s4 + $0x28] sm:$0xff] }
 0x1be   : > { %v463_v42 = vpop.xlane.xlu0 %462  ;;  %v466_v46 = vpop.xlane.xlu1 %465 }
 0x1bf   : > { %v460_v43 = vpop.xlane.xlu2 %459  ;;  %v483_v44 = vmul.f32 %v463_v42, %v878_v45  ;;  %v484_v48 = vmul.f32 %v466_v46, %v878_v45  ;;  %v545_v42 = vld [vmem:[%s1047_s4 + $0x30] sm:$0xff] }
 0x1c0   : > { %v482_v29 = vmul.f32 %v460_v43, %v878_v45  ;;  %v546_v43 = vld [vmem:[%s1047_s4 + $0x38] sm:$0xff] }
 0x1c2   : > { %v490_v47 = vadd.f32 %v483_v44, %v482_v29  ;;  %v555_v44 = vld [vmem:[%s1048_s5] sm:$0xff] }
 0x1c4   : > { %v491_v51 = vadd.f32 %v490_v47, %v484_v48  ;;  %v558_v47 = vld [vmem:[%s1048_s5 + $0x18] sm:$0xff] }
 0x1c6   : > { %v472_v49 = vpop.xlane.xlu0 %471  ;;  %v475_v55 = vpop.xlane.xlu1 %474 }
 0x1c7   : > { %v469_v50 = vpop.xlane.xlu2 %468  ;;  %v486_v53 = vmul.f32 %v472_v49, %v878_v45  ;;  %v487_v57 = vmul.f32 %v475_v55, %v878_v45 }
 0x1c8   : > { %v485_v52 = vmul.f32 %v469_v50, %v878_v45 }
 0x1ca   : > { %v492_v54 = vadd.f32 %v491_v51, %v485_v52  ;;  %v559_v52 = vld [vmem:[%s1048_s5 + $0x20] sm:$0xff] }
 0x1cc   : > { %v493_v56 = vadd.f32 %v492_v54, %v486_v53  ;;  %v560_v53 = vld [vmem:[%s1048_s5 + $0x28] sm:$0xff] }
 0x1ce   : > { %v481_v58 = vpop.xlane.xlu0 %480  ;;  %v494_v60 = vadd.f32 %v493_v56, %v487_v57 }
 0x1cf   : > { %v478_v59 = vpop.xlane.xlu2 %477  ;;  %v489_v62 = vmul.f32 %v481_v58, %v878_v45  ;;  %v561_v58 = vld [vmem:[%s1048_s5 + $0x30] sm:$0xff] }
 0x1d0   : > { %v488_v61 = vmul.f32 %v478_v59, %v878_v45  ;;  %v523_v45 = vld [vmem:[%s1046_s3] sm:$0xff] }
 0x1d2   : > { %v495_v63 = vadd.f32 %v494_v60, %v488_v61 }
 0x1d4   : > { %v496_v0 = vadd.f32 %v495_v63, %v489_v62  ;;  %v562_v63 = vld [vmem:[%s1048_s5 + $0x38] sm:$0xff] }
 0x1d6   : > { %v497_v1 = vrot.slane %v496_v0, 4 }
 0x1d8   : > { %v498_v2 = vadd.f32 %v497_v1, %v496_v0 }
 0x1da   : > { %v499_v3 = vrot.slane %v498_v2, 2 }
 0x1dc   : > { %v500_v4 = vadd.f32 %v499_v3, %v498_v2 }
 0x1de   : > { %v501_v5 = vrot.slane %v500_v4, 1 }
 0x1e0   : > { %v502_v6 = vadd.f32 %v501_v5, %v500_v4 }
 0x1e2   : > { %v503_v7 = vmul.f32 %v502_v6, %v888_v14  ;;  %v525_v14 = vld [vmem:[%s1046_s3 + $0x10] sm:$0xff] }
 0x1e4   : > { %v504_v8 = vadd.f32 1e-05, %v503_v7 }
 0x1e6   : > { %755 = vrsqrt.f32 %v504_v8  ;;  %vm511_vm4 = vweird.f32 %v504_v8 }
 0x1ec   : > { %v756_v9 = vpop.eup %755 }
 0x1ed   : > { %v506_v10 = vmul.f32 %v756_v9, %v504_v8  ;;  %vm512_vm3 = vweird.f32 %v756_v9 }
 0x1ee   : > { %vm513_vm5 = vmor %vm511_vm4, %vm512_vm3 }
 0x1ef   : > { %v507_v11 = vmul.f32 %v756_v9, %v506_v10 }
 0x1f1   : > { %v508_v12 = vmul.f32 0.5, %v507_v11 }
 0x1f3   : > { %v509_v13 = vsub.f32 1.5, %v508_v12 }
 0x1f5   : > { %v510_v18 = vmul.f32 %v756_v9, %v509_v13 }
 0x1f7   : > { %v514_v24 = vsel %vm513_vm5, %v756_v9, %v510_v18 }
 0x1f8   : > { %v515_v36 = vmul.f32 %v514_v24, %v898_v22  ;;  %v516_v21 = vmul.f32 %v514_v24, %v895_v20  ;;  %v517_v25 = vmul.f32 %v514_v24, %v892_v19  ;;  %v518_v39 = vmul.f32 %v514_v24, %v915_v31 }
 0x1f9   : > { %v519_v22 = vmul.f32 %v514_v24, %v912_v15  ;;  %v520_v20 = vmul.f32 %v514_v24, %v906_v28  ;;  %v521_v19 = vmul.f32 %v514_v24, %v930_v38  ;;  %v522_v31 = vmul.f32 %v514_v24, %v926_v37  ;;  %v556_v37 = vld [vmem:[%s1048_s5 + $0x8] sm:$0xff]  ;;  %v557_v38 = vld [vmem:[%s1048_s5 + $0x10] sm:$0xff] }
 0x1fa   : > { %v531_v29 = vmul.f32 %v523_v45, %v515_v36  ;;  %v532_v15 = vmul.f32 %v524_v17, %v516_v21  ;;  %v533_v46 = vmul.f32 %v525_v14, %v517_v25  ;;  %v534_v28 = vmul.f32 %v526_v23, %v518_v39 }
 0x1fb   : > { %v535_v48 = vmul.f32 %v527_v26, %v519_v22  ;;  %v536_v49 = vmul.f32 %v528_v27, %v520_v20  ;;  %v537_v50 = vmul.f32 %v529_v16, %v521_v19  ;;  %v538_v51 = vmul.f32 %v530_v30, %v522_v31 }
 0x1fc   : > { %v547_v54 = vadd.f32 %v539_v34, %v531_v29  ;;  %v548_v55 = vadd.f32 %v540_v32, %v532_v15  ;;  %v549_v56 = vadd.f32 %v541_v35, %v533_v46  ;;  %v550_v57 = vadd.f32 %v542_v40, %v534_v28 }
 0x1fd   : > { %v551_v59 = vadd.f32 %v543_v41, %v535_v48  ;;  %v552_v60 = vadd.f32 %v544_v33, %v536_v49  ;;  %v553_v61 = vadd.f32 %v545_v42, %v537_v50  ;;  %v554_v62 = vadd.f32 %v546_v43, %v538_v51 }
 0x1fe   : > { %v563_v0 = vadd.f32 %v555_v44, %v547_v54  ;;  %v564_v1 = vadd.f32 %v556_v37, %v548_v55  ;;  %v565_v2 = vadd.f32 %v557_v38, %v549_v56  ;;  %v566_v3 = vadd.f32 %v558_v47, %v550_v57 }
 0x1ff   : > { %v567_v4 = vadd.f32 %v559_v52, %v551_v59  ;;  %v568_v5 = vadd.f32 %v560_v53, %v552_v60  ;;  %v569_v6 = vadd.f32 %v561_v58, %v553_v61  ;;  %v570_v10 = vadd.f32 %v562_v63, %v554_v62 }
 0x200   : > { %v571_v7 = vpack.c.bf16 %v563_v0, %v563_v0  ;;  %v572_v8 = vpack.c.bf16 %v564_v1, %v564_v1  ;;  %v573_v9 = vpack.c.bf16 %v565_v2, %v565_v2  ;;  %v574_v11 = vpack.c.bf16 %v566_v3, %v566_v3 }
 0x201   : > { %v575_v12 = vpack.c.bf16 %v567_v4, %v567_v4  ;;  %v576_v13 = vpack.c.bf16 %v568_v5, %v568_v5  ;;  %v577_v45 = vpack.c.bf16 %v569_v6, %v569_v6  ;;  %v578_v17 = vpack.c.bf16 %v570_v10, %v570_v10 }
 0x202   : > { %580 = vst.msk [vmem:[%s251_s7] sm:$0xf] %vm579_vm6, %v571_v7 }
 0x203   : > { %581 = vst.msk [vmem:[%s251_s7 + $0x4] sm:$0xf] %vm579_vm6, %v572_v8 }
 0x204   : > { %582 = vst.msk [vmem:[%s251_s7 + $0x8] sm:$0xf] %vm579_vm6, %v573_v9 }
 0x205   : > { %583 = vst.msk [vmem:[%s251_s7 + $0xc] sm:$0xf] %vm579_vm6, %v574_v11 }
 0x206   : > { %584 = vst.msk [vmem:[%s251_s7 + $0x10] sm:$0xf] %vm579_vm6, %v575_v12 }
 0x207   : > { %585 = vst.msk [vmem:[%s251_s7 + $0x14] sm:$0xf] %vm579_vm6, %v576_v13 }
 0x208   : > { %586 = vst.msk [vmem:[%s251_s7 + $0x18] sm:$0xf] %vm579_vm6, %v577_v45 }
 0x209   : > { %587 = vst.msk [vmem:[%s251_s7 + $0x1c] sm:$0xf] %vm579_vm6, %v578_v17 }
 0x20a PF: > { %s16_s21 = sadd.s32 1, %s763_s21  }
 0x20b   : > { %p13_p4 = scmp.ge.s32.totalorder %s16_s21, 4  }
 0x20d   :  { %15 = sbr.rel (!%p13_p4) target bundleno = 1 (0x1), region = 74 }

// kernel: _forward.5
= control target key start
LH: loop header
LB: loop body
LE: loop exit
PB: predicated region body
PF: predicated region fallthrough
CT: control target
= control target key end

     0   :  { %s978_s12 = smov 0   ;;  %s1428_s0 = inlined_call_operand.vmem [shape: bf16[2,11,11,32], index: 0, kind: input, shape index: {}]   ;;  %s1429_s1 = inlined_call_operand.vmem [shape: bf16[16,8,32], index: 1, kind: input, shape index: {}]   ;;  %s1430_s2 = inlined_call_operand.vmem [shape: f32[8,1], index: 2, kind: input, shape index: {}]   ;;  %s1431_s3 = inlined_call_operand.vmem [shape: f32[2,8,64], index: 3, kind: output, shape index: {}]  }
   0x1 LB: > { %s896_s13 = sadd.s32 4294967295, %s955_s12   ;;  %p900_p0 = scmp.ge.s32.totalorder %s955_s12, 1  ;;  %s955_s12 = sphi %s978_s12, %s13_s12  }
   0x2   : > { %p137_p1 = scmp.lt.s32.totalorder %s955_s12, 3 }
   0x4   : > { %p138_p2 = pnand %p900_p0, %p137_p1 }
   0x5   : > { %p160_p3 = scmp.lt.s32.totalorder (!%p138_p2), %s896_s13, 1 }
   0x6   : > { %141 = sbr.rel (%p138_p2) target bundleno = 299 (0x12b), region = 32 }
   0xb   : > { %s1433_s13 = smov (!%p160_p3, %s896_s13), 1  ;;  %vm274_vm0 = vcmask 261120   ;;  %vm235_vm1 = vcmask 1046528   ;;  %vm331_vm2 = vcmask 1045504   ;;  %vm399_vm3 = vcmask 1044480  }
   0xc   : > { %s936_s14 = smul.u32 88, %s1433_s13  ;;  %s902_s27 = sshll.u32 %s1433_s13, 3  ;;  %vm841_vm4 = vcmask 523264  }
   0xd   : > { %s168_s30 = scalar_lea.vmem %s1431_s3, %s902_s27 }
   0xe   : > { %s992_s17 = scalar_lea.vmem %s1428_s0, %s936_s14 }
   0xf   : > { %v182_v0 = vld [vmem:[%s992_s17 + $0x30] sm:$0xf]  ;;  %v184_v1 = vld [vmem:[%s992_s17 + $0x38] sm:$0xf]  ;;  %v183_v2 = vld [vmem:[%s992_s17 + $0x34] sm:$0x3] }
  0x10   : > { %v997_v3 = vunpack.c.l.bf16 %v182_v0  ;;  %v999_v4 = vunpack.c.l.bf16 %v184_v1  ;;  %v185_v5 = vld [vmem:[%s992_s17 + $0x3c] sm:$0x3]  ;;  %v205_v6 = vunpack.c.l.bf16 %v183_v2  ;;  %v178_v7 = vld [vmem:[%s992_s17 + $0x20] sm:$0xf]  ;;  %v180_v8 = vld [vmem:[%s992_s17 + $0x28] sm:$0xf] }
  0x11   : > { %v207_v9 = vunpack.c.l.bf16 %v185_v5  ;;  %v1004_v10 = vunpack.c.l.bf16 %v178_v7  ;;  %v1006_v11 = vunpack.c.l.bf16 %v180_v8  ;;  %v179_v20 = vld [vmem:[%s992_s17 + $0x24] sm:$0x3]  ;;  %v181_v25 = vld [vmem:[%s992_s17 + $0x2c] sm:$0x3]  ;;  %v174_v46 = vld [vmem:[%s992_s17 + $0x10] sm:$0xf] }
  0x12   : > { %v218_v12 = vpack.c.bf16 %v999_v4, %v997_v3  ;;  %v254_v13 = vrot.slane %v997_v3, 1  ;;  %v255_v14 = vrot.slane %v205_v6, 1  ;;  %v257_v15 = vrot.slane %v999_v4, 1  ;;  %v176_v51 = vld [vmem:[%s992_s17 + $0x18] sm:$0xf] }
  0x13   : > { %v258_v16 = vrot.slane %v207_v9, 1  ;;  %v350_v17 = vrot.slane %v997_v3, 2  ;;  %v351_v18 = vrot.slane %v205_v6, 2  ;;  %v353_v19 = vrot.slane %v999_v4, 2  ;;  %v175_v56 = vld [vmem:[%s992_s17 + $0x14] sm:$0x3] }
  0x14   : > { %v1016_v21 = vsel %vm274_vm0, %v218_v12, 0  ;;  %v1019_v22 = vsel %vm235_vm1, %v254_v13, %v255_v14  ;;  %v354_v23 = vrot.slane %v207_v9, 2  ;;  %v418_v24 = vrot.slane %v997_v3, 3  ;;  %v177_v61 = vld [vmem:[%s992_s17 + $0x1c] sm:$0x3] }
  0x15   : > { %322 = vmatpush.bf16.xpose.msra.mxu1 %v1016_v21  ;;  %v1025_v26 = vsel %vm235_vm1, %v257_v15, %v258_v16  ;;  %v1028_v27 = vsel %vm331_vm2, %v350_v17, %v351_v18  ;;  %v419_v28 = vrot.slane %v205_v6, 3  ;;  %v421_v29 = vrot.slane %v999_v4, 3  ;;  %v170_v18 = vld [vmem:[%s992_s17] sm:$0xf] }
  0x16   : > { %v273_v30 = vpack.c.bf16 %v1025_v26, %v1019_v22  ;;  %v1034_v31 = vsel %vm331_vm2, %v353_v19, %v354_v23  ;;  %v422_v32 = vrot.slane %v207_v9, 3  ;;  %v217_v33 = vpack.c.bf16 %v1006_v11, %v1004_v10 }
  0x17   : > { %v369_v34 = vpack.c.bf16 %v1034_v31, %v1028_v27  ;;  %v1041_v35 = vsel %vm399_vm3, %v418_v24, %v419_v28  ;;  %v201_v36 = vunpack.c.l.bf16 %v179_v20  ;;  %v203_v37 = vunpack.c.l.bf16 %v181_v25  ;;  %v172_v25 = vld [vmem:[%s992_s17 + $0x8] sm:$0xf] }
  0x18   : > { %v1044_v38 = vsel %vm274_vm0, %v273_v30, 0  ;;  %v1047_v39 = vsel %vm399_vm3, %v421_v29, %v422_v32  ;;  %v1050_v40 = vsel %vm274_vm0, %v217_v33, 0  ;;  %v248_v41 = vrot.slane %v1004_v10, 1  ;;  %v186_v33 = vld [vmem:[%s992_s17 + $0x40] sm:$0xf] }
  0x19   : > { %294 = vmatpush.bf16.xpose.msra.mxu0 %v1044_v38  ;;  %v1055_v42 = vsel %vm274_vm0, %v369_v34, 0  ;;  %v437_v43 = vpack.c.bf16 %v1047_v39, %v1041_v35  ;;  %v249_v44 = vrot.slane %v201_v36, 1  ;;  %v251_v45 = vrot.slane %v1006_v11, 1 }
  0x1a   : > { %389 = vmatpush.bf16.xpose.msra.mxu2 %v1055_v42  ;;  %v252_v47 = vrot.slane %v203_v37, 1  ;;  %v344_v48 = vrot.slane %v1004_v10, 2  ;;  %v345_v49 = vrot.slane %v201_v36, 2  ;;  %v347_v50 = vrot.slane %v1006_v11, 2 }
  0x1b   : > { %v1066_v52 = vsel %vm274_vm0, %v437_v43, 0  ;;  %v1069_v53 = vsel %vm235_vm1, %v248_v41, %v249_v44  ;;  %v348_v54 = vrot.slane %v203_v37, 2  ;;  %v412_v55 = vrot.slane %v1004_v10, 3 }
  0x1c   : > { %457 = vmatpush.bf16.xpose.msra.mxu3 %v1066_v52  ;;  %v1075_v57 = vsel %vm235_vm1, %v251_v45, %v252_v47  ;;  %v1078_v58 = vsel %vm331_vm2, %v344_v48, %v345_v49  ;;  %v413_v59 = vrot.slane %v201_v36, 3  ;;  %v415_v60 = vrot.slane %v1006_v11, 3  ;;  %v187_v47 = vld [vmem:[%s992_s17 + $0x44] sm:$0x3] }
  0x1d   : > { %323 = vmatpush.bf16.xpose.msra.mxu1 %v1050_v40  ;;  %v272_v62 = vpack.c.bf16 %v1075_v57, %v1069_v53  ;;  %v1086_v63 = vsel %vm331_vm2, %v347_v50, %v348_v54  ;;  %v416_v0 = vrot.slane %v203_v37, 3  ;;  %v1088_v1 = vunpack.c.l.bf16 %v174_v46  ;;  %v171_v54 = vld [vmem:[%s992_s17 + $0x4] sm:$0x3] }
  0x1e   : > { %v368_v2 = vpack.c.bf16 %v1086_v63, %v1078_v58  ;;  %v1093_v5 = vsel %vm399_vm3, %v412_v55, %v413_v59  ;;  %v1095_v6 = vunpack.c.l.bf16 %v176_v51  ;;  %v197_v7 = vunpack.c.l.bf16 %v175_v56 }
  0x1f   : > { %v1098_v8 = vsel %vm274_vm0, %v272_v62, 0  ;;  %v1101_v9 = vsel %vm399_vm3, %v415_v60, %v416_v0  ;;  %v199_v12 = vunpack.c.l.bf16 %v177_v61  ;;  %v242_v13 = vrot.slane %v1088_v1, 1 }
  0x20   : > { %v1105_v14 = vsel %vm274_vm0, %v368_v2, 0  ;;  %v436_v15 = vpack.c.bf16 %v1101_v9, %v1093_v5  ;;  %v216_v16 = vpack.c.bf16 %v1095_v6, %v1088_v1  ;;  %v243_v17 = vrot.slane %v197_v7, 1  ;;  %v173_v2 = vld [vmem:[%s992_s17 + $0xc] sm:$0x3] }
  0x21   : > { %295 = vmatpush.bf16.xpose.msra.mxu0 %v1098_v8  ;;  %v245_v19 = vrot.slane %v1095_v6, 1  ;;  %v246_v20 = vrot.slane %v199_v12, 1  ;;  %v338_v23 = vrot.slane %v1088_v1, 2  ;;  %v339_v24 = vrot.slane %v197_v7, 2 }
  0x22   : > { %390 = vmatpush.bf16.xpose.msra.mxu2 %v1105_v14  ;;  %v1118_v28 = vsel %vm274_vm0, %v436_v15, 0  ;;  %v1121_v29 = vsel %vm274_vm0, %v216_v16, 0  ;;  %v1124_v30 = vsel %vm235_vm1, %v242_v13, %v243_v17  ;;  %v341_v32 = vrot.slane %v1095_v6, 2 }
  0x23   : > { %v1129_v34 = vsel %vm235_vm1, %v245_v19, %v246_v20  ;;  %v1132_v36 = vsel %vm331_vm2, %v338_v23, %v339_v24  ;;  %v342_v37 = vrot.slane %v199_v12, 2  ;;  %v406_v41 = vrot.slane %v1088_v1, 3 }
  0x24   : > { %458 = vmatpush.bf16.xpose.msra.mxu3 %v1118_v28  ;;  %v271_v43 = vpack.c.bf16 %v1129_v34, %v1124_v30  ;;  %v407_v44 = vrot.slane %v197_v7, 3  ;;  %v409_v45 = vrot.slane %v1095_v6, 3  ;;  %v410_v46 = vrot.slane %v199_v12, 3 }
  0x25   : > { %324 = vmatpush.bf16.xpose.msra.mxu1 %v1121_v29  ;;  %v1142_v48 = vsel %vm331_vm2, %v341_v32, %v342_v37  ;;  %v192_v49 = vunpack.c.l.bf16 %v170_v18  ;;  %v1144_v50 = vunpack.c.l.bf16 %v172_v25  ;;  %v1146_v51 = vunpack.c.l.bf16 %v186_v33 }
  0x26   : > { %v1150_v55 = vsel %vm274_vm0, %v271_v43, 0  ;;  %v367_v56 = vpack.c.bf16 %v1142_v48, %v1132_v36  ;;  %v1155_v59 = vsel %vm399_vm3, %v406_v41, %v407_v44  ;;  %v1158_v60 = vsel %vm399_vm3, %v409_v45, %v410_v46 }
  0x27   : > { %v435_v61 = vpack.c.bf16 %v1158_v60, %v1155_v59  ;;  %v215_v62 = vpack.c.bf16 %v1144_v50, %v192_v49  ;;  %v209_v0 = vunpack.c.l.bf16 %v187_v47  ;;  %v504_v12 = vrot.slane %v1146_v51, 1 }
  0x28   : > { %v1165_v7 = vsel %vm274_vm0, %v367_v56, 0  ;;  %v193_v13 = vunpack.c.l.bf16 %v171_v54  ;;  %v195_v18 = vunpack.c.l.bf16 %v173_v2  ;;  %v236_v19 = vrot.slane %v192_v49, 1 }
  0x29   : > { %296 = vmatpush.bf16.xpose.msra.mxu0 %v1150_v55  ;;  %v1170_v15 = vsel %vm274_vm0, %v435_v61, 0  ;;  %v505_v16 = vrot.slane %v209_v0, 1  ;;  %v307_v17 = vsel %vm274_vm0, %v215_v62, 0  ;;  %v239_v24 = vrot.slane %v1144_v50, 1 }
  0x2a   : > { %391 = vmatpush.bf16.xpose.msra.mxu2 %v1165_v7  ;;  %v237_v20 = vrot.slane %v193_v13, 1  ;;  %v332_v25 = vrot.slane %v192_v49, 2  ;;  %v333_v32 = vrot.slane %v193_v13, 2  ;;  %v240_v41 = vrot.slane %v195_v18, 1 }
  0x2b   : > { %v1175_v23 = vsel %vm235_vm1, %v504_v12, %v505_v16  ;;  %v335_v44 = vrot.slane %v1144_v50, 2  ;;  %v336_v45 = vrot.slane %v195_v18, 2  ;;  %v400_v54 = vrot.slane %v192_v49, 3 }
  0x2c   : > { %459 = vmatpush.bf16.xpose.msra.mxu3 %v1170_v15  ;;  %v513_v33 = vpack.c.bf16 %v1175_v23, %v1025_v26  ;;  %v238_v37 = vsel %vm235_vm1, %v236_v19, %v237_v20  ;;  %v334_v43 = vsel %vm331_vm2, %v332_v25, %v333_v32  ;;  %v1188_v47 = vsel %vm235_vm1, %v239_v24, %v240_v41  ;;  %v214_v24 = vld [vmem:[%s1429_s1] sm:$0xf] }
  0x2d   : > { %325 = vmatpush.bf16.xpose.msra.mxu1 %v307_v17  ;;  %v401_v56 = vrot.slane %v193_v13, 3  ;;  %v270_v26 = vpack.c.bf16 %v1188_v47, %v238_v37  ;;  %v1193_v61 = vsel %vm331_vm2, %v335_v44, %v336_v45  ;;  %v403_v62 = vrot.slane %v1144_v50, 3 }
  0x2e   : > { %v1185_v46 = vsel %vm274_vm0, %v513_v33, 0  ;;  %v404_v2 = vrot.slane %v195_v18, 3  ;;  %v366_v12 = vpack.c.bf16 %v1193_v61, %v334_v43  ;;  %v472_v49 = vpack.c.bf16 %v1146_v51, %v999_v4  ;;  %v188_v4 = vld [vmem:[%s992_s17 + $0x48] sm:$0xf]  ;;  %v189_v33 = vld [vmem:[%s992_s17 + $0x4c] sm:$0x3] }
  0x2f   : > { %v402_v16 = vsel %vm399_vm3, %v400_v54, %v401_v56  ;;  %v543_v13 = vrot.slane %v1146_v51, 2  ;;  %v279_v17 = vsel %vm274_vm0, %v270_v26, 0  ;;  %v544_v20 = vrot.slane %v209_v0, 2 }
  0x30   : > { %v1203_v19 = vsel %vm399_vm3, %v403_v62, %v404_v2  ;;  %v374_v18 = vsel %vm274_vm0, %v366_v12, 0  ;;  %v1211_v32 = vsel %vm274_vm0, %v472_v49, 0  ;;  %v582_v41 = vrot.slane %v1146_v51, 3  ;;  %v903_v12 = vld [vmem:[%s1429_s1 + $0x4] sm:$0xf] }
  0x31   : > { %297 = vmatpush.bf16.xpose.msra.mxu0 %v279_v17  ;;  %v434_v25 = vpack.c.bf16 %v1203_v19, %v402_v16  ;;  %v1217_v37 = vsel %vm331_vm2, %v543_v13, %v544_v20  ;;  %v583_v43 = vrot.slane %v209_v0, 3  ;;  %v512_v56 = vpack.c.bf16 %v1019_v22, %v1075_v57  ;;  %v908_v49 = vld [vmem:[%s1429_s1 + $0xc] sm:$0xf] }
  0x32   : > { %392 = vmatpush.bf16.xpose.msra.mxu2 %v374_v18  ;;  %v552_v45 = vpack.c.bf16 %v1217_v37, %v1034_v31  ;;  %v471_v26 = vpack.c.bf16 %v997_v3, %v1006_v11  ;;  %v1231_v62 = vunpack.c.l.bf16 %v188_v4  ;;  %v211_v0 = vunpack.c.l.bf16 %v189_v33  ;;  %v906_v3 = vld [vmem:[%s1429_s1 + $0x8] sm:$0xf]  ;;  %v191_v18 = vld [vmem:[%s992_s17 + $0x54] sm:$0x3] }
  0x33   : > { %v442_v44 = vsel %vm274_vm0, %v434_v25, 0  ;;  %v1225_v54 = vsel %vm399_vm3, %v582_v41, %v583_v43  ;;  %v1243_v22 = vsel %vm274_vm0, %v512_v56, 0  ;;  %v551_v57 = vpack.c.bf16 %v1028_v27, %v1086_v63 }
  0x34   : > { %905 = vmatmul.msk.bf16.vlgmr.msra.gmra.mxu1 %vm274_vm0, %v214_v24  ;;  %460 = vmatpush.bf16.xpose.msra.mxu3 %v442_v44  ;;  %v1234_v2 = vsel %vm274_vm0, %v552_v45, 0  ;;  %v591_v31 = vpack.c.bf16 %v1225_v54, %v1047_v39  ;;  %v1253_v39 = vsel %vm274_vm0, %v471_v26, 0  ;;  %v511_v16 = vpack.c.bf16 %v1069_v53, %v1129_v34  ;;  %v190_v24 = vld [vmem:[%s992_s17 + $0x50] sm:$0xf] }
  0x35   : > { %533 = vmatpush.bf16.xpose.msrb.mxu1 %v1185_v46  ;;  %v646_v13 = vrot.slane %v1231_v62, 1  ;;  %v647_v17 = vrot.slane %v211_v0, 1  ;;  %v590_v20 = vpack.c.bf16 %v1041_v35, %v1101_v9  ;;  %v1270_v27 = vsel %vm274_vm0, %v551_v57, 0 }
  0x36   : > { %v1249_v11 = vsel %vm274_vm0, %v591_v31, 0  ;;  %v470_v53 = vpack.c.bf16 %v1004_v10, %v1095_v6  ;;  %v1276_v63 = vsel %vm274_vm0, %v511_v16, 0  ;;  %v550_v9 = vpack.c.bf16 %v1078_v58, %v1142_v48 }
  0x37   : > { %v1279_v34 = vsel %vm235_vm1, %v646_v13, %v647_v17  ;;  %v1282_v35 = vsel %vm274_vm0, %v590_v20, 0  ;;  %v510_v6 = vpack.c.bf16 %v1124_v30, %v1188_v47  ;;  %v1295_v25 = vunpack.c.l.bf16 %v190_v24 }
  0x38   : > { %904 = vmatmul.msk.bf16.vlgmr.msra.gmra.mxu0 %vm274_vm0, %v903_v12  ;;  %v1291_v10 = vsel %vm274_vm0, %v470_v53, 0  ;;  %v213_v4 = vunpack.c.l.bf16 %v191_v18  ;;  %v652_v33 = vpack.c.bf16 %v1279_v34, %v1175_v23  ;;  %v673_v41 = vrot.slane %v1231_v62, 2 }
  0x39   : > { %492 = vmatpush.bf16.xpose.msrb.mxu0 %v1211_v32  ;;  %907 = vmatmul.msk.bf16.vlgmr.msra.gmra.mxu2 %vm274_vm0, %v906_v3  ;;  %v674_v58 = vrot.slane %v211_v0, 2  ;;  %v589_v48 = vpack.c.bf16 %v1093_v5, %v1158_v60  ;;  %v752_v43 = vrot.slane %v1295_v25, 1  ;;  %v700_v45 = vrot.slane %v1231_v62, 3 }
  0x3a   : > { %572 = vmatpush.bf16.xpose.msrb.mxu2 %v1234_v2  ;;  %v753_v44 = vrot.slane %v213_v4, 1  ;;  %v701_v30 = vrot.slane %v211_v0, 3  ;;  %v1307_v47 = vsel %vm274_vm0, %v550_v9, 0  ;;  %v518_v23 = vsel %vm274_vm0, %v510_v6, 0 }
  0x3b   : > { %909 = vmatmul.msk.bf16.vlgmr.msra.gmra.mxu3 %vm274_vm0, %v908_v49  ;;  %v469_v56 = vpack.c.bf16 %v1088_v1, %v1144_v50  ;;  %v623_v5 = vpack.c.bf16 %v1231_v62, %v1146_v51  ;;  %v779_v60 = vrot.slane %v1295_v25, 2  ;;  %v780_v31 = vrot.slane %v213_v4, 2 }
  0x3c   : > { %611 = vmatpush.bf16.xpose.msrb.mxu3 %v1249_v11  ;;  %v754_v26 = vsel %vm235_vm1, %v752_v43, %v753_v44  ;;  %v806_v0 = vrot.slane %v1295_v25, 3  ;;  %v675_v12 = vsel %vm331_vm2, %v673_v41, %v674_v58  ;;  %v1319_v3 = vsel %vm274_vm0, %v589_v48, 0 }
  0x3d   : > { %534 = vmatpush.bf16.xpose.msrb.mxu1 %v1243_v22  ;;  %v657_v57 = vsel %vm274_vm0, %v652_v33, 0  ;;  %v807_v16 = vrot.slane %v213_v4, 3  ;;  %v781_v1 = vsel %vm331_vm2, %v779_v60, %v780_v31  ;;  %v702_v50 = vsel %vm399_vm3, %v700_v45, %v701_v30 }
  0x3e   : > { %v477_v51 = vsel %vm274_vm0, %v469_v56, 0  ;;  %v549_v49 = vpack.c.bf16 %v1132_v36, %v1193_v61  ;;  %v679_v17 = vpack.c.bf16 %v675_v12, %v1217_v37  ;;  %v628_v20 = vsel %vm274_vm0, %v623_v5, 0  ;;  %v912_v36 = vld [vmem:[%s1429_s1 + $0x14] sm:$0xf] }
  0x3f   : > { %v808_v13 = vsel %vm399_vm3, %v806_v0, %v807_v16  ;;  %v588_v53 = vpack.c.bf16 %v1155_v59, %v1203_v19  ;;  %v706_v9 = vpack.c.bf16 %v702_v50, %v1225_v54  ;;  %v910_v59 = vld [vmem:[%s1429_s1 + $0x10] sm:$0xf]  ;;  %v914_v19 = vld [vmem:[%s1429_s1 + $0x18] sm:$0xf]  ;;  %v916_v54 = vld [vmem:[%s1429_s1 + $0x1c] sm:$0xf] }
  0x40   : > { %v557_v24 = vsel %vm274_vm0, %v549_v49, 0  ;;  %v684_v61 = vsel %vm274_vm0, %v679_v17, 0 }
  0x41   : > { %493 = vmatpush.bf16.xpose.msrb.mxu0 %v1253_v39  ;;  %v596_v37 = vsel %vm274_vm0, %v588_v53, 0  ;;  %v711_v18 = vsel %vm274_vm0, %v706_v9, 0 }
  0x42   : > { %573 = vmatpush.bf16.xpose.msrb.mxu2 %v1270_v27 }
  0x44   : > { %612 = vmatpush.bf16.xpose.msrb.mxu3 %v1282_v35 }
  0x45   : > { %535 = vmatpush.bf16.xpose.msrb.mxu1 %v1276_v63 }
  0x49   : > { %494 = vmatpush.bf16.xpose.msrb.mxu0 %v1291_v10 }
  0x4a   : > { %574 = vmatpush.bf16.xpose.msrb.mxu2 %v1307_v47 }
  0x4c   : > { %613 = vmatpush.bf16.xpose.msrb.mxu3 %v1319_v3 }
  0x4d   : > { %536 = vmatpush.bf16.xpose.msrb.mxu1 %v518_v23 }
  0x51   : > { %495 = vmatpush.bf16.xpose.msrb.mxu0 %v477_v51 }
  0x52   : > { %575 = vmatpush.bf16.xpose.msrb.mxu2 %v557_v24 }
  0x54   : > { %913 = vmatmul.msk.bf16.vlgmr.msrb.gmra.mxu1 %vm274_vm0, %v912_v36  ;;  %614 = vmatpush.bf16.xpose.msrb.mxu3 %v596_v37 }
  0x55   : > { %663 = vmatpush.bf16.xpose.msra.mxu1 %v657_v57 }
  0x58   : > { %911 = vmatmul.msk.bf16.vlgmr.msrb.gmra.mxu0 %vm274_vm0, %v910_v59 }
  0x59   : > { %634 = vmatpush.bf16.xpose.msra.mxu0 %v628_v20  ;;  %915 = vmatmul.msk.bf16.vlgmr.msrb.gmra.mxu2 %vm274_vm0, %v914_v19 }
  0x5a   : > { %690 = vmatpush.bf16.xpose.msra.mxu2 %v684_v61 }
  0x5b   : > { %917 = vmatmul.msk.bf16.vlgmr.msrb.gmra.mxu3 %vm274_vm0, %v916_v54 }
  0x5c   : > { %717 = vmatpush.bf16.xpose.msra.mxu3 %v711_v18 }
  0x5d   : > { %664 = vmatpush.bf16.xpose.msra.mxu1 %v1044_v38  ;;  %v758_v38 = vpack.c.bf16 %v754_v26, %v1279_v34 }
  0x5f   : > { %v763_v6 = vsel %vm274_vm0, %v758_v38, 0 }
  0x61   : > { %635 = vmatpush.bf16.xpose.msra.mxu0 %v1016_v21  ;;  %v729_v21 = vpack.c.bf16 %v1295_v25, %v1231_v62 }
  0x62   : > { %691 = vmatpush.bf16.xpose.msra.mxu2 %v1055_v42 }
  0x63   : > { %v734_v42 = vsel %vm274_vm0, %v729_v21, 0 }
  0x64   : > { %718 = vmatpush.bf16.xpose.msra.mxu3 %v1066_v52  ;;  %v812_v52 = vpack.c.bf16 %v808_v13, %v702_v50 }
  0x65   : > { %665 = vmatpush.bf16.xpose.msra.mxu1 %v1098_v8  ;;  %v785_v8 = vpack.c.bf16 %v781_v1, %v675_v12 }
  0x67   : > { %v790_v62 = vsel %vm274_vm0, %v785_v8, 0 }
  0x69   : > { %636 = vmatpush.bf16.xpose.msra.mxu0 %v1050_v40  ;;  %v920_v40 = vld [vmem:[%s1429_s1 + $0x24] sm:$0xf] }
  0x6a   : > { %692 = vmatpush.bf16.xpose.msra.mxu2 %v1105_v14  ;;  %v817_v14 = vsel %vm274_vm0, %v812_v52, 0 }
  0x6c   : > { %719 = vmatpush.bf16.xpose.msra.mxu3 %v1118_v28  ;;  %v918_v28 = vld [vmem:[%s1429_s1 + $0x20] sm:$0xf] }
  0x6d   : > { %666 = vmatpush.bf16.xpose.msra.mxu1 %v1150_v55  ;;  %v922_v55 = vld [vmem:[%s1429_s1 + $0x28] sm:$0xf] }
  0x71   : > { %637 = vmatpush.bf16.xpose.msra.mxu0 %v1121_v29  ;;  %v833_v29 = vld [vmem:[%s1430_s2] sm:$0xff] }
  0x72   : > { %693 = vmatpush.bf16.xpose.msra.mxu2 %v1165_v7  ;;  %v957_v7 = vmov 0  }
  0x73   : > { %946 = vset.pattern.permute.xlu0 %v957_v7 }
  0x74   : > { %921 = vmatmul.msk.bf16.vlgmr.msra.gmra.mxu1 %vm274_vm0, %v920_v40  ;;  %720 = vmatpush.bf16.xpose.msra.mxu3 %v1170_v15  ;;  %v924_v15 = vld [vmem:[%s1429_s1 + $0x2c] sm:$0xf] }
  0x75   : > { %769 = vmatpush.bf16.xpose.msrb.mxu1 %v763_v6  ;;  %836 = vperm.xlu0 %946, %v833_v29  }
  0x78   : > { %919 = vmatmul.msk.bf16.vlgmr.msra.gmra.mxu0 %vm274_vm0, %v918_v28 }
  0x79   : > { %740 = vmatpush.bf16.xpose.msrb.mxu0 %v734_v42  ;;  %923 = vmatmul.msk.bf16.vlgmr.msra.gmra.mxu2 %vm274_vm0, %v922_v55 }
  0x7a   : > { %796 = vmatpush.bf16.xpose.msrb.mxu2 %v790_v62 }
  0x7b   : > { %925 = vmatmul.msk.bf16.vlgmr.msra.gmra.mxu3 %vm274_vm0, %v924_v15 }
  0x7c   : > { %823 = vmatpush.bf16.xpose.msrb.mxu3 %v817_v14 }
  0x7d   : > { %770 = vmatpush.bf16.xpose.msrb.mxu1 %v1185_v46  ;;  %v928_v46 = vld [vmem:[%s1429_s1 + $0x34] sm:$0xf] }
  0x81   : > { %741 = vmatpush.bf16.xpose.msrb.mxu0 %v1211_v32  ;;  %v926_v32 = vld [vmem:[%s1429_s1 + $0x30] sm:$0xf] }
  0x82   : > { %797 = vmatpush.bf16.xpose.msrb.mxu2 %v1234_v2  ;;  %v930_v2 = vld [vmem:[%s1429_s1 + $0x38] sm:$0xf] }
  0x84   : > { %824 = vmatpush.bf16.xpose.msrb.mxu3 %v1249_v11 }
  0x85   : > { %771 = vmatpush.bf16.xpose.msrb.mxu1 %v1243_v22  ;;  %v932_v22 = vld [vmem:[%s1429_s1 + $0x3c] sm:$0xf] }
  0x89   : > { %742 = vmatpush.bf16.xpose.msrb.mxu0 %v1253_v39 }
  0x8a   : > { %798 = vmatpush.bf16.xpose.msrb.mxu2 %v1270_v27 }
  0x8c   : > { %825 = vmatpush.bf16.xpose.msrb.mxu3 %v1282_v35 }
  0x8d   : > { %772 = vmatpush.bf16.xpose.msrb.mxu1 %v1276_v63 }
  0x91   : > { %743 = vmatpush.bf16.xpose.msrb.mxu0 %v1291_v10 }
  0x92   : > { %799 = vmatpush.bf16.xpose.msrb.mxu2 %v1307_v47 }
  0x94   : > { %929 = vmatmul.msk.bf16.vlgmr.msrb.gmra.mxu1 %vm274_vm0, %v928_v46  ;;  %826 = vmatpush.bf16.xpose.msrb.mxu3 %v1319_v3 }
  0x98   : > { %927 = vmatmul.msk.bf16.vlgmr.msrb.gmra.mxu0 %vm274_vm0, %v926_v32 }
  0x99   : > { %931 = vmatmul.msk.bf16.vlgmr.msrb.gmra.mxu2 %vm274_vm0, %v930_v2 }
  0x9b   : > { %933 = vmatmul.msk.bf16.vlgmr.msrb.gmra.mxu3 %vm274_vm0, %v932_v22 }
  0xb1   : > { %v327_v11 = vpop.f32.mrf.mxu1 }
  0xb5   : > { %v299_v39 = vpop.f32.mrf.mxu0 }
  0xb6   : > { %v328_v44 = vadd.f32 %v327_v11, %v299_v39 }
  0xb9   : > { %v329_v27 = vpop.f32.mrf.mxu1 }
  0xbc   : > { %v394_v63 = vpop.f32.mrf.mxu2 }
  0xbd   : > { %v301_v34 = vpop.f32.mrf.mxu0  ;;  %v398_v47 = vadd.f32 %v394_v63, %v328_v44 }
  0xbe   : > { %v462_v35 = vpop.f32.mrf.mxu3 }
  0xbf   : > { %v466_v56 = vadd.f32 %v462_v35, %v398_v47 }
  0xc4   : > { %v396_v10 = vpop.f32.mrf.mxu2 }
  0xc6   : > { %v464_v25 = vpop.f32.mrf.mxu3 }
  0xd1   : > { %v538_v4 = vpop.f32.mrf.mxu1 }
  0xd5   : > { %v497_v33 = vpop.f32.mrf.mxu0 }
  0xd6   : > { %v501_v5 = vadd.f32 %v497_v33, %v466_v56 }
  0xd8   : > { %v542_v31 = vadd.f32 %v538_v4, %v501_v5 }
  0xd9   : > { %v540_v41 = vpop.f32.mrf.mxu1 }
  0xdc   : > { %v577_v48 = vpop.f32.mrf.mxu2 }
  0xdd   : > { %v499_v58 = vpop.f32.mrf.mxu0  ;;  %v581_v3 = vadd.f32 %v577_v48, %v542_v31 }
  0xde   : > { %v616_v43 = vpop.f32.mrf.mxu3 }
  0xdf   : > { %v620_v16 = vadd.f32 %v616_v43, %v581_v3 }
  0xe4   : > { %v579_v45 = vpop.f32.mrf.mxu2 }
  0xe6   : > { %v618_v30 = vpop.f32.mrf.mxu3 }
  0xe7   : > { %v837_v19 = vpop.permute.xlu0 %836 }
  0xf1   : > { %v668_v23 = vpop.f32.mrf.mxu1 }
  0xf5   : > { %v639_v26 = vpop.f32.mrf.mxu0 }
  0xf6   : > { %v643_v1 = vadd.f32 %v639_v26, %v620_v16 }
  0xf8   : > { %v672_v49 = vadd.f32 %v668_v23, %v643_v1 }
  0xf9   : > { %v670_v60 = vpop.f32.mrf.mxu1 }
  0xfc   : > { %v695_v12 = vpop.f32.mrf.mxu2 }
  0xfd   : > { %v641_v0 = vpop.f32.mrf.mxu0  ;;  %v699_v17 = vadd.f32 %v695_v12, %v672_v49 }
  0xfe   : > { %v722_v57 = vpop.f32.mrf.mxu3 }
  0xff   : > { %v726_v53 = vadd.f32 %v722_v57, %v699_v17 }
 0x104   : > { %v697_v50 = vpop.f32.mrf.mxu2 }
 0x106   : > { %v724_v51 = vpop.f32.mrf.mxu3 }
 0x111   : > { %v774_v13 = vpop.f32.mrf.mxu1 }
 0x115   : > { %v745_v20 = vpop.f32.mrf.mxu0 }
 0x116   : > { %v749_v9 = vadd.f32 %v745_v20, %v726_v53 }
 0x118   : > { %v778_v61 = vadd.f32 %v774_v13, %v749_v9 }
 0x119   : > { %v776_v24 = vpop.f32.mrf.mxu1 }
 0x11c   : > { %v801_v37 = vpop.f32.mrf.mxu2 }
 0x11d   : > { %v747_v36 = vpop.f32.mrf.mxu0  ;;  %v805_v18 = vadd.f32 %v801_v37, %v778_v61 }
 0x11e   : > { %v828_v59 = vpop.f32.mrf.mxu3 }
 0x11f   : > { %v832_v54 = vadd.f32 %v828_v59, %v805_v18 }
 0x121   : > { %v839_v38 = vadd.f32 %v837_v19, %v832_v54 }
 0x123   : > { %947 = vtanh.f32 %v839_v38 }
 0x124   : > { %v803_v21 = vpop.f32.mrf.mxu2 }
 0x126   : > { %v830_v6 = vpop.f32.mrf.mxu3 }
 0x129   : > { %v948_v42 = vpop.eup %947 }
 0x12a   : > { %842 = vst.msk [vmem:[%s168_s30] sm:$0xff] %vm841_vm4, %v948_v42 }
 0x12b PF: > { %s13_s12 = sadd.s32 1, %s955_s12  }
 0x12c   : > { %p10_p4 = scmp.ge.s32.totalorder %s13_s12, 4  }
 0x12e   :  { %12 = sbr.rel (!%p10_p4) target bundleno = 1 (0x1), region = 77 }

// kernel: _forward.4
= control target key start
LH: loop header
LB: loop body
LE: loop exit
PB: predicated region body
PF: predicated region fallthrough
CT: control target
= control target key end

     0   :  { %s3814_s29 = smov 0   ;;  %s3816_s30 = smov 0   ;;  %s5057_s0 = inlined_call_operand.vmem [shape: bf16[2,64,32], index: 0, kind: input, shape index: {}]   ;;  %s5058_s1 = inlined_call_operand.vmem [shape: f32[2,1,32], index: 1, kind: input, shape index: {}]   ;;  %s5059_s2 = inlined_call_operand.vmem [shape: f32[2,1,32], index: 2, kind: input, shape index: {}]   ;;  %s5060_s3 = inlined_call_operand.vmem [shape: bf16[2,32,96], index: 3, kind: input, shape index: {}]   ;;  %s5061_s4 = inlined_call_operand.vmem [shape: f32[2,1,96], index: 4, kind: input, shape index: {}]   ;;  %s5062_s5 = inlined_call_operand.vmem [shape: bf16[2,32,32], index: 5, kind: input, shape index: {}]   ;;  %s5063_s6 = inlined_call_operand.vmem [shape: f32[2,1,32], index: 6, kind: input, shape index: {}]   ;;  %s5064_s7 = inlined_call_operand.vmem [shape: f32[2,1,32], index: 7, kind: input, shape index: {}]   ;;  %s5065_s8 = inlined_call_operand.vmem [shape: f32[2,1,32], index: 8, kind: input, shape index: {}]   ;;  %s5066_s9 = inlined_call_operand.vmem [shape: bf16[2,32,128], index: 9, kind: input, shape index: {}]   ;;  %s5067_s10 = inlined_call_operand.vmem [shape: f32[2,1,128], index: 10, kind: input, shape index: {}]   ;;  %s5068_s11 = inlined_call_operand.vmem [shape: bf16[2,128,32], index: 11, kind: input, shape index: {}]   ;;  %s5069_s12 = inlined_call_operand.vmem [shape: f32[2,1,32], index: 12, kind: input, shape index: {}]   ;;  %s5070_s13 = inlined_call_operand.vmem [shape: bf16[2,64,32], index: 13, kind: input, shape index: {}]   ;;  %s5071_s14 = inlined_call_operand.vmem [shape: bf16[2,64,32], index: 14, kind: output, shape index: {}]  }
   0x1   :  { %5076 = sst [smem:[#allocation9_spill]] %s5057_s0  ;;  %s3818_s15 = smov 0  }
   0x2   :  { %5077 = sst [smem:[#allocation10_spill]] %s5059_s2  ;;  %s3820_s16 = smov 0  }
   0x3   :  { %5078 = sst [smem:[#allocation11_spill]] %s5060_s3  ;;  %s3822_s17 = smov 0  }
   0x4   :  { %5079 = sst [smem:[#allocation12_spill]] %s5062_s5 }
   0x5   :  { %5080 = sst [smem:[#allocation13_spill]] %s5066_s9 }
   0x6   :  { %5081 = sst [smem:[#allocation14_spill]] %s5070_s13 }
   0x7   :  { %5082 = sst [smem:[#allocation15_spill]] %s5071_s14 }
   0x8 LB: > { %5083 = sst [smem:[#allocation3_spill]] %s3706_s29  ;;  %s33_s18 = sadd.s32 1, %s3714_s15  ;;  %s3722_s17 = sphi %s3822_s17, %s24_s17   ;;  %s3718_s16 = sphi %s3820_s16, %s5111_s16   ;;  %s3714_s15 = sphi %s3818_s15, %s5110_s15   ;;  %s3710_s30 = sphi %s3816_s30, %s5109_s30   ;;  %s3706_s29 = sphi %s3814_s29, %s5108_s29  }
   0x9   : > { %5084 = sst [smem:[#allocation4_spill]] %s3714_s15  ;;  %s36_s19 = sadd.s32 1, %s3718_s16 }
   0xa   : > { %5085 = sst [smem:[#allocation5_spill]] %s3718_s16  ;;  %p34_p0 = scmp.ge.s32.totalorder %s33_s18, 2 }
   0xb   : > { %5086 = sst [smem:[#allocation6_spill]] %s3722_s17  ;;  %p3173_p1 = scmp.ge.s32.totalorder %s3722_s17, 1 }
   0xc   : > { %p538_p2 = scmp.lt.s32.totalorder %s3722_s17, 5  ;;  %s5113_s18 = smov (%p34_p0, %s33_s18), 0 }
   0xd   : > { %5087 = sst [smem:[#allocation7_spill]] %s5113_s18  ;;  %s5115_s19 = smov (!%p34_p0, %s36_s19), %s3718_s16 }
   0xe   : > { %p539_p3 = pnand %p3173_p1, %p538_p2  ;;  %p38_p4 = scmp.ge.s32.totalorder %s5115_s19, 2 }
   0xf   : > { %p633_p5 = scmp.lt.s32.totalorder (!%p539_p3), %s3710_s30, 1  ;;  %p638_p6 = scmp.lt.s32.totalorder (!%p539_p3), %s3706_s29, 1 }
  0x10   : > { %s5117_s19 = smov (%p38_p4, %s5115_s19), 0  ;;  %542 = sbr.rel (%p539_p3) target bundleno = 2856 (0xb28), region = 76 }
  0x11   : > { %5088 = sst [smem:[#allocation8_spill]] %s5117_s19 }
  0x12   : > { %s5089_s0 = sld [smem:[#allocation9_spill]] (!%p539_p3) }
  0x13   : > { %s5091_s3 = sld [smem:[#allocation11_spill]] (!%p539_p3) }
  0x14   : > { %s5092_s5 = sld [smem:[#allocation12_spill]] (!%p539_p3) }
  0x15   : > { %s5119_s30 = smov (!%p633_p5, %s3710_s30), 1  ;;  %s5093_s9 = sld [smem:[#allocation13_spill]] }
  0x16   : > { %s3848_s20 = scalar_select %p638_p6, %s3706_s29, 1 }
  0x17   : > { %s3300_s21 = sshll.u32 %s5119_s30, 5  ;;  %s5096_s23 = sld [smem:[#allocation3_spill]] }
  0x18   : > { %s637_s24 = scalar_lea.vmem %s5089_s0, %s3300_s21  ;;  %s3301_s16 = sshll.u32 %s3848_s20, 4 }
  0x19   : > { %s3865_s29 = scalar_lea.vmem %s5091_s3, %s3301_s16  ;;  %s673_s13 = scalar_lea.vmem %s5067_s10, %s3848_s20 }
  0x1a   : > { %s3874_s0 = scalar_lea.vmem %s5092_s5, %s3301_s16  ;;  %s3304_s5 = sshll.u32 %s3848_s20, 6 }
  0x1b   : > { %s3891_s30 = scalar_lea.vmem %s5093_s9, %s3301_s16  ;;  %s681_s19 = scalar_lea.vmem %s5069_s12, %s3848_s20 }
  0x1c   : > { %s3905_s27 = scalar_lea.vmem %s5068_s11, %s3304_s5  ;;  %s5094_s3 = sld [smem:[#allocation14_spill]] }
  0x1d   : > { %s5095_s9 = sld [smem:[#allocation15_spill]]  ;;  %p3188_p7 = scmp.ne.s32.totalorder %s5096_s23, 0 }
  0x1f   : > { %696 = sbr.rel (%p3188_p7) target bundleno = 47 (0x2f), region = 80 }
  0x22   : > { %s3910_s2 = scalar_lea.vmem %s5094_s3, %s3300_s21 }
  0x23   : > { %s3915_s22 = scalar_lea.vmem %s5095_s9, %s3300_s21 }
  0x24   : > { %v3322_v0 = vld [vmem:[%s637_s24] sm:$0xff]   ;;  %vm713_vm0 = vcmask 261120   ;;  %v3353_v1 = vld [vmem:[%s637_s24 + $0x8] sm:$0xff]   ;;  %v3354_v2 = vld [vmem:[%s637_s24 + $0x10] sm:$0xff]  }
  0x25   : > { %v3323_v3 = vunpack.c.l.bf16 %v3322_v0  ;;  %v3324_v4 = vunpack.c.h.bf16 %v3322_v0  ;;  %v3327_v5 = vunpack.c.l.bf16 %v3353_v1  ;;  %v3328_v6 = vunpack.c.h.bf16 %v3353_v1  ;;  %v3355_v7 = vld [vmem:[%s637_s24 + $0x18] sm:$0xff]  }
  0x26   : > { %v3331_v8 = vunpack.c.l.bf16 %v3354_v2  ;;  %v3332_v9 = vunpack.c.h.bf16 %v3354_v2  ;;  %v3335_v10 = vunpack.c.l.bf16 %v3355_v7  ;;  %v3336_v11 = vunpack.c.h.bf16 %v3355_v7 }
  0x27   : > { %714 = vst.msk [vmem:[#allocation2] sm:$0xff] %vm713_vm0, %v3323_v3 }
  0x28   : > { %715 = vst.msk [vmem:[#allocation2 + $0x8] sm:$0xff] %vm713_vm0, %v3324_v4 }
  0x29   : > { %716 = vst.msk [vmem:[#allocation2 + $0x10] sm:$0xff] %vm713_vm0, %v3327_v5 }
  0x2a   : > { %717 = vst.msk [vmem:[#allocation2 + $0x18] sm:$0xff] %vm713_vm0, %v3328_v6 }
  0x2b   : > { %718 = vst.msk [vmem:[#allocation2 + $0x20] sm:$0xff] %vm713_vm0, %v3331_v8 }
  0x2c   : > { %719 = vst.msk [vmem:[#allocation2 + $0x28] sm:$0xff] %vm713_vm0, %v3332_v9 }
  0x2d   : > { %720 = vst.msk [vmem:[#allocation2 + $0x30] sm:$0xff] %vm713_vm0, %v3335_v10 }
  0x2e   : > { %721 = vst.msk [vmem:[#allocation2 + $0x38] sm:$0xff] %vm713_vm0, %v3336_v11 }
  0x2f PF: > { %vm732_vm1 = vcmask 261120   ;;  %v722_v14 = vld [vmem:[#allocation2] sm:$0xff]  ;;  %v723_v20 = vld [vmem:[#allocation2 + $0x8] sm:$0xff]  ;;  %v3724_v26 = vmov 32.0   ;;  %s5099_s9 = scalar_lea.vmem %s5058_s1, %s3848_s20  ;;  %s5100_s24 = sld [smem:[#allocation10_spill]] }
  0x30   : > { %v724_v13 = vld [vmem:[#allocation2 + $0x10] sm:$0xff]  ;;  %v733_v17 = vsel %vm732_vm1, %v722_v14, 0.0  ;;  %v736_v23 = vsel %vm732_vm1, %v723_v20, 0.0  ;;  %3482 = vrcp.f32 %v3724_v26  ;;  %v3308_v6 = vld [vmem:[%s3865_s29 + $0x8] sm:$0xff]  ;;  %v3307_v10 = vld [vmem:[%s3865_s29] sm:$0xff]  ;;  %s5102_s28 = scalar_lea.vmem %s5061_s4, %s3848_s20  ;;  %s3725_s15 = smov 96  }
  0x31   : > { %v739_v16 = vsel %vm732_vm1, %v724_v13, 0.0  ;;  %734 = vadd.xlane.f32.xlu0 %v733_v17  ;;  %v725_v19 = vld [vmem:[#allocation2 + $0x18] sm:$0xff]  ;;  %980 = vmatpush.bf16.msra.mxu0 %v3308_v6  ;;  %s3726_s17 = smov 88   ;;  %s3727_s16 = smov 120  }
  0x32   : > { %v726_v12 = vld [vmem:[#allocation2 + $0x20] sm:$0xff]  ;;  %740 = vadd.xlane.f32.xlu1 %v739_v16  ;;  %v742_v22 = vsel %vm732_vm1, %v725_v19, 0.0  ;;  %s3728_s14 = smov 64   ;;  %s3729_s23 = smov 80  }
  0x33   : > { %v745_v15 = vsel %vm732_vm1, %v726_v12, 0.0  ;;  %v727_v18 = vld [vmem:[#allocation2 + $0x28] sm:$0xff]  ;;  %s3730_s3 = smov 72   ;;  %s3731_s5 = smov 112  }
  0x34   : > { %746 = vadd.xlane.f32.xlu2 %v745_v15  ;;  %v748_v21 = vsel %vm732_vm1, %v727_v18, 0.0  ;;  %v728_v24 = vld [vmem:[#allocation2 + $0x30] sm:$0xff]  ;;  %s3733_s29 = smov 56   ;;  %s3734_s21 = smov 48  }
  0x35   : > { %v751_v25 = vsel %vm732_vm1, %v728_v24, 0.0  ;;  %v729_v48 = vld [vmem:[#allocation2 + $0x38] sm:$0xff]  ;;  %981 = vmatpush.bf16.msra.mxu0 %v3307_v10  ;;  %s5101_s25 = scalar_lea.vmem %s5100_s24, %s3848_s20  ;;  %s3735_s24 = smov 40  }
  0x36   : > { %v3483_v27 = vpop.eup %3482  ;;  %v754_v53 = vsel %vm732_vm1, %v729_v48, 0.0  ;;  %s3737_s26 = smov 16   ;;  %s3738_s18 = smov 24  }
  0x37   : > { %v758_v28 = vmul.f32 32.0, %v3483_v27  ;;  %vm762_vm2 = vweird.f32 %v3483_v27 }
  0x39   : > { %737 = vadd.xlane.f32.xlu0 %v736_v23  ;;  %v759_v29 = vsub.f32 1.0, %v758_v28 }
  0x3a   : > { %743 = vadd.xlane.f32.xlu1 %v742_v22 }
  0x3b   : > { %v760_v30 = vmul.f32 %v3483_v27, %v759_v29 }
  0x3c   : > { %749 = vadd.xlane.f32.xlu2 %v748_v21 }
  0x3d   : > { %v761_v31 = vadd.f32 %v3483_v27, %v760_v30 }
  0x3f   : > { %v3933_v32 = vsel %vm762_vm2, %v3483_v27, %v761_v31 }
  0x44   : > { %752 = vadd.xlane.f32.xlu2 %v751_v25 }
  0xa4   : > { %v735_v35 = vpop.xlane.xlu0 %734 }
  0xa5   : > { %v741_v34 = vpop.xlane.xlu1 %740  ;;  %v764_v36 = vmul.f32 %v3933_v32, %v735_v35 }
  0xa6   : > { %v766_v45 = vmul.f32 %v3933_v32, %v741_v34 }
  0xa7   : > { %v747_v33 = vpop.xlane.xlu2 %746  ;;  %v3936_v37 = vsub.f32 %v722_v14, %v764_v36 }
  0xa8   : > { %v768_v44 = vmul.f32 %v3933_v32, %v747_v33  ;;  %v3953_v52 = vsub.f32 %v724_v13, %v766_v45 }
  0xa9   : > { %v780_v38 = vmul.f32 %v3936_v37, %v3936_v37 }
  0xaa   : > { %v3951_v51 = vsub.f32 %v726_v12, %v768_v44  ;;  %v782_v61 = vmul.f32 %v3953_v52, %v3953_v52 }
  0xab   : > { %v788_v41 = vsel %vm732_vm1, %v780_v38, 0.0 }
  0xac   : > { %789 = vadd.xlane.f32.xlu0 %v788_v41  ;;  %v738_v43 = vpop.xlane.xlu0 %737  ;;  %v784_v60 = vmul.f32 %v3951_v51, %v3951_v51  ;;  %v794_v2 = vsel %vm732_vm1, %v782_v61, 0.0 }
  0xad   : > { %v744_v40 = vpop.xlane.xlu1 %743  ;;  %v765_v46 = vmul.f32 %v3933_v32, %v738_v43 }
  0xae   : > { %v767_v42 = vmul.f32 %v3933_v32, %v744_v40  ;;  %v800_v1 = vsel %vm732_vm1, %v784_v60, 0.0 }
  0xaf   : > { %v750_v39 = vpop.xlane.xlu2 %749  ;;  %v3947_v49 = vsub.f32 %v723_v20, %v765_v46 }
  0xb0   : > { %v3945_v47 = vsub.f32 %v725_v19, %v767_v42  ;;  %v769_v59 = vmul.f32 %v3933_v32, %v750_v39 }
  0xb1   : > { %v781_v54 = vmul.f32 %v3947_v49, %v3947_v49 }
  0xb2   : > { %v783_v50 = vmul.f32 %v3945_v47, %v3945_v47  ;;  %v3970_v0 = vsub.f32 %v727_v18, %v769_v59 }
  0xb3   : > { %v791_v57 = vsel %vm732_vm1, %v781_v54, 0.0 }
  0xb4   : > { %v797_v55 = vsel %vm732_vm1, %v783_v50, 0.0  ;;  %755 = vadd.xlane.f32.xlu0 %v754_v53  ;;  %792 = vadd.xlane.f32.xlu1 %v791_v57  ;;  %v785_v4 = vmul.f32 %v3970_v0, %v3970_v0  ;;  %v4012_v57 = vld [vmem:[%s5099_s9] ss:$0 sm:$0xff]  ;;  %s3732_s9 = smov 104  }
  0xb5   : > { %798 = vadd.xlane.f32.xlu2 %v797_v55 }
  0xb6   : > { %v803_v5 = vsel %vm732_vm1, %v785_v4, 0.0 }
  0xb7   : > { %v753_v56 = vpop.xlane.xlu2 %752 }
  0xb8   : > { %v770_v58 = vmul.f32 %v3933_v32, %v753_v56 }
  0xba   : > { %v3966_v62 = vsub.f32 %v728_v24, %v770_v58 }
  0xbc   : > { %v786_v63 = vmul.f32 %v3966_v62, %v3966_v62  ;;  %801 = vadd.xlane.f32.xlu0 %v800_v1  ;;  %795 = vadd.xlane.f32.xlu1 %v794_v2 }
  0xbe   : > { %v806_v3 = vsel %vm732_vm1, %v786_v63, 0.0 }
  0xbf   : > { %807 = vadd.xlane.f32.xlu2 %v806_v3 }
  0xc4   : > { %804 = vadd.xlane.f32.xlu1 %v803_v5 }
 0x11f   : > { %v790_v7 = vpop.xlane.xlu0 %789 }
 0x120   : > { %v812_v8 = vmul.f32 %v790_v7, %v3933_v32 }
 0x122   : > { %v820_v9 = vadd.f32 1e-05, %v812_v8 }
 0x124   : > { %3484 = vrsqrt.f32 %v820_v9  ;;  %vm834_vm4 = vweird.f32 %v820_v9 }
 0x127   : > { %v793_v13 = vpop.xlane.xlu1 %792  ;;  %v756_v14 = vpop.xlane.xlu0 %755 }
 0x128   : > { %v799_v11 = vpop.xlane.xlu2 %798  ;;  %v813_v15 = vmul.f32 %v793_v13, %v3933_v32  ;;  %v771_v16 = vmul.f32 %v3933_v32, %v756_v14 }
 0x129   : > { %v815_v12 = vmul.f32 %v799_v11, %v3933_v32 }
 0x12a   : > { %v3485_v18 = vpop.eup %3484  ;;  %v821_v19 = vadd.f32 1e-05, %v813_v15  ;;  %v3986_v20 = vsub.f32 %v729_v48, %v771_v16 }
 0x12b   : > { %v3984_v17 = vadd.f32 1e-05, %v815_v12  ;;  %v829_v21 = vmul.f32 %v3485_v18, %v820_v9  ;;  %vm835_vm3 = vweird.f32 %v3485_v18 }
 0x12c   : > { %v787_v22 = vmul.f32 %v3986_v20, %v3986_v20  ;;  %vm3998_vm5 = vmor %vm834_vm4, %vm835_vm3  ;;  %vm844_vm6 = vweird.f32 %v821_v19 }
 0x12d   : > { %3486 = vrsqrt.f32 %v3984_v17  ;;  %v830_v23 = vmul.f32 %v3485_v18, %v829_v21  ;;  %vm864_vm11 = vweird.f32 %v3984_v17 }
 0x12e   : > { %3488 = vrsqrt.f32 %v821_v19  ;;  %v809_v24 = vsel %vm732_vm1, %v787_v22, 0.0 }
 0x12f   : > { %v831_v25 = vmul.f32 0.5, %v830_v23  ;;  %v796_v26 = vpop.xlane.xlu1 %795  ;;  %810 = vadd.xlane.f32.xlu0 %v809_v24  ;;  %v802_v28 = vpop.xlane.xlu0 %801 }
 0x130   : > { %v814_v27 = vmul.f32 %v796_v26, %v3933_v32  ;;  %v816_v35 = vmul.f32 %v802_v28, %v3933_v32 }
 0x131   : > { %v832_v30 = vsub.f32 1.5, %v831_v25 }
 0x132   : > { %v822_v33 = vadd.f32 1e-05, %v814_v27  ;;  %v824_v42 = vadd.f32 1e-05, %v816_v35  ;;  %v808_v40 = vpop.xlane.xlu2 %807 }
 0x133   : > { %v3993_v29 = vpop.eup %3486  ;;  %v833_v36 = vmul.f32 %v3485_v18, %v832_v30 }
 0x134   : > { %v3489_v31 = vpop.eup %3488  ;;  %v859_v38 = vmul.f32 %v3993_v29, %v3984_v17  ;;  %3490 = vrsqrt.f32 %v822_v33  ;;  %vm854_vm9 = vweird.f32 %v822_v33  ;;  %vm865_vm12 = vweird.f32 %v3993_v29 }
 0x135   : > { %v839_v34 = vmul.f32 %v3489_v31, %v821_v19  ;;  %vm845_vm7 = vweird.f32 %v3489_v31  ;;  %v837_v44 = vsel %vm3998_vm5, %v3485_v18, %v833_v36  ;;  %3492 = vrsqrt.f32 %v824_v42  ;;  %vm866_vm14 = vmor %vm864_vm11, %vm865_vm12 }
 0x136   : > { %v860_v45 = vmul.f32 %v3993_v29, %v859_v38  ;;  %vm846_vm8 = vmor %vm844_vm6, %vm845_vm7  ;;  %v908_v56 = vmul.f32 %v837_v44, %v3936_v37  ;;  %v4021_v37 = vld [vmem:[%s5101_s25] ss:$0 sm:$0xff]  ;;  %vm874_vm2 = vweird.f32 %v824_v42  ;;  %vm1019_vm12 = vcmask 64512   ;;  %s3736_s25 = smov 8  }
 0x137   : > { %v840_v39 = vmul.f32 %v3489_v31, %v839_v34  ;;  %v805_v43 = vpop.xlane.xlu1 %804 }
 0x138   : > { %v817_v46 = vmul.f32 %v805_v43, %v3933_v32  ;;  %v861_v58 = vmul.f32 0.5, %v860_v45  ;;  %v919_v1 = vmul.f32 %v4012_v57, %v908_v56 }
 0x139   : > { %v841_v41 = vmul.f32 0.5, %v840_v39 }
 0x13a   : > { %v3491_v50 = vpop.eup %3490  ;;  %v825_v53 = vadd.f32 1e-05, %v817_v46  ;;  %v862_v2 = vsub.f32 1.5, %v861_v58  ;;  %v930_v8 = vadd.f32 %v4021_v37, %v919_v1 }
 0x13b   : > { %v842_v48 = vsub.f32 1.5, %v841_v41  ;;  %v849_v55 = vmul.f32 %v3491_v50, %v822_v33  ;;  %vm855_vm10 = vweird.f32 %v3491_v50  ;;  %v3493_v4 = vpop.eup %3492  ;;  %v818_v41 = vmul.f32 %v808_v40, %v3933_v32 }
 0x13c   : > { %3494 = vrsqrt.f32 %v825_v53  ;;  %vm856_vm13 = vmor %vm854_vm9, %vm855_vm10  ;;  %v863_v9 = vmul.f32 %v3993_v29, %v862_v2  ;;  %v869_v10 = vmul.f32 %v3493_v4, %v824_v42  ;;  %vm884_vm15 = vweird.f32 %v825_v53 }
 0x13d   : > { %v843_v54 = vmul.f32 %v3489_v31, %v842_v48  ;;  %v850_v60 = vmul.f32 %v3491_v50, %v849_v55  ;;  %vm875_vm3 = vweird.f32 %v3493_v4  ;;  %v826_v42 = vadd.f32 1e-05, %v818_v41 }
 0x13e   : > { %v867_v15 = vsel %vm866_vm14, %v3993_v29, %v863_v9  ;;  %v870_v16 = vmul.f32 %v3493_v4, %v869_v10  ;;  %vm876_vm5 = vmor %vm874_vm2, %vm875_vm3  ;;  %v3476_v9 = vld [vmem:[%s5102_s28] ss:$0 sm:$0xff]  ;;  %vm1997_vm14 = vcmask 130048  }
 0x13f   : > { %v847_v59 = vsel %vm846_vm8, %v3489_v31, %v843_v54  ;;  %v851_v63 = vmul.f32 0.5, %v850_v60  ;;  %v911_v19 = vmul.f32 %v867_v15, %v3945_v47  ;;  %3496 = vrsqrt.f32 %v826_v42 }
 0x140   : > { %v909_v61 = vmul.f32 %v847_v59, %v3947_v49  ;;  %v871_v21 = vmul.f32 0.5, %v870_v16  ;;  %vm894_vm6 = vweird.f32 %v826_v42 }
 0x141   : > { %v852_v5 = vsub.f32 1.5, %v851_v63  ;;  %v922_v24 = vmul.f32 %v4012_v57, %v911_v19 }
 0x142   : > { %v920_v3 = vmul.f32 %v4012_v57, %v909_v61  ;;  %v3495_v6 = vpop.eup %3494  ;;  %v872_v25 = vsub.f32 1.5, %v871_v21 }
 0x143   : > { %v853_v7 = vmul.f32 %v3491_v50, %v852_v5  ;;  %v879_v11 = vmul.f32 %v3495_v6, %v825_v53  ;;  %vm885_vm0 = vweird.f32 %v3495_v6 }
 0x144   : > { %v931_v49 = vadd.f32 %v4021_v37, %v920_v3  ;;  %vm886_vm4 = vmor %vm884_vm15, %vm885_vm0  ;;  %v873_v28 = vmul.f32 %v3493_v4, %v872_v25  ;;  %vm2006_vm15 = vcmask 195584  }
 0x145   : > { %v857_v13 = vsel %vm856_vm13, %v3491_v50, %v853_v7  ;;  %v880_v14 = vmul.f32 %v3495_v6, %v879_v11  ;;  %v3497_v43 = vpop.eup %3496  ;;  %vm1081_vm13 = vcmask 523264  }
 0x146   : > { %v938_v12 = vpack.c.bf16 %v931_v49, %v930_v8  ;;  %v910_v17 = vmul.f32 %v857_v13, %v3953_v52  ;;  %v933_v52 = vadd.f32 %v4021_v37, %v922_v24  ;;  %v877_v30 = vsel %vm876_vm5, %v3493_v4, %v873_v28 }
 0x147   : > { %v881_v18 = vmul.f32 0.5, %v880_v14  ;;  %v912_v33 = vmul.f32 %v877_v30, %v3951_v51  ;;  %vm895_vm7 = vweird.f32 %v3497_v43 }
 0x148   : > { %3197 = vmatmul.msk.bf16.vlgmr.msra.gmra.mxu0 %vm732_vm1, %v938_v12  ;;  %v921_v22 = vmul.f32 %v4012_v57, %v910_v17  ;;  %vm896_vm8 = vmor %vm894_vm6, %vm895_vm7 }
 0x149   : > { %v882_v23 = vsub.f32 1.5, %v881_v18  ;;  %v923_v35 = vmul.f32 %v4012_v57, %v912_v33 }
 0x14a   : > { %v932_v26 = vadd.f32 %v4021_v37, %v921_v22 }
 0x14b   : > { %v883_v27 = vmul.f32 %v3495_v6, %v882_v23  ;;  %v934_v38 = vadd.f32 %v4021_v37, %v923_v35 }
 0x14c   : > { %v939_v47 = vpack.c.bf16 %v933_v52, %v932_v26 }
 0x14d   : > { %v887_v29 = vsel %vm886_vm4, %v3495_v6, %v883_v27 }
 0x14e   : > { %v913_v31 = vmul.f32 %v887_v29, %v3970_v0  ;;  %v889_v0 = vmul.f32 %v3497_v43, %v826_v42 }
 0x150   : > { %v924_v34 = vmul.f32 %v4012_v57, %v913_v31  ;;  %v890_v44 = vmul.f32 %v3497_v43, %v889_v0 }
 0x152   : > { %v935_v36 = vadd.f32 %v4021_v37, %v924_v34  ;;  %v891_v48 = vmul.f32 0.5, %v890_v44 }
 0x154   : > { %v940_v39 = vpack.c.bf16 %v935_v36, %v934_v38  ;;  %v892_v50 = vsub.f32 1.5, %v891_v48 }
 0x156   : > { %v893_v54 = vmul.f32 %v3497_v43, %v892_v50 }
 0x158   : > { %3198 = vmatmul.msk.bf16.gmra.mxu0 %vm732_vm1, %v939_v47  ;;  %v897_v58 = vsel %vm896_vm8, %v3497_v43, %v893_v54 }
 0x159   : > { %v914_v61 = vmul.f32 %v897_v58, %v3966_v62 }
 0x15b   : > { %v925_v3 = vmul.f32 %v4012_v57, %v914_v61 }
 0x15d   : > { %v936_v5 = vadd.f32 %v4021_v37, %v925_v3 }
 0x168   : > { %3199 = vmatmul.msk.bf16.gmra.mxu0 %vm732_vm1, %v940_v39 }
 0x1a2   : > { %v811_v51 = vpop.xlane.xlu0 %810 }
 0x1a3   : > { %v819_v45 = vmul.f32 %v811_v51, %v3933_v32 }
 0x1a5   : > { %v827_v46 = vadd.f32 1e-05, %v819_v45 }
 0x1a7   : > { %3498 = vrsqrt.f32 %v827_v46  ;;  %vm904_vm10 = vweird.f32 %v827_v46 }
 0x1ad   : > { %v3499_v53 = vpop.eup %3498 }
 0x1ae   : > { %v899_v55 = vmul.f32 %v3499_v53, %v827_v46  ;;  %vm905_vm9 = vweird.f32 %v3499_v53 }
 0x1af   : > { %vm906_vm11 = vmor %vm904_vm10, %vm905_vm9 }
 0x1b0   : > { %v900_v56 = vmul.f32 %v3499_v53, %v899_v55 }
 0x1b2   : > { %v901_v59 = vmul.f32 0.5, %v900_v56 }
 0x1b4   : > { %v902_v60 = vsub.f32 1.5, %v901_v59 }
 0x1b6   : > { %v903_v63 = vmul.f32 %v3499_v53, %v902_v60 }
 0x1b8   : > { %v907_v1 = vsel %vm906_vm11, %v3499_v53, %v903_v63 }
 0x1b9   : > { %v915_v2 = vmul.f32 %v907_v1, %v3986_v20 }
 0x1bb   : > { %v926_v4 = vmul.f32 %v4012_v57, %v915_v2 }
 0x1bd   : > { %v937_v49 = vadd.f32 %v4021_v37, %v926_v4 }
 0x1bf   : > { %v941_v6 = vpack.c.bf16 %v937_v49, %v936_v5 }
 0x1c1   : > { %3200 = vmatmul.msk.bf16.gmra.mxu0 %vm732_vm1, %v941_v6 }
 0x1c5   : > { %v983_v7 = vpop.f32.mrf.mxu0 }
 0x1c6   : > { %v984_v17 = vadd.f32 %v3476_v9, %v983_v7 }
 0x1cd   : > { %v985_v8 = vpop.f32.mrf.mxu0 }
 0x1ce   : > { %v986_v16 = vadd.f32 %v3476_v9, %v985_v8 }
 0x1d0   : > { %v4069_v18 = vpack.c.bf16 %v986_v16, %v984_v17 }
 0x1d5   : > { %v988_v62 = vpop.f32.mrf.mxu0 }
 0x1d6   : > { %v989_v10 = vadd.f32 %v3476_v9, %v988_v62 }
 0x1dd   : > { %v990_v20 = vpop.f32.mrf.mxu0 }
 0x1de   : > { %v991_v11 = vadd.f32 %v3476_v9, %v990_v20 }
 0x1e0   : > { %v4059_v12 = vpack.c.bf16 %v991_v11, %v989_v10 }
 0x1e2   : > { %1013 = vrot.lane.b32.xlu0 %v4059_v12, %s3725_s15 }
 0x1e5   : > { %v993_v57 = vpop.f32.mrf.mxu0 }
 0x1e6   : > { %v994_v13 = vadd.f32 %v3476_v9, %v993_v57 }
 0x1ed   : > { %v995_v37 = vpop.f32.mrf.mxu0 }
 0x1ee   : > { %v996_v14 = vadd.f32 %v3476_v9, %v995_v37 }
 0x1f0   : > { %v4063_v15 = vpack.c.bf16 %v996_v14, %v994_v13 }
 0x1f2   : > { %1239 = vrot.lane.b32.xlu0 %v4063_v15, %s3726_s17  ;;  %1015 = vrot.lane.b32.xlu2 %v4063_v15, %s3725_s15 }
 0x1fa   : > { %1237 = vrot.lane.b32.xlu0 %v4059_v12, %s3726_s17  ;;  %1011 = vrot.lane.b32.xlu2 %v4069_v18, %s3725_s15 }
 0x202   : > { %1229 = vrot.lane.b32.xlu0 %v4059_v12, %s3727_s16  ;;  %1178 = vrot.lane.b32.xlu2 %v4063_v15, %s3728_s14 }
 0x20a   : > { %1461 = vrot.lane.b32.xlu0 %v4063_v15, %s3729_s23  ;;  %1176 = vrot.lane.b32.xlu2 %v4059_v12, %s3728_s14 }
 0x212   : > { %1683 = vrot.lane.b32.xlu0 %v4063_v15, %s3730_s3  ;;  %1235 = vrot.lane.b32.xlu2 %v4069_v18, %s3726_s17 }
 0x21a   : > { %1459 = vrot.lane.b32.xlu0 %v4059_v12, %s3729_s23  ;;  %1227 = vrot.lane.b32.xlu2 %v4069_v18, %s3727_s16 }
 0x222   : > { %1681 = vrot.lane.b32.xlu0 %v4059_v12, %s3730_s3 }
 0x22a   : > { %1457 = vrot.lane.b32.xlu0 %v4069_v18, %s3729_s23 }
 0x23e   : > { %v998_v19 = vpop.f32.mrf.mxu0 }
 0x23f   : > { %v999_v22 = vadd.f32 %v3476_v9, %v998_v19 }
 0x246   : > { %v1000_v21 = vpop.f32.mrf.mxu0 }
 0x247   : > { %v1001_v23 = vadd.f32 %v3476_v9, %v1000_v21 }
 0x249   : > { %v4088_v24 = vpack.c.bf16 %v1001_v23, %v999_v22 }
 0x24b   : > { %1685 = vrot.lane.b32.xlu0 %v4088_v24, %s3730_s3  ;;  %1180 = vrot.lane.b32.xlu2 %v4088_v24, %s3728_s14 }
 0x24c   : > { %1017 = vrot.lane.b32.xlu1 %v4088_v24, %s3725_s15  ;;  %v1016_v25 = vpop.permute.xlu2 %1015  ;;  %s5103_s15 = scalar_lea.vmem %s5063_s6, %s3848_s20 }
 0x24d   : > { %v1039_v42 = vsel %vm1019_vm12, %v1016_v25, 0 }
 0x253   : > { %1449 = vrot.lane.b32.xlu0 %v4069_v18, %s3731_s5  ;;  %1463 = vrot.lane.b32.xlu2 %v4088_v24, %s3729_s23 }
 0x254   : > { %1174 = vrot.lane.b32.xlu1 %v4069_v18, %s3728_s14  ;;  %v1012_v26 = vpop.permute.xlu2 %1011  ;;  %v1014_v28 = vpop.permute.xlu0 %1013 }
 0x255   : > { %v1036_v51 = vsel %vm1019_vm12, %v1014_v28, 0  ;;  %v1033_v50 = vsel %vm1019_vm12, %v1012_v26, 0 }
 0x25b   : > { %1451 = vrot.lane.b32.xlu0 %v4059_v12, %s3731_s5  ;;  %1233 = vrot.lane.b32.xlu2 %v4088_v24, %s3727_s16 }
 0x25c   : > { %1231 = vrot.lane.b32.xlu1 %v4063_v15, %s3727_s16  ;;  %v1179_v27 = vpop.permute.xlu2 %1178  ;;  %s5104_s16 = scalar_lea.vmem %s5064_s7, %s3848_s20 }
 0x263   : > { %1453 = vrot.lane.b32.xlu0 %v4063_v15, %s3731_s5  ;;  %1671 = vrot.lane.b32.xlu2 %v4069_v18, %s3732_s9 }
 0x264   : > { %1241 = vrot.lane.b32.xlu1 %v4088_v24, %s3726_s17  ;;  %v1177_v52 = vpop.permute.xlu2 %1176  ;;  %v1240_v29 = vpop.permute.xlu0 %1239 }
 0x265   : > { %v1262_v56 = vsel %vm1019_vm12, %v1240_v29, 0 }
 0x26b   : > { %1673 = vrot.lane.b32.xlu2 %v4059_v12, %s3732_s9 }
 0x26c   : > { %v1236_v47 = vpop.permute.xlu2 %1235  ;;  %v1238_v31 = vpop.permute.xlu0 %1237 }
 0x26d   : > { %v1259_v59 = vsel %vm1019_vm12, %v1238_v31, 0  ;;  %v1256_v61 = vsel %vm1019_vm12, %v1236_v47, 0 }
 0x274   : > { %v1228_v30 = vpop.permute.xlu2 %1227  ;;  %v1230_v34 = vpop.permute.xlu0 %1229 }
 0x27c   : > { %v1462_v35 = vpop.permute.xlu0 %1461 }
 0x27d   : > { %v1484_v45 = vsel %vm1019_vm12, %v1462_v35, 0 }
 0x284   : > { %v1684_v38 = vpop.permute.xlu0 %1683 }
 0x285   : > { %v1706_v1 = vsel %vm1019_vm12, %v1684_v38, 0 }
 0x28c   : > { %v1460_v0 = vpop.permute.xlu0 %1459 }
 0x28d   : > { %v1481_v54 = vsel %vm1019_vm12, %v1460_v0, 0 }
 0x294   : > { %v1682_v46 = vpop.permute.xlu0 %1681 }
 0x295   : > { %v1703_v2 = vsel %vm1019_vm12, %v1682_v46, 0 }
 0x29c   : > { %v1458_v55 = vpop.permute.xlu0 %1457 }
 0x29d   : > { %v1478_v58 = vsel %vm1019_vm12, %v1458_v55, 0 }
 0x2a5   : > { %v1181_v33 = vpop.permute.xlu2 %1180 }
 0x2a6   : > { %1202 = vmatpush.bf16.msra.mxu2 %v1181_v33 }
 0x2aa   : > { %1203 = vmatpush.bf16.msra.mxu2 %v1179_v27 }
 0x2ad   : > { %v1464_v40 = vpop.permute.xlu2 %1463 }
 0x2ae   : > { %1204 = vmatpush.bf16.msra.mxu2 %v1177_v52  ;;  %v1487_v43 = vsel %vm1019_vm12, %v1464_v40, 0 }
 0x2b5   : > { %v1234_v3 = vpop.permute.xlu2 %1233 }
 0x2bd   : > { %v1686_v60 = vpop.permute.xlu0 %1685  ;;  %v1672_v47 = vpop.permute.xlu2 %1671 }
 0x2be   : > { %v1018_v36 = vpop.permute.xlu1 %1017  ;;  %v1709_v63 = vsel %vm1019_vm12, %v1686_v60, 0 }
 0x2bf   : > { %v1042_v39 = vsel %vm1019_vm12, %v1018_v36, 0 }
 0x2c0   : > { %1048 = vmatpush.bf16.xpose.msra.mxu1 %v1042_v39 }
 0x2c5   : > { %v4157_v52 = vpop.permute.xlu0 %1449 }
 0x2c6   : > { %v1175_v41 = vpop.permute.xlu1 %1174 }
 0x2c7   : > { %1205 = vmatpush.bf16.msra.mxu2 %v1175_v41 }
 0x2c8   : > { %1049 = vmatpush.bf16.xpose.msra.mxu1 %v1039_v42 }
 0x2cb   : > { %1493 = vmatpush.bf16.xpose.msrb.mxu2 %v1487_v43 }
 0x2cd   : > { %v4159_v28 = vpop.permute.xlu0 %1451 }
 0x2ce   : > { %v1232_v44 = vpop.permute.xlu1 %1231 }
 0x2d0   : > { %1050 = vmatpush.bf16.xpose.msra.mxu1 %v1036_v51 }
 0x2d3   : > { %1494 = vmatpush.bf16.xpose.msrb.mxu2 %v1484_v45 }
 0x2d5   : > { %v4161_v29 = vpop.permute.xlu0 %1453 }
 0x2d6   : > { %v1242_v48 = vpop.permute.xlu1 %1241 }
 0x2d7   : > { %v1265_v53 = vsel %vm1019_vm12, %v1242_v48, 0 }
 0x2d8   : > { %1051 = vmatpush.bf16.xpose.msra.mxu1 %v1033_v50  ;;  %1271 = vmatpush.bf16.xpose.msra.mxu3 %v1265_v53 }
 0x2db   : > { %1495 = vmatpush.bf16.xpose.msrb.mxu2 %v1481_v54 }
 0x2df   : > { %3201 = vmatmul.msk.bf16.vlgmr.msra.gmra.mxu1 %vm1019_vm12, %v4069_v18 }
 0x2e0   : > { %1272 = vmatpush.bf16.xpose.msra.mxu3 %v1262_v56 }
 0x2e3   : > { %1496 = vmatpush.bf16.xpose.msrb.mxu2 %v1478_v58 }
 0x2e8   : > { %1273 = vmatpush.bf16.xpose.msra.mxu3 %v1259_v59 }
 0x2ef   : > { %3202 = vmatmul.msk.bf16.gmra.mxu1 %vm1019_vm12, %v4059_v12 }
 0x2f0   : > { %1274 = vmatpush.bf16.xpose.msra.mxu3 %v1256_v61 }
 0x2f7   : > { %3209 = vmatmul.msk.bf16.vlgmr.msra.gmra.mxu3 %vm1019_vm12, %v1228_v30 }
 0x2f8   : > { %1715 = vmatpush.bf16.xpose.msrb.mxu3 %v1709_v63 }
 0x2ff   : > { %3203 = vmatmul.msk.bf16.gmra.mxu1 %vm1019_vm12, %v4063_v15 }
 0x300   : > { %1716 = vmatpush.bf16.xpose.msrb.mxu3 %v1706_v1 }
 0x307   : > { %3210 = vmatmul.msk.bf16.gmra.mxu3 %vm1019_vm12, %v1230_v34  ;;  %v1674_v34 = vpop.permute.xlu2 %1673 }
 0x308   : > { %1717 = vmatpush.bf16.xpose.msrb.mxu3 %v1703_v2 }
 0x30f   : > { %3204 = vmatmul.msk.bf16.gmra.mxu1 %vm1019_vm12, %v4088_v24 }
 0x317   : > { %3211 = vmatmul.msk.bf16.gmra.mxu3 %vm1019_vm12, %v1232_v44 }
 0x327   : > { %3212 = vmatmul.msk.bf16.gmra.mxu3 %vm1019_vm12, %v1234_v3 }
 0x35c   : > { %v1053_v4 = vpop.f32.mrf.mxu1 }
 0x35d   : > { %v1073_v5 = vmul.f32 0.35355338, %v1053_v4 }
 0x35f   : > { %v1082_v49 = vsel %vm1081_vm13, %v1073_v5, -inf }
 0x360   : > { %1083 = vmax.xlane.f32.xlu1 %v1082_v49 }
 0x364   : > { %v1055_v6 = vpop.f32.mrf.mxu1 }
 0x365   : > { %v1074_v7 = vmul.f32 0.35355338, %v1055_v6 }
 0x367   : > { %v1085_v8 = vsel %vm1081_vm13, %v1074_v7, -inf }
 0x368   : > { %1086 = vmax.xlane.f32.xlu0 %v1085_v8 }
 0x36c   : > { %v1058_v62 = vpop.f32.mrf.mxu1 }
 0x36d   : > { %v1075_v9 = vmul.f32 0.35355338, %v1058_v62 }
 0x36f   : > { %v1088_v20 = vsel %vm1081_vm13, %v1075_v9, -inf }
 0x370   : > { %1089 = vmax.xlane.f32.xlu2 %v1088_v20 }
 0x374   : > { %v1060_v10 = vpop.f32.mrf.mxu1 }
 0x375   : > { %v1076_v26 = vmul.f32 0.35355338, %v1060_v10 }
 0x377   : > { %v1091_v27 = vsel %vm1081_vm13, %v1076_v26, -inf }
 0x379   : > { %1679 = vrot.lane.b32.xlu1 %v4069_v18, %s3730_s3  ;;  %s5105_s3 = scalar_lea.vmem %s5065_s8, %s3848_s20  ;;  %s5106_s20 = sld [smem:[#allocation3_spill]] }
 0x37a   : > { %v1276_v58 = vpop.f32.mrf.mxu3 }
 0x37c   : > { %v1063_v11 = vpop.f32.mrf.mxu1 }
 0x37d   : > { %v1077_v57 = vmul.f32 0.35355338, %v1063_v11 }
 0x37f   : > { %v1094_v37 = vsel %vm1081_vm13, %v1077_v57, -inf  ;;  %p3297_p8 = scmp.ne.s32.totalorder %s5106_s20, 1 }
 0x380   : > { %1095 = vmax.xlane.f32.xlu0 %v1094_v37 }
 0x382   : > { %v1278_v59 = vpop.f32.mrf.mxu3 }
 0x384   : > { %v1065_v13 = vpop.f32.mrf.mxu1 }
 0x385   : > { %v4144_v14 = vmul.f32 0.35355338, %v1065_v13 }
 0x387   : > { %v1097_v16 = vsel %vm1081_vm13, %v4144_v14, -inf }
 0x388   : > { %1098 = vmax.xlane.f32.xlu2 %v1097_v16 }
 0x38a   : > { %v1281_v63 = vpop.f32.mrf.mxu3 }
 0x38b   : > { %v4195_v10 = vmul.f32 0.35355338, %v1281_v63 }
 0x38c   : > { %v1068_v17 = vpop.f32.mrf.mxu1 }
 0x38d   : > { %v4148_v19 = vmul.f32 0.35355338, %v1068_v17  ;;  %v1310_v37 = vsel %vm1081_vm13, %v4195_v10, -inf }
 0x38f   : > { %v1100_v21 = vsel %vm1081_vm13, %v4148_v19, -inf }
 0x390   : > { %1101 = vmax.xlane.f32.xlu2 %v1100_v21 }
 0x392   : > { %v1283_v49 = vpop.f32.mrf.mxu3 }
 0x394   : > { %v1070_v22 = vpop.f32.mrf.mxu1 }
 0x395   : > { %v4152_v23 = vmul.f32 0.35355338, %v1070_v22  ;;  %v4210_v22 = vmul.f32 0.35355338, %v1278_v59 }
 0x397   : > { %v1103_v25 = vsel %vm1081_vm13, %v4152_v23, -inf }
 0x398   : > { %1104 = vmax.xlane.f32.xlu2 %v1103_v25  ;;  %v1307_v25 = vsel %vm1081_vm13, %v4210_v22, -inf }
 0x39a   : > { %v1286_v62 = vpop.f32.mrf.mxu3 }
 0x3a2   : > { %v1288_v13 = vpop.f32.mrf.mxu3 }
 0x3a3   : > { %1092 = vmax.xlane.f32.xlu1 %v1091_v27 }
 0x3d3   : > { %v1084_v30 = vpop.xlane.xlu1 %1083 }
 0x3d4   : > { %v1106_v31 = vsub.f32 %v1073_v5, %v1084_v30 }
 0x3d6   : > { %v1114_v33 = vmul.f32 1.442695, %v1106_v31 }
 0x3d8   : > { %3500 = vpow2.f32 %v1114_v33 }
 0x3db   : > { %v1087_v35 = vpop.xlane.xlu0 %1086 }
 0x3dc   : > { %v1107_v36 = vsub.f32 %v1074_v7, %v1087_v35 }
 0x3de   : > { %v4163_v38 = vpop.eup %3500  ;;  %v1116_v39 = vmul.f32 1.442695, %v1107_v36 }
 0x3df   : > { %v1130_v40 = vsel %vm1081_vm13, %v4163_v38, 0.0 }
 0x3e0   : > { %3502 = vpow2.f32 %v1116_v39  ;;  %1131 = vadd.xlane.f32.xlu1 %v1130_v40  ;;  %v4227_v39 = vmul.f32 0.35355338, %v1276_v58 }
 0x3e3   : > { %v1090_v41 = vpop.xlane.xlu2 %1089 }
 0x3e4   : > { %v1108_v42 = vsub.f32 %v1075_v9, %v1090_v41 }
 0x3e6   : > { %v4167_v43 = vpop.eup %3502  ;;  %v1118_v0 = vmul.f32 1.442695, %v1108_v42  ;;  %v1304_v42 = vsel %vm1081_vm13, %v4227_v39, -inf }
 0x3e7   : > { %v1133_v44 = vsel %vm1081_vm13, %v4167_v43, 0.0 }
 0x3e8   : > { %3504 = vpow2.f32 %v1118_v0  ;;  %1134 = vadd.xlane.f32.xlu0 %v1133_v44 }
 0x3eb   : > { %v1680_v51 = vpop.permute.xlu1 %1679 }
 0x3ec   : > { %v1700_v45 = vsel %vm1019_vm12, %v1680_v51, 0 }
 0x3ed   : > { %1718 = vmatpush.bf16.xpose.msrb.mxu3 %v1700_v45 }
 0x3ee   : > { %v4172_v46 = vpop.eup %3504 }
 0x3ef   : > { %v1136_v48 = vsel %vm1081_vm13, %v4172_v46, 0.0 }
 0x3f0   : > { %1137 = vadd.xlane.f32.xlu0 %v1136_v48  ;;  %v4238_v48 = vmul.f32 0.35355338, %v1283_v49 }
 0x3f3   : > { %v1096_v50 = vpop.xlane.xlu0 %1095 }
 0x3f4   : > { %v1110_v53 = vsub.f32 %v1077_v57, %v1096_v50  ;;  %3225 = vmatmul.msk.bf16.vlgmr.msrb.gmra.mxu3 %vm1019_vm12, %v1672_v47  ;;  %v1313_v50 = vsel %vm1081_vm13, %v4238_v48, -inf }
 0x3f6   : > { %v1122_v54 = vmul.f32 1.442695, %v1110_v53 }
 0x3f8   : > { %3506 = vpow2.f32 %v1122_v54 }
 0x3fb   : > { %v1099_v1 = vpop.xlane.xlu2 %1098 }
 0x3fc   : > { %v1111_v3 = vsub.f32 %v4144_v14, %v1099_v1  ;;  %v4200_v14 = vmul.f32 0.35355338, %v1288_v13 }
 0x3fe   : > { %v4177_v55 = vpop.eup %3506  ;;  %v1124_v4 = vmul.f32 1.442695, %v1111_v3  ;;  %v1319_v16 = vsel %vm1081_vm13, %v4200_v14, -inf }
 0x3ff   : > { %v1142_v56 = vsel %vm1081_vm13, %v4177_v55, 0.0 }
 0x400   : > { %1143 = vadd.xlane.f32.xlu1 %v1142_v56 }
 0x403   : > { %v1102_v7 = vpop.xlane.xlu2 %1101 }
 0x404   : > { %3226 = vmatmul.msk.bf16.gmra.mxu3 %vm1019_vm12, %v1674_v34  ;;  %1677 = vrot.lane.b32.xlu0 %v4088_v24, %s3732_s9  ;;  %v1112_v33 = vsub.f32 %v4148_v19, %v1102_v7 }
 0x406   : > { %v1126_v36 = vmul.f32 1.442695, %v1112_v33 }
 0x40b   : > { %v1105_v20 = vpop.xlane.xlu2 %1104 }
 0x40c   : > { %v1113_v11 = vsub.f32 %v4152_v23, %v1105_v20  ;;  %v1291_v23 = vpop.f32.mrf.mxu3 }
 0x40d   : > { %v4242_v53 = vmul.f32 0.35355338, %v1291_v23 }
 0x40e   : > { %v1128_v57 = vmul.f32 1.442695, %v1113_v11 }
 0x414   : > { %v1293_v47 = vpop.f32.mrf.mxu3 }
 0x415   : > { %v4220_v30 = vmul.f32 0.35355338, %v1293_v47 }
 0x416   : > { %v1093_v60 = vpop.xlane.xlu1 %1092 }
 0x417   : > { %v1109_v61 = vsub.f32 %v1076_v26, %v1093_v60  ;;  %v4214_v26 = vmul.f32 0.35355338, %v1286_v62  ;;  %v1325_v34 = vsel %vm1081_vm13, %v4220_v30, -inf }
 0x419   : > { %v1120_v2 = vmul.f32 1.442695, %v1109_v61  ;;  %1455 = vrot.lane.b32.xlu1 %v4088_v24, %s3731_s5  ;;  %v1316_v27 = vsel %vm1081_vm13, %v4214_v26, -inf }
 0x41b   : > { %3508 = vpow2.f32 %v1120_v2 }
 0x41c   : > { %3510 = vpow2.f32 %v1124_v4 }
 0x41d   : > { %3512 = vpow2.f32 %v1128_v57 }
 0x421   : > { %v4187_v5 = vpop.eup %3508 }
 0x422   : > { %v1139_v6 = vsel %vm1081_vm13, %v4187_v5, 0.0  ;;  %v4191_v8 = vpop.eup %3510 }
 0x423   : > { %1140 = vadd.xlane.f32.xlu2 %v1139_v6  ;;  %v1145_v9 = vsel %vm1081_vm13, %v4191_v8, 0.0  ;;  %v4206_v17 = vpop.eup %3512 }
 0x424   : > { %v1151_v21 = vsel %vm1081_vm13, %v4206_v17, 0.0 }
 0x42e   : > { %1146 = vadd.xlane.f32.xlu0 %v1145_v9 }
 0x436   : > { %1311 = vmax.xlane.f32.xlu0 %v1310_v37 }
 0x43b   : > { %1675 = vrot.lane.b32.xlu2 %v4063_v15, %s3732_s9 }
 0x43e   : > { %1320 = vmax.xlane.f32.xlu0 %v1319_v16 }
 0x443   : > { %1152 = vadd.xlane.f32.xlu1 %v1151_v21 }
 0x44b   : > { %1308 = vmax.xlane.f32.xlu1 %v1307_v25 }
 0x452   : > { %1402 = vrot.lane.b32.xlu0 %v4088_v24, %s3733_s29 }
 0x453   : > { %1317 = vmax.xlane.f32.xlu1 %v1316_v27  ;;  %v1132_v31 = vpop.xlane.xlu1 %1131 }
 0x454   : > { %3514 = vrcp.f32 %v1132_v31 }
 0x45a   : > { %1396 = vrot.lane.b32.xlu0 %v4069_v18, %s3733_s29  ;;  %v3515_v40 = vpop.eup %3514 }
 0x45b   : > { %1326 = vmax.xlane.f32.xlu1 %v1325_v34  ;;  %v1135_v35 = vpop.xlane.xlu0 %1134  ;;  %v1162_v19 = vmul.f32 %v3515_v40, %v4163_v38 }
 0x45c   : > { %3516 = vrcp.f32 %v1135_v35 }
 0x45d   : > { %3518 = vpow2.f32 %v1126_v36 }
 0x462   : > { %v3517_v41 = vpop.eup %3516 }
 0x463   : > { %v1163_v0 = vmul.f32 %v3517_v41, %v4167_v43  ;;  %v4234_v51 = vpop.eup %3518  ;;  %v1322_v43 = vsel %vm1081_vm13, %v4242_v53, -inf  ;;  %v1138_v59 = vpop.xlane.xlu0 %1137 }
 0x464   : > { %1305 = vmax.xlane.f32.xlu2 %v1304_v42  ;;  %v1148_v45 = vsel %vm1081_vm13, %v4234_v51, 0.0  ;;  %3520 = vrcp.f32 %v1138_v59 }
 0x465   : > { %v1170_v44 = vpack.c.bf16 %v1163_v0, %v1162_v19 }
 0x467   : > { %3205 = vmatmul.msk.bf16.vlgmr.msra.gmra.mxu2 %vm1081_vm13, %v1170_v44 }
 0x46a   : > { %v3521_v63 = vpop.eup %3520 }
 0x46b   : > { %v1164_v3 = vmul.f32 %v3521_v63, %v4172_v46 }
 0x46c   : > { %1149 = vadd.xlane.f32.xlu2 %v1148_v45 }
 0x473   : > { %v1144_v7 = vpop.xlane.xlu1 %1143 }
 0x474   : > { %1314 = vmax.xlane.f32.xlu2 %v1313_v50 }
 0x476   : > { %v1678_v61 = vpop.permute.xlu0 %1677 }
 0x477   : > { %v4244_v38 = vpop.f32.mrf.mxu3 }
 0x47c   : > { %1323 = vmax.xlane.f32.xlu2 %v1322_v43 }
 0x47f   : > { %v1722_v54 = vpop.f32.mrf.mxu3 }
 0x480   : > { %v4248_v56 = vmul.f32 0.35355338, %v1722_v54 }
 0x482   : > { %v1751_v58 = vsel %vm1081_vm13, %v4248_v56, -inf }
 0x484   : > { %1752 = vmax.xlane.f32.xlu0 %v1751_v58  ;;  %v4296_v58 = vmul.f32 0.35355338, %v4244_v38 }
 0x487   : > { %v1725_v43 = vpop.f32.mrf.mxu3 }
 0x48b   : > { %v4257_v11 = vpop.permute.xlu1 %1455 }
 0x48f   : > { %v1727_v59 = vpop.f32.mrf.mxu3 }
 0x496   : > { %v1141_v60 = vpop.xlane.xlu2 %1140 }
 0x497   : > { %3522 = vrcp.f32 %v1141_v60  ;;  %v4302_v60 = vmul.f32 0.35355338, %v1727_v59 }
 0x499   : > { %v1757_v63 = vsel %vm1081_vm13, %v4302_v60, -inf }
 0x49d   : > { %v3523_v1 = vpop.eup %3522 }
 0x49e   : > { %v1676_v2 = vpop.permute.xlu2 %1675  ;;  %v1165_v4 = vmul.f32 %v3523_v1, %v4187_v5 }
 0x49f   : > { %3227 = vmatmul.msk.bf16.gmra.mxu3 %vm1019_vm12, %v1676_v2 }
 0x4a0   : > { %v1171_v49 = vpack.c.bf16 %v1165_v4, %v1164_v3 }
 0x4a1   : > { %v1147_v6 = vpop.xlane.xlu0 %1146 }
 0x4a2   : > { %3206 = vmatmul.msk.bf16.gmra.mxu2 %vm1081_vm13, %v1171_v49  ;;  %3524 = vrcp.f32 %v1147_v6 }
 0x4a3   : > { %3526 = vrcp.f32 %v1144_v7 }
 0x4a8   : > { %v3525_v62 = vpop.eup %3524 }
 0x4a9   : > { %v3527_v9 = vpop.eup %3526  ;;  %v1167_v20 = vmul.f32 %v3525_v62, %v4191_v8  ;;  %v1312_v5 = vpop.xlane.xlu0 %1311 }
 0x4aa   : > { %v1166_v57 = vmul.f32 %v3527_v9, %v4177_v55 }
 0x4ac   : > { %v1172_v46 = vpack.c.bf16 %v1167_v20, %v1166_v57 }
 0x4af   : > { %3228 = vmatmul.msk.bf16.gmra.mxu3 %vm1019_vm12, %v1678_v61  ;;  %v1330_v61 = vsub.f32 %v4195_v10, %v1312_v5 }
 0x4b1   : > { %v1321_v13 = vpop.xlane.xlu0 %1320  ;;  %v1340_v1 = vmul.f32 1.442695, %v1330_v61 }
 0x4b2   : > { %3207 = vmatmul.msk.bf16.gmra.mxu2 %vm1081_vm13, %v1172_v46  ;;  %v1333_v45 = vsub.f32 %v4200_v14, %v1321_v13 }
 0x4b4   : > { %v1346_v54 = vmul.f32 1.442695, %v1333_v45 }
 0x4b6   : > { %v1153_v37 = vpop.xlane.xlu1 %1152 }
 0x4be   : > { %v1309_v16 = vpop.xlane.xlu1 %1308 }
 0x4bf   : > { %v1329_v21 = vsub.f32 %v4210_v22, %v1309_v16 }
 0x4c1   : > { %v1338_v23 = vmul.f32 1.442695, %v1329_v21 }
 0x4c3   : > { %3528 = vpow2.f32 %v1338_v23 }
 0x4c4   : > { %v1403_v25 = vpop.permute.xlu0 %1402 }
 0x4c5   : > { %1424 = vmatpush.bf16.msrb.mxu0 %v1403_v25 }
 0x4c6   : > { %v1318_v2 = vpop.xlane.xlu1 %1317 }
 0x4c7   : > { %v1332_v38 = vsub.f32 %v4214_v26, %v1318_v2 }
 0x4c9   : > { %v4263_v8 = vpop.eup %3528 }
 0x4ca   : > { %v1355_v55 = vsel %vm1081_vm13, %v4263_v8, 0.0 }
 0x4cb   : > { %1356 = vadd.xlane.f32.xlu1 %v1355_v55 }
 0x4d7   : > { %v1306_v27 = vpop.xlane.xlu2 %1305 }
 0x4d8   : > { %v1328_v47 = vsub.f32 %v4227_v39, %v1306_v27 }
 0x4da   : > { %v1336_v31 = vmul.f32 1.442695, %v1328_v47 }
 0x4dc   : > { %3530 = vpow2.f32 %v1336_v31  ;;  %v1327_v31 = vpop.xlane.xlu1 %1326 }
 0x4dd   : > { %3532 = vrcp.f32 %v1153_v37 }
 0x4df   : > { %v1150_v33 = vpop.xlane.xlu2 %1149 }
 0x4e0   : > { %3534 = vrcp.f32 %v1150_v33 }
 0x4e2   : > { %v4268_v34 = vpop.eup %3530 }
 0x4e3   : > { %v1352_v22 = vsel %vm1081_vm13, %v4268_v34, 0.0  ;;  %v3533_v35 = vpop.eup %3532 }
 0x4e4   : > { %1353 = vadd.xlane.f32.xlu2 %v1352_v22  ;;  %1398 = vrot.lane.b32.xlu1 %v4059_v12, %s3733_s29  ;;  %v1169_v39 = vmul.f32 %v3533_v35, %v4206_v17  ;;  %v1335_v22 = vsub.f32 %v4220_v30, %v1327_v31 }
 0x4e6   : > { %v3535_v36 = vpop.eup %3534 }
 0x4e7   : > { %v1315_v40 = vpop.xlane.xlu2 %1314  ;;  %v1168_v41 = vmul.f32 %v3535_v36, %v4234_v51  ;;  %v4283_v51 = vmul.f32 0.35355338, %v1725_v43 }
 0x4e8   : > { %v1331_v42 = vsub.f32 %v4238_v48, %v1315_v40  ;;  %v1350_v40 = vmul.f32 1.442695, %v1335_v22 }
 0x4e9   : > { %v1173_v19 = vpack.c.bf16 %v1169_v39, %v1168_v41  ;;  %v1754_v17 = vsel %vm1081_vm13, %v4283_v51, -inf }
 0x4ea   : > { %v1342_v0 = vmul.f32 1.442695, %v1331_v42  ;;  %v4337_v16 = vpop.f32.mrf.mxu2  ;;  %v1397_v42 = vpop.permute.xlu0 %1396 }
 0x4eb   : > { %3208 = vmatmul.msk.bf16.gmra.mxu2 %vm1081_vm13, %v1173_v19 }
 0x4ec   : > { %3536 = vpow2.f32 %v1342_v0 }
 0x4ed   : > { %3538 = vpow2.f32 %v1346_v54 }
 0x4ee   : > { %3540 = vpow2.f32 %v1340_v1 }
 0x4ef   : > { %v1324_v3 = vpop.xlane.xlu2 %1323 }
 0x4f0   : > { %v1334_v10 = vsub.f32 %v4242_v53, %v1324_v3 }
 0x4f2   : > { %v4278_v44 = vpop.eup %3536  ;;  %v1348_v62 = vmul.f32 1.442695, %v1334_v10  ;;  %v4345_v55 = vpop.f32.mrf.mxu2 }
 0x4f3   : > { %v1361_v50 = vsel %vm1081_vm13, %v4278_v44, 0.0  ;;  %v4291_v14 = vpop.eup %3538 }
 0x4f4   : > { %1362 = vadd.xlane.f32.xlu0 %v1361_v50  ;;  %v1367_v48 = vsel %vm1081_vm13, %v4291_v14, 0.0  ;;  %v4310_v4 = vpop.eup %3540 }
 0x4f5   : > { %v1358_v7 = vsel %vm1081_vm13, %v4310_v4, 0.0 }
 0x4f7   : > { %v1753_v43 = vpop.xlane.xlu0 %1752 }
 0x4fb   : > { %3217 = vmatmul.msk.bf16.vlgmr.msrb.gmra.mxu2 %vm1019_vm12, %v4157_v52  ;;  %v1748_v52 = vsel %vm1081_vm13, %v4296_v58, -inf }
 0x4fc   : > { %1400 = vrot.lane.b32.xlu2 %v4063_v15, %s3733_s29  ;;  %1755 = vmax.xlane.f32.xlu0 %v1754_v17  ;;  %v1773_v17 = vsub.f32 %v4248_v56, %v1753_v43 }
 0x504   : > { %1368 = vadd.xlane.f32.xlu0 %v1367_v48 }
 0x50b   : > { %3218 = vmatmul.msk.bf16.gmra.mxu2 %vm1019_vm12, %v4159_v28  ;;  %v1344_v28 = vmul.f32 1.442695, %v1332_v38 }
 0x50d   : > { %3542 = vpow2.f32 %v1344_v28 }
 0x50e   : > { %1749 = vmax.xlane.f32.xlu1 %v1748_v52  ;;  %3544 = vpow2.f32 %v1348_v62 }
 0x516   : > { %1758 = vmax.xlane.f32.xlu1 %v1757_v63 }
 0x51b   : > { %3219 = vmatmul.msk.bf16.gmra.mxu2 %vm1019_vm12, %v4161_v29  ;;  %v4319_v29 = vpop.eup %3542 }
 0x51c   : > { %v1364_v53 = vsel %vm1081_vm13, %v4319_v29, 0.0  ;;  %v4329_v46 = vpop.eup %3544 }
 0x51d   : > { %v1370_v13 = vsel %vm1081_vm13, %v4329_v46, 0.0 }
 0x522   : > { %v1730_v49 = vpop.f32.mrf.mxu3 }
 0x523   : > { %v4313_v6 = vmul.f32 0.35355338, %v1730_v49 }
 0x525   : > { %1359 = vadd.xlane.f32.xlu2 %v1358_v7  ;;  %v1760_v26 = vsel %vm1081_vm13, %v4313_v6, -inf  ;;  %v4349_v27 = vpop.f32.mrf.mxu2 }
 0x526   : > { %1761 = vmax.xlane.f32.xlu0 %v1760_v26 }
 0x52a   : > { %v1732_v9 = vpop.f32.mrf.mxu3 }
 0x52b   : > { %v4321_v20 = vmul.f32 0.35355338, %v1732_v9  ;;  %3220 = vmatmul.msk.bf16.gmra.mxu2 %vm1019_vm12, %v4257_v11 }
 0x52d   : > { %1365 = vadd.xlane.f32.xlu2 %v1364_v53  ;;  %v1763_v57 = vsel %vm1081_vm13, %v4321_v20, -inf  ;;  %v4353_v47 = vpop.f32.mrf.mxu2 }
 0x52e   : > { %1764 = vmax.xlane.f32.xlu1 %v1763_v57 }
 0x532   : > { %v1735_v5 = vpop.f32.mrf.mxu3 }
 0x533   : > { %v4331_v37 = vmul.f32 0.35355338, %v1735_v5 }
 0x535   : > { %1371 = vadd.xlane.f32.xlu2 %v1370_v13  ;;  %v1766_v11 = vsel %vm1081_vm13, %v4331_v37, -inf  ;;  %v4358_v36 = vpop.f32.mrf.mxu2 }
 0x536   : > { %1767 = vmax.xlane.f32.xlu1 %v1766_v11 }
 0x53a   : > { %v1737_v21 = vpop.f32.mrf.mxu3  ;;  %1624 = vrot.lane.b32.xlu0 %v4088_v24, %s3734_s21 }
 0x53b   : > { %v4341_v23 = vmul.f32 0.35355338, %v1737_v21 }
 0x53d   : > { %v1769_v25 = vsel %vm1081_vm13, %v4341_v23, -inf }
 0x53e   : > { %1770 = vmax.xlane.f32.xlu2 %v1769_v25  ;;  %v1357_v35 = vpop.xlane.xlu1 %1356 }
 0x542   : > { %1844 = vrot.lane.b32.xlu0 %v4063_v15, %s3735_s24 }
 0x54f   : > { %1846 = vrot.lane.b32.xlu1 %v4088_v24, %s3735_s24 }
 0x556   : > { %1622 = vrot.lane.b32.xlu2 %v4063_v15, %s3734_s21  ;;  %v1399_v24 = vpop.permute.xlu1 %1398  ;;  %v4361_v15 = vpop.f32.mrf.mxu2 }
 0x557   : > { %v1354_v33 = vpop.xlane.xlu2 %1353 }
 0x558   : > { %3546 = vrcp.f32 %v1354_v33 }
 0x559   : > { %3548 = vrcp.f32 %v1357_v35 }
 0x55a   : > { %3550 = vpow2.f32 %v1350_v40 }
 0x55e   : > { %v3547_v39 = vpop.eup %3546 }
 0x55f   : > { %v1401_v41 = vpop.permute.xlu2 %1400  ;;  %v3549_v19 = vpop.eup %3548  ;;  %v1384_v0 = vmul.f32 %v3547_v39, %v4268_v34  ;;  %v1782_v34 = vmul.f32 1.442695, %v1773_v17 }
 0x560   : > { %1425 = vmatpush.bf16.msrb.mxu0 %v1401_v41  ;;  %v1385_v30 = vmul.f32 %v3549_v19, %v4263_v8  ;;  %v4364_v45 = vpop.eup %3550 }
 0x561   : > { %v1373_v54 = vsel %vm1081_vm13, %v4364_v45, 0.0  ;;  %3552 = vpow2.f32 %v1782_v34 }
 0x562   : > { %v1392_v50 = vpack.c.bf16 %v1385_v30, %v1384_v0 }
 0x564   : > { %1426 = vmatpush.bf16.msrb.mxu0 %v1399_v24 }
 0x567   : > { %v4374_v8 = vpop.eup %3552  ;;  %v1363_v49 = vpop.xlane.xlu0 %1362 }
 0x568   : > { %1427 = vmatpush.bf16.msrb.mxu0 %v1397_v42  ;;  %v1799_v61 = vsel %vm1081_vm13, %v4374_v8, 0.0 }
 0x56b   : > { %3213 = vmatmul.msk.bf16.vlgmr.msrb.gmra.mxu0 %vm1081_vm13, %v1392_v50 }
 0x56c   : > { %1374 = vadd.xlane.f32.xlu0 %v1373_v54 }
 0x56e   : > { %v4370_v48 = vpop.f32.mrf.mxu2 }
 0x576   : > { %v4372_v52 = vpop.f32.mrf.mxu2 }
 0x57e   : > { %v1498_v59 = vpop.f32.mrf.mxu2 }
 0x57f   : > { %v4378_v63 = vmul.f32 0.35355338, %v1498_v59  ;;  %1800 = vadd.xlane.f32.xlu2 %v1799_v61 }
 0x581   : > { %v1750_v1 = vpop.xlane.xlu1 %1749  ;;  %v1526_v2 = vsel %vm1081_vm13, %v4378_v63, -inf }
 0x582   : > { %v1772_v56 = vsub.f32 %v4296_v58, %v1750_v1  ;;  %1527 = vmax.xlane.f32.xlu0 %v1526_v2  ;;  %v4393_v58 = vpop.xlane.xlu0 %1755 }
 0x584   : > { %v1780_v38 = vmul.f32 1.442695, %v1772_v56 }
 0x586   : > { %3554 = vpow2.f32 %v1780_v38  ;;  %v1500_v28 = vpop.f32.mrf.mxu2 }
 0x587   : > { %v4383_v3 = vmul.f32 0.35355338, %v1500_v28  ;;  %3556 = vrcp.f32 %v1363_v49 }
 0x589   : > { %v1529_v10 = vsel %vm1081_vm13, %v4383_v3, -inf  ;;  %v4412_v0 = vpop.xlane.xlu1 %1758 }
 0x58a   : > { %1530 = vmax.xlane.f32.xlu2 %v1529_v10  ;;  %v1369_v21 = vpop.xlane.xlu0 %1368 }
 0x58c   : > { %v4387_v7 = vpop.eup %3554 }
 0x58d   : > { %v1796_v26 = vsel %vm1081_vm13, %v4387_v7, 0.0  ;;  %v3557_v25 = vpop.eup %3556 }
 0x58e   : > { %1797 = vadd.xlane.f32.xlu1 %v1796_v26  ;;  %v1503_v62 = vpop.f32.mrf.mxu2  ;;  %v1387_v41 = vmul.f32 %v3557_v25, %v4278_v44 }
 0x58f   : > { %v4391_v9 = vmul.f32 0.35355338, %v1503_v62 }
 0x591   : > { %v1532_v53 = vsel %vm1081_vm13, %v4391_v9, -inf }
 0x596   : > { %1533 = vmax.xlane.f32.xlu1 %v1532_v53  ;;  %v1505_v57 = vpop.f32.mrf.mxu2  ;;  %1842 = vrot.lane.b32.xlu0 %v4059_v12, %s3735_s24 }
 0x597   : > { %v4399_v5 = vmul.f32 0.35355338, %v1505_v57 }
 0x598   : > { %v1360_v13 = vpop.xlane.xlu2 %1359 }
 0x599   : > { %3558 = vrcp.f32 %v1360_v13  ;;  %v1535_v11 = vsel %vm1081_vm13, %v4399_v5, -inf  ;;  %v4409_v24 = vpop.xlane.xlu0 %1761 }
 0x59a   : > { %1536 = vmax.xlane.f32.xlu2 %v1535_v11 }
 0x59e   : > { %v1508_v31 = vpop.f32.mrf.mxu2 }
 0x59f   : > { %v3559_v33 = vpop.eup %3558  ;;  %v4403_v22 = vmul.f32 0.35355338, %v1508_v31 }
 0x5a0   : > { %v1366_v35 = vpop.xlane.xlu2 %1365  ;;  %v1386_v40 = vmul.f32 %v3559_v33, %v4310_v4 }
 0x5a1   : > { %v1538_v39 = vsel %vm1081_vm13, %v4403_v22, -inf  ;;  %3560 = vrcp.f32 %v1366_v35  ;;  %v4419_v59 = vpop.xlane.xlu1 %1764 }
 0x5a2   : > { %1539 = vmax.xlane.f32.xlu1 %v1538_v39  ;;  %v1393_v42 = vpack.c.bf16 %v1387_v41, %v1386_v40  ;;  %3562 = vrcp.f32 %v1369_v21 }
 0x5a4   : > { %3214 = vmatmul.msk.bf16.gmra.mxu0 %vm1081_vm13, %v1393_v42 }
 0x5a6   : > { %v1510_v19 = vpop.f32.mrf.mxu2 }
 0x5a7   : > { %v4414_v30 = vmul.f32 0.35355338, %v1510_v19  ;;  %v3561_v4 = vpop.eup %3560 }
 0x5a8   : > { %v1372_v50 = vpop.xlane.xlu2 %1371  ;;  %v3563_v54 = vpop.eup %3562  ;;  %v1388_v34 = vmul.f32 %v3561_v4, %v4319_v29 }
 0x5a9   : > { %v1541_v44 = vsel %vm1081_vm13, %v4414_v30, -inf  ;;  %v1389_v1 = vmul.f32 %v3563_v54, %v4291_v14  ;;  %v4431_v10 = vpop.xlane.xlu1 %1767  ;;  %3564 = vrcp.f32 %v1372_v50 }
 0x5aa   : > { %1542 = vmax.xlane.f32.xlu2 %v1541_v44 }
 0x5ab   : > { %v1394_v38 = vpack.c.bf16 %v1389_v1, %v1388_v34 }
 0x5ac   : > { %v1625_v43 = vpop.permute.xlu0 %1624 }
 0x5ad   : > { %1646 = vmatpush.bf16.msrb.mxu1 %v1625_v43 }
 0x5ae   : > { %v1513_v17 = vpop.f32.mrf.mxu2 }
 0x5af   : > { %v4421_v61 = vmul.f32 0.35355338, %v1513_v17  ;;  %v3565_v57 = vpop.eup %3564 }
 0x5b0   : > { %v1390_v11 = vmul.f32 %v3565_v57, %v4329_v46 }
 0x5b1   : > { %v4424_v2 = vpop.xlane.xlu2 %1770  ;;  %v1544_v56 = vsel %vm1081_vm13, %v4421_v61, -inf }
 0x5b2   : > { %1545 = vmax.xlane.f32.xlu1 %v1544_v56 }
 0x5b4   : > { %3215 = vmatmul.msk.bf16.gmra.mxu0 %vm1081_vm13, %v1394_v38  ;;  %v1845_v62 = vpop.permute.xlu0 %1844 }
 0x5b6   : > { %v1515_v28 = vpop.f32.mrf.mxu2 }
 0x5b7   : > { %v4429_v49 = vmul.f32 0.35355338, %v1515_v28 }
 0x5b9   : > { %v1623_v29 = vpop.permute.xlu2 %1622  ;;  %v1547_v26 = vsel %vm1081_vm13, %v4429_v49, -inf }
 0x5ba   : > { %1548 = vmax.xlane.f32.xlu2 %v1547_v26  ;;  %1647 = vmatpush.bf16.msrb.mxu1 %v1623_v29 }
 0x5c1   : > { %v1847_v14 = vpop.permute.xlu1 %1846 }
 0x5c2   : > { %1868 = vmatpush.bf16.msra.mxu0 %v1847_v14 }
 0x5c6   : > { %1869 = vmatpush.bf16.msra.mxu0 %v1845_v62 }
 0x5cb   : > { %1620 = vrot.lane.b32.xlu1 %v4059_v12, %s3734_s21 }
 0x5df   : > { %v1375_v53 = vpop.xlane.xlu0 %1374 }
 0x5e0   : > { %3566 = vrcp.f32 %v1375_v53 }
 0x5e6   : > { %v3567_v13 = vpop.eup %3566 }
 0x5e7   : > { %v1391_v21 = vmul.f32 %v3567_v13, %v4364_v45 }
 0x5e9   : > { %v1395_v25 = vpack.c.bf16 %v1391_v21, %v1390_v11 }
 0x5eb   : > { %3216 = vmatmul.msk.bf16.gmra.mxu0 %vm1081_vm13, %v1395_v25  ;;  %v1776_v25 = vsub.f32 %v4313_v6, %v4409_v24 }
 0x5f2   : > { %v1801_v31 = vpop.xlane.xlu2 %1800 }
 0x5f5   : > { %v1528_v33 = vpop.xlane.xlu0 %1527 }
 0x5f6   : > { %v1550_v35 = vsub.f32 %v4378_v63, %v1528_v33  ;;  %v1788_v33 = vmul.f32 1.442695, %v1776_v25 }
 0x5f8   : > { %v1558_v40 = vmul.f32 1.442695, %v1550_v35 }
 0x5fa   : > { %3568 = vpow2.f32 %v1558_v40  ;;  %v1775_v40 = vsub.f32 %v4302_v60, %v4412_v0 }
 0x5fb   : > { %3570 = vrcp.f32 %v1801_v31 }
 0x5fd   : > { %v1531_v41 = vpop.xlane.xlu2 %1530 }
 0x5fe   : > { %v1551_v12 = vsub.f32 %v4383_v3, %v1531_v41 }
 0x600   : > { %v4442_v39 = vpop.eup %3568  ;;  %v1560_v42 = vmul.f32 1.442695, %v1551_v12 }
 0x601   : > { %v1798_v19 = vpop.xlane.xlu1 %1797  ;;  %v1574_v46 = vsel %vm1081_vm13, %v4442_v39, 0.0  ;;  %v3571_v45 = vpop.eup %3570 }
 0x602   : > { %3572 = vpow2.f32 %v1560_v42  ;;  %1575 = vadd.xlane.f32.xlu2 %v1574_v46  ;;  %v4451_v4 = vmul.f32 %v3571_v45, %v4374_v8  ;;  %v1777_v8 = vsub.f32 %v4321_v20, %v4419_v59 }
 0x603   : > { %3574 = vrcp.f32 %v1798_v19 }
 0x608   : > { %v4446_v50 = vpop.eup %3572  ;;  %v1843_v63 = vpop.permute.xlu0 %1842 }
 0x609   : > { %v3575_v44 = vpop.eup %3574  ;;  %1870 = vmatpush.bf16.msra.mxu0 %v1843_v63  ;;  %v1577_v3 = vsel %vm1081_vm13, %v4446_v50, 0.0  ;;  %v1534_v17 = vpop.xlane.xlu1 %1533 }
 0x60a   : > { %v4454_v43 = vmul.f32 %v3575_v44, %v4387_v7  ;;  %1578 = vadd.xlane.f32.xlu0 %v1577_v3  ;;  %v1552_v11 = vsub.f32 %v4391_v9, %v1534_v17  ;;  %v1786_v9 = vmul.f32 1.442695, %v1775_v40 }
 0x60c   : > { %v1836_v54 = vpack.c.bf16 %v4451_v4, %v4454_v43  ;;  %v1562_v31 = vmul.f32 1.442695, %v1552_v11 }
 0x60d   : > { %v1537_v34 = vpop.xlane.xlu2 %1536 }
 0x60e   : > { %v1553_v1 = vsub.f32 %v4399_v5, %v1537_v34  ;;  %v1790_v5 = vmul.f32 1.442695, %v1777_v8  ;;  %v1779_v34 = vsub.f32 %v4341_v23, %v4424_v2 }
 0x610   : > { %v1564_v56 = vmul.f32 1.442695, %v1553_v1 }
 0x612   : > { %3576 = vpow2.f32 %v1564_v56 }
 0x615   : > { %v1540_v38 = vpop.xlane.xlu1 %1539 }
 0x616   : > { %v1554_v28 = vsub.f32 %v4403_v22, %v1540_v38  ;;  %v1778_v22 = vsub.f32 %v4331_v37, %v4431_v10  ;;  %v1429_v38 = vpop.f32.mrf.mxu0 }
 0x618   : > { %v4460_v29 = vpop.eup %3576  ;;  %v1566_v7 = vmul.f32 1.442695, %v1554_v28  ;;  %v1792_v59 = vmul.f32 1.442695, %v1778_v22 }
 0x619   : > { %v1583_v26 = vsel %vm1081_vm13, %v4460_v29, 0.0 }
 0x61a   : > { %3578 = vpow2.f32 %v1566_v7  ;;  %1584 = vadd.xlane.f32.xlu1 %v1583_v26  ;;  %1618 = vrot.lane.b32.xlu2 %v4069_v18, %s3734_s21 }
 0x61b   : > { %3580 = vpow2.f32 %v1790_v5 }
 0x61c   : > { %3582 = vpow2.f32 %v1792_v59 }
 0x61d   : > { %v1543_v21 = vpop.xlane.xlu2 %1542 }
 0x61e   : > { %1840 = vrot.lane.b32.xlu0 %v4069_v18, %s3735_s24  ;;  %v1774_v18 = vsub.f32 %v4283_v51, %v4393_v58  ;;  %v1555_v42 = vsub.f32 %v4414_v30, %v1543_v21  ;;  %v1431_v7 = vpop.f32.mrf.mxu0 }
 0x61f   : > { %v3414_v2 = vpack.i.bf16 %v1431_v7, %v1429_v38 }
 0x620   : > { %v4470_v14 = vpop.eup %3578  ;;  %v1784_v10 = vmul.f32 1.442695, %v1774_v18  ;;  %v1568_v0 = vmul.f32 1.442695, %v1555_v42 }
 0x621   : > { %v1586_v20 = vsel %vm1081_vm13, %v4470_v14, 0.0  ;;  %v4476_v62 = vpop.eup %3580 }
 0x622   : > { %1587 = vadd.xlane.f32.xlu1 %v1586_v20  ;;  %v1811_v53 = vsel %vm1081_vm13, %v4476_v62, 0.0  ;;  %v4480_v57 = vpop.eup %3582  ;;  %3584 = vpow2.f32 %v1784_v10 }
 0x623   : > { %v1814_v37 = vsel %vm1081_vm13, %v4480_v57, 0.0  ;;  %3586 = vpow2.f32 %v1562_v31 }
 0x624   : > { %3588 = vpow2.f32 %v1788_v33 }
 0x625   : > { %v1546_v13 = vpop.xlane.xlu1 %1545  ;;  %3590 = vpow2.f32 %v1786_v9 }
 0x626   : > { %v1556_v45 = vsub.f32 %v4421_v61, %v1546_v13  ;;  %v1794_v61 = vmul.f32 1.442695, %v1779_v34 }
 0x628   : > { %v4491_v58 = vpop.eup %3584  ;;  %v1570_v30 = vmul.f32 1.442695, %v1556_v45 }
 0x629   : > { %v1802_v12 = vsel %vm1081_vm13, %v4491_v58, 0.0  ;;  %v3587_v6 = vpop.eup %3586 }
 0x62a   : > { %1812 = vadd.xlane.f32.xlu1 %v1811_v53  ;;  %v4497_v19 = vpop.eup %3588  ;;  %v1580_v60 = vsel %vm1081_vm13, %v3587_v6, 0.0 }
 0x62b   : > { %v3591_v46 = vpop.eup %3590 }
 0x62c   : > { %v1805_v44 = vsel %vm1081_vm13, %v3591_v46, 0.0 }
 0x62d   : > { %v1549_v51 = vpop.xlane.xlu2 %1548 }
 0x62e   : > { %v1557_v41 = vsub.f32 %v4429_v49, %v1549_v51  ;;  %v1808_v49 = vsel %vm1081_vm13, %v4497_v19, 0.0 }
 0x630   : > { %v1572_v24 = vmul.f32 1.442695, %v1557_v41 }
 0x632   : > { %1815 = vadd.xlane.f32.xlu1 %v1814_v37  ;;  %3592 = vpow2.f32 %v1572_v24 }
 0x633   : > { %3594 = vpow2.f32 %v1568_v0 }
 0x634   : > { %3596 = vpow2.f32 %v1570_v30 }
 0x635   : > { %3598 = vpow2.f32 %v1794_v61 }
 0x638   : > { %v4503_v63 = vpop.eup %3592 }
 0x639   : > { %v1595_v3 = vsel %vm1081_vm13, %v4503_v63, 0.0  ;;  %v4508_v17 = vpop.eup %3594 }
 0x63a   : > { %v1589_v1 = vsel %vm1081_vm13, %v4508_v17, 0.0  ;;  %v4514_v56 = vpop.eup %3596 }
 0x63b   : > { %v1592_v28 = vsel %vm1081_vm13, %v4514_v56, 0.0  ;;  %v4518_v8 = vpop.eup %3598 }
 0x63c   : > { %v1817_v23 = vsel %vm1081_vm13, %v4518_v8, 0.0 }
 0x63d   : > { %v1621_v35 = vpop.permute.xlu1 %1620 }
 0x63e   : > { %1648 = vmatpush.bf16.msrb.mxu1 %v1621_v35 }
 0x643   : > { %1803 = vadd.xlane.f32.xlu2 %v1802_v12 }
 0x648   : > { %1581 = vadd.xlane.f32.xlu0 %v1580_v60 }
 0x64b   : > { %1809 = vadd.xlane.f32.xlu2 %v1808_v49 }
 0x650   : > { %1806 = vadd.xlane.f32.xlu0 %v1805_v44 }
 0x653   : > { %1596 = vadd.xlane.f32.xlu2 %v1595_v3 }
 0x658   : > { %1590 = vadd.xlane.f32.xlu0 %v1589_v1 }
 0x660   : > { %1593 = vadd.xlane.f32.xlu0 %v1592_v28 }
 0x668   : > { %1818 = vadd.xlane.f32.xlu0 %v1817_v23 }
 0x66b   : > { %3415 = vrot.lane.b32.xlu2 %v3414_v2, %s3736_s25 }
 0x675   : > { %v1576_v26 = vpop.xlane.xlu2 %1575 }
 0x676   : > { %3600 = vrcp.f32 %v1576_v26 }
 0x67c   : > { %v3601_v20 = vpop.eup %3600 }
 0x67d   : > { %v1619_v5 = vpop.permute.xlu2 %1618  ;;  %v1579_v22 = vpop.xlane.xlu0 %1578  ;;  %v1606_v53 = vmul.f32 %v3601_v20, %v4442_v39 }
 0x67e   : > { %3602 = vrcp.f32 %v1579_v22  ;;  %1649 = vmatpush.bf16.msrb.mxu1 %v1619_v5 }
 0x684   : > { %v3603_v59 = vpop.eup %3602 }
 0x685   : > { %v1607_v18 = vmul.f32 %v3603_v59, %v4446_v50 }
 0x687   : > { %v1614_v37 = vpack.c.bf16 %v1607_v18, %v1606_v53 }
 0x689   : > { %3221 = vmatmul.msk.bf16.vlgmr.msrb.gmra.mxu1 %vm1081_vm13, %v1614_v37 }
 0x68d   : > { %v1585_v13 = vpop.xlane.xlu1 %1584 }
 0x68e   : > { %3604 = vrcp.f32 %v1585_v13 }
 0x690   : > { %v1841_v10 = vpop.permute.xlu0 %1840 }
 0x691   : > { %1871 = vmatpush.bf16.msra.mxu0 %v1841_v10 }
 0x694   : > { %3229 = vmatmul.msk.bf16.vlgmr.msra.gmra.mxu0 %vm1081_vm13, %v1836_v54  ;;  %v3605_v25 = vpop.eup %3604 }
 0x695   : > { %v1609_v33 = vmul.f32 %v3605_v25, %v4460_v29  ;;  %v1588_v35 = vpop.xlane.xlu1 %1587 }
 0x69d   : > { %v1813_v24 = vpop.xlane.xlu1 %1812 }
 0x6a5   : > { %v1816_v38 = vpop.xlane.xlu1 %1815 }
 0x6b6   : > { %v1804_v21 = vpop.xlane.xlu2 %1803 }
 0x6bb   : > { %v1582_v11 = vpop.xlane.xlu0 %1581 }
 0x6bc   : > { %3606 = vrcp.f32 %v1582_v11 }
 0x6bd   : > { %3608 = vrcp.f32 %v1804_v21  ;;  %v3310_v21 = vld [vmem:[%s3874_s0 + $0x8] sm:$0xff] }
 0x6be   : > { %v1810_v9 = vpop.xlane.xlu2 %1809  ;;  %2057 = vmatpush.bf16.msra.mxu2 %v3310_v21 }
 0x6c2   : > { %v3607_v31 = vpop.eup %3606 }
 0x6c3   : > { %v1807_v39 = vpop.xlane.xlu0 %1806  ;;  %v1608_v50 = vmul.f32 %v3607_v31, %v3587_v6  ;;  %v3609_v4 = vpop.eup %3608 }
 0x6c4   : > { %3610 = vrcp.f32 %v1807_v39  ;;  %v1830_v51 = vmul.f32 %v3609_v4, %v4491_v58  ;;  %v3309_v4 = vld [vmem:[%s3874_s0] sm:$0xff] }
 0x6c5   : > { %v1615_v40 = vpack.c.bf16 %v1609_v33, %v1608_v50  ;;  %3612 = vrcp.f32 %v1588_v35  ;;  %2058 = vmatpush.bf16.msra.mxu2 %v3309_v4 }
 0x6c6   : > { %v1597_v44 = vpop.xlane.xlu2 %1596 }
 0x6c7   : > { %3222 = vmatmul.msk.bf16.gmra.mxu1 %vm1081_vm13, %v1615_v40 }
 0x6ca   : > { %v3611_v43 = vpop.eup %3610 }
 0x6cb   : > { %v1591_v54 = vpop.xlane.xlu0 %1590  ;;  %v1831_v41 = vmul.f32 %v3611_v43, %v3591_v46  ;;  %v3613_v6 = vpop.eup %3612 }
 0x6cc   : > { %3614 = vrcp.f32 %v1591_v54  ;;  %v1610_v60 = vmul.f32 %v3613_v6, %v4470_v14  ;;  %v1434_v46 = vpop.f32.mrf.mxu0 }
 0x6cd   : > { %v1837_v12 = vpack.c.bf16 %v1831_v41, %v1830_v51  ;;  %3616 = vrcp.f32 %v1810_v9 }
 0x6ce   : > { %3618 = vrcp.f32 %v1813_v24 }
 0x6cf   : > { %3230 = vmatmul.msk.bf16.gmra.mxu0 %vm1081_vm13, %v1837_v12 }
 0x6d2   : > { %v3615_v29 = vpop.eup %3614 }
 0x6d3   : > { %v1594_v42 = vpop.xlane.xlu0 %1593  ;;  %v1611_v0 = vmul.f32 %v3615_v29, %v4508_v17  ;;  %v3617_v45 = vpop.eup %3616 }
 0x6d4   : > { %v3619_v58 = vpop.eup %3618  ;;  %3620 = vrcp.f32 %v1594_v42  ;;  %v1832_v30 = vmul.f32 %v3617_v45, %v4497_v19  ;;  %v1436_v28 = vpop.f32.mrf.mxu0 }
 0x6d5   : > { %v1616_v49 = vpack.c.bf16 %v1611_v0, %v1610_v60  ;;  %3622 = vrcp.f32 %v1597_v44  ;;  %v1833_v3 = vmul.f32 %v3619_v58, %v4476_v62  ;;  %v3416_v0 = vpop.permute.xlu2 %3415 }
 0x6d6   : > { %v3418_v45 = vunpack.i.h.bf16 %v3416_v0  ;;  %v3417_v44 = vunpack.i.l.bf16 %v3416_v0 }
 0x6d7   : > { %3223 = vmatmul.msk.bf16.gmra.mxu1 %vm1081_vm13, %v1616_v49  ;;  %v1838_v1 = vpack.c.bf16 %v1833_v3, %v1832_v30 }
 0x6d8   : > { %v1990_v3 = vsel %vm1019_vm12, %v4345_v55, %v3418_v45 }
 0x6da   : > { %v3621_v61 = vpop.eup %3620 }
 0x6db   : > { %v1819_v34 = vpop.xlane.xlu0 %1818  ;;  %v3623_v14 = vpop.eup %3622  ;;  %v1612_v17 = vmul.f32 %v3621_v61, %v4514_v56 }
 0x6dc   : > { %3624 = vrcp.f32 %v1819_v34  ;;  %v1613_v7 = vmul.f32 %v3623_v14, %v4503_v63  ;;  %v1439_v5 = vpop.f32.mrf.mxu0  ;;  %v1989_v34 = vsel %vm1019_vm12, %v4337_v16, %v3417_v44 }
 0x6dd   : > { %3626 = vrcp.f32 %v1816_v38 }
 0x6de   : > { %v1617_v23 = vpack.c.bf16 %v1613_v7, %v1612_v17 }
 0x6df   : > { %3231 = vmatmul.msk.bf16.gmra.mxu0 %vm1081_vm13, %v1838_v1 }
 0x6e2   : > { %v3625_v2 = vpop.eup %3624 }
 0x6e3   : > { %v3627_v19 = vpop.eup %3626  ;;  %v1835_v62 = vmul.f32 %v3625_v2, %v4518_v8 }
 0x6e4   : > { %v1834_v26 = vmul.f32 %v3627_v19, %v4480_v57  ;;  %v1441_v20 = vpop.f32.mrf.mxu0  ;;  %v3429_v57 = vpack.i.bf16 %v1436_v28, %v1434_v46 }
 0x6e5   : > { %v3444_v8 = vpack.i.bf16 %v1441_v20, %v1439_v5 }
 0x6e6   : > { %v1839_v22 = vpack.c.bf16 %v1835_v62, %v1834_v26 }
 0x6e7   : > { %3224 = vmatmul.msk.bf16.gmra.mxu1 %vm1081_vm13, %v1617_v23 }
 0x6ec   : > { %v1444_v59 = vpop.f32.mrf.mxu0 }
 0x6ef   : > { %3232 = vmatmul.msk.bf16.gmra.mxu0 %vm1081_vm13, %v1839_v22 }
 0x6f4   : > { %v1446_v53 = vpop.f32.mrf.mxu0 }
 0x6f5   : > { %v3459_v11 = vpack.i.bf16 %v1446_v53, %v1444_v59 }
 0x706   : > { %v1651_v56 = vpop.f32.mrf.mxu1 }
 0x70e   : > { %v1653_v18 = vpop.f32.mrf.mxu1 }
 0x70f   : > { %v3419_v63 = vpack.i.bf16 %v1653_v18, %v1651_v56 }
 0x711   : > { %3420 = vrot.lane.b32.xlu1 %v3419_v63, %s3737_s26  ;;  %v1873_v37 = vpop.f32.mrf.mxu0 }
 0x719   : > { %v1875_v10 = vpop.f32.mrf.mxu0 }
 0x71a   : > { %v3424_v13 = vpack.i.bf16 %v1875_v10, %v1873_v37 }
 0x71c   : > { %3425 = vrot.lane.b32.xlu0 %v3424_v13, %s3738_s18 }
 0x724   : > { %3430 = vrot.lane.b32.xlu0 %v3429_v57, %s3736_s25 }
 0x72c   : > { %3445 = vrot.lane.b32.xlu0 %v3444_v8, %s3736_s25 }
 0x734   : > { %3460 = vrot.lane.b32.xlu0 %v3459_v11, %s3736_s25 }
 0x744   : > { %v1656_v25 = vpop.f32.mrf.mxu1 }
 0x74c   : > { %v1658_v31 = vpop.f32.mrf.mxu1  ;;  %v1878_v39 = vpop.f32.mrf.mxu0 }
 0x74d   : > { %v3434_v50 = vpack.i.bf16 %v1658_v31, %v1656_v25 }
 0x74f   : > { %3435 = vrot.lane.b32.xlu2 %v3434_v50, %s3737_s26 }
 0x754   : > { %v1661_v33 = vpop.f32.mrf.mxu1  ;;  %v1880_v35 = vpop.f32.mrf.mxu0 }
 0x755   : > { %v3439_v40 = vpack.i.bf16 %v1880_v35, %v1878_v39 }
 0x757   : > { %3440 = vrot.lane.b32.xlu1 %v3439_v40, %s3738_s18 }
 0x75c   : > { %v1663_v43 = vpop.f32.mrf.mxu1  ;;  %v1883_v54 = vpop.f32.mrf.mxu0 }
 0x75d   : > { %v3449_v51 = vpack.i.bf16 %v1663_v43, %v1661_v33 }
 0x75f   : > { %3450 = vrot.lane.b32.xlu2 %v3449_v51, %s3737_s26 }
 0x764   : > { %v1666_v41 = vpop.f32.mrf.mxu1  ;;  %v1885_v9 = vpop.f32.mrf.mxu0 }
 0x765   : > { %v3454_v12 = vpack.i.bf16 %v1885_v9, %v1883_v54 }
 0x767   : > { %3455 = vrot.lane.b32.xlu1 %v3454_v12, %s3738_s18 }
 0x76c   : > { %v1668_v24 = vpop.f32.mrf.mxu1  ;;  %v1888_v6 = vpop.f32.mrf.mxu0 }
 0x76d   : > { %v3464_v29 = vpack.i.bf16 %v1668_v24, %v1666_v41 }
 0x76f   : > { %3465 = vrot.lane.b32.xlu2 %v3464_v29, %s3737_s26 }
 0x774   : > { %v1890_v42 = vpop.f32.mrf.mxu0 }
 0x775   : > { %v3469_v60 = vpack.i.bf16 %v1890_v42, %v1888_v6 }
 0x777   : > { %3470 = vrot.lane.b32.xlu1 %v3469_v60, %s3738_s18 }
 0x783   : > { %v3421_v49 = vpop.permute.xlu1 %3420 }
 0x784   : > { %v3423_v58 = vunpack.i.h.bf16 %v3421_v49  ;;  %v3422_v46 = vunpack.i.l.bf16 %v3421_v49 }
 0x786   : > { %v1999_v38 = vsel %vm1997_vm14, %v1990_v3, %v3423_v58  ;;  %v1998_v14 = vsel %vm1997_vm14, %v1989_v34, %v3422_v46 }
 0x78e   : > { %v3426_v30 = vpop.permute.xlu0 %3425 }
 0x78f   : > { %v3428_v1 = vunpack.i.h.bf16 %v3426_v30  ;;  %v3427_v61 = vunpack.i.l.bf16 %v3426_v30 }
 0x791   : > { %v2008_v17 = vsel %vm2006_vm15, %v1999_v38, %v3428_v1  ;;  %v2007_v28 = vsel %vm2006_vm15, %v1998_v14, %v3427_v61 }
 0x792   : > { %v2015_v7 = vpack.c.bf16 %v2008_v17, %v2007_v28 }
 0x794   : > { %3241 = vmatmul.msk.bf16.vlgmr.msra.gmra.mxu2 %vm732_vm1, %v2015_v7 }
 0x796   : > { %v3431_v23 = vpop.permute.xlu0 %3430 }
 0x797   : > { %v3433_v19 = vunpack.i.h.bf16 %v3431_v23  ;;  %v3432_v55 = vunpack.i.l.bf16 %v3431_v23 }
 0x799   : > { %v1992_v5 = vsel %vm1019_vm12, %v4353_v47, %v3433_v19  ;;  %v1991_v22 = vsel %vm1019_vm12, %v4349_v27, %v3432_v55 }
 0x79e   : > { %v3446_v10 = vpop.permute.xlu0 %3445 }
 0x79f   : > { %v3448_v57 = vunpack.i.h.bf16 %v3446_v10  ;;  %v3447_v47 = vunpack.i.l.bf16 %v3446_v10 }
 0x7a1   : > { %v1994_v21 = vsel %vm1019_vm12, %v4361_v15, %v3448_v57  ;;  %v1993_v25 = vsel %vm1019_vm12, %v4358_v36, %v3447_v47 }
 0x7a6   : > { %v3461_v43 = vpop.permute.xlu0 %3460 }
 0x7a7   : > { %v3463_v15 = vunpack.i.h.bf16 %v3461_v43  ;;  %v3462_v51 = vunpack.i.l.bf16 %v3461_v43 }
 0x7a9   : > { %v3436_v2 = vpop.permute.xlu2 %3435  ;;  %v1996_v12 = vsel %vm1019_vm12, %v4372_v52, %v3463_v15  ;;  %v1995_v24 = vsel %vm1019_vm12, %v4370_v48, %v3462_v51  ;;  %v3477_v52 = vld [vmem:[%s5103_s15] ss:$0 sm:$0xff] }
 0x7aa   : > { %v3438_v62 = vunpack.i.h.bf16 %v3436_v2  ;;  %v3437_v26 = vunpack.i.l.bf16 %v3436_v2 }
 0x7ac   : > { %v2000_v56 = vsel %vm1997_vm14, %v1991_v22, %v3437_v26  ;;  %v2001_v53 = vsel %vm1997_vm14, %v1992_v5, %v3438_v62 }
 0x7b9   : > { %v3451_v13 = vpop.permute.xlu2 %3450 }
 0x7ba   : > { %v3453_v8 = vunpack.i.h.bf16 %v3451_v13  ;;  %v3452_v11 = vunpack.i.l.bf16 %v3451_v13 }
 0x7bc   : > { %v2002_v50 = vsel %vm1997_vm14, %v1993_v25, %v3452_v11  ;;  %v2003_v33 = vsel %vm1997_vm14, %v1994_v21, %v3453_v8 }
 0x7c9   : > { %v3441_v16 = vpop.permute.xlu1 %3440  ;;  %v3466_v54 = vpop.permute.xlu2 %3465 }
 0x7ca   : > { %v3443_v20 = vunpack.i.h.bf16 %v3441_v16  ;;  %v3442_v59 = vunpack.i.l.bf16 %v3441_v16  ;;  %v3468_v41 = vunpack.i.h.bf16 %v3466_v54  ;;  %v3467_v36 = vunpack.i.l.bf16 %v3466_v54 }
 0x7cc   : > { %v2009_v18 = vsel %vm2006_vm15, %v2000_v56, %v3442_v59  ;;  %v2010_v63 = vsel %vm2006_vm15, %v2001_v53, %v3443_v20  ;;  %v2004_v42 = vsel %vm1997_vm14, %v1995_v24, %v3467_v36  ;;  %v2005_v60 = vsel %vm1997_vm14, %v1996_v12, %v3468_v41 }
 0x7cd   : > { %v2016_v37 = vpack.c.bf16 %v2010_v63, %v2009_v18 }
 0x7cf   : > { %3242 = vmatmul.msk.bf16.gmra.mxu2 %vm732_vm1, %v2016_v37 }
 0x7d9   : > { %v3456_v27 = vpop.permute.xlu1 %3455 }
 0x7da   : > { %v3458_v31 = vunpack.i.h.bf16 %v3456_v27  ;;  %v3457_v39 = vunpack.i.l.bf16 %v3456_v27 }
 0x7dc   : > { %v2011_v35 = vsel %vm2006_vm15, %v2002_v50, %v3457_v39  ;;  %v2012_v40 = vsel %vm2006_vm15, %v2003_v33, %v3458_v31 }
 0x7dd   : > { %v2017_v4 = vpack.c.bf16 %v2012_v40, %v2011_v35 }
 0x7df   : > { %3243 = vmatmul.msk.bf16.gmra.mxu2 %vm732_vm1, %v2017_v4 }
 0x7e9   : > { %v3471_v9 = vpop.permute.xlu1 %3470 }
 0x7ea   : > { %v3473_v6 = vunpack.i.h.bf16 %v3471_v9  ;;  %v3472_v29 = vunpack.i.l.bf16 %v3471_v9 }
 0x7ec   : > { %v2013_v0 = vsel %vm2006_vm15, %v2004_v42, %v3472_v29  ;;  %v2014_v49 = vsel %vm2006_vm15, %v2005_v60, %v3473_v6 }
 0x7ed   : > { %v2018_v45 = vpack.c.bf16 %v2014_v49, %v2013_v0  ;;  %v3312_v0 = vld [vmem:[%s3891_s30 + $0x8] sm:$0xff] }
 0x7ee   : > { %2322 = vmatpush.bf16.msra.mxu1 %v3312_v0 }
 0x7ef   : > { %3244 = vmatmul.msk.bf16.gmra.mxu2 %vm732_vm1, %v2018_v45 }
 0x817   : > { %v2060_v44 = vpop.f32.mrf.mxu2 }
 0x818   : > { %v2061_v48 = vadd.f32 %v3477_v52, %v2060_v44  ;;  %v3311_v44 = vld [vmem:[%s3891_s30] sm:$0xff] }
 0x819   : > { %2323 = vmatpush.bf16.msra.mxu1 %v3311_v44 }
 0x81a   : > { %v2082_v58 = vsel %vm732_vm1, %v2061_v48, 0.0 }
 0x81b   : > { %2083 = vadd.xlane.f32.xlu0 %v2082_v58 }
 0x81f   : > { %v2062_v46 = vpop.f32.mrf.mxu2 }
 0x820   : > { %v2063_v30 = vadd.f32 %v3477_v52, %v2062_v46 }
 0x822   : > { %v2085_v3 = vsel %vm732_vm1, %v2063_v30, 0.0 }
 0x823   : > { %2086 = vadd.xlane.f32.xlu2 %v2085_v3 }
 0x852   : > { %v2065_v34 = vpop.f32.mrf.mxu2 }
 0x853   : > { %v2066_v1 = vadd.f32 %v3477_v52, %v2065_v34 }
 0x855   : > { %v2088_v61 = vsel %vm732_vm1, %v2066_v1, 0.0 }
 0x856   : > { %2089 = vadd.xlane.f32.xlu1 %v2088_v61 }
 0x85a   : > { %v2067_v38 = vpop.f32.mrf.mxu2 }
 0x85b   : > { %v2068_v14 = vadd.f32 %v3477_v52, %v2067_v38 }
 0x85d   : > { %v2091_v17 = vsel %vm732_vm1, %v2068_v14, 0.0 }
 0x85e   : > { %2092 = vadd.xlane.f32.xlu0 %v2091_v17 }
 0x862   : > { %v2070_v28 = vpop.f32.mrf.mxu2 }
 0x863   : > { %v2071_v7 = vadd.f32 %v3477_v52, %v2070_v28 }
 0x865   : > { %v2094_v23 = vsel %vm732_vm1, %v2071_v7, 0.0 }
 0x866   : > { %2095 = vadd.xlane.f32.xlu2 %v2094_v23 }
 0x86a   : > { %v2072_v2 = vpop.f32.mrf.mxu2 }
 0x86b   : > { %v2073_v19 = vadd.f32 %v3477_v52, %v2072_v2 }
 0x86d   : > { %v2097_v55 = vsel %vm732_vm1, %v2073_v19, 0.0 }
 0x86e   : > { %2098 = vadd.xlane.f32.xlu1 %v2097_v55 }
 0x872   : > { %v2075_v62 = vpop.f32.mrf.mxu2 }
 0x873   : > { %v2076_v26 = vadd.f32 %v3477_v52, %v2075_v62 }
 0x875   : > { %v2100_v16 = vsel %vm732_vm1, %v2076_v26, 0.0 }
 0x876   : > { %2101 = vadd.xlane.f32.xlu1 %v2100_v16 }
 0x87a   : > { %v2077_v53 = vpop.f32.mrf.mxu2 }
 0x87b   : > { %v2078_v37 = vadd.f32 %v3477_v52, %v2077_v53  ;;  %v4673_v53 = vld [vmem:[%s5105_s3] ss:$0 sm:$0xff] }
 0x87d   : > { %v2103_v47 = vsel %vm732_vm1, %v2078_v37, 0.0 }
 0x88e   : > { %v2084_v5 = vpop.xlane.xlu0 %2083 }
 0x88f   : > { %v2106_v22 = vmul.f32 %v2084_v5, %v3933_v32  ;;  %v4665_v5 = vld [vmem:[%s5104_s16] ss:$0 sm:$0xff] }
 0x891   : > { %v4608_v20 = vsub.f32 %v2061_v48, %v2106_v22 }
 0x893   : > { %v2122_v59 = vmul.f32 %v4608_v20, %v4608_v20 }
 0x895   : > { %v2130_v56 = vsel %vm732_vm1, %v2122_v59, 0.0 }
 0x896   : > { %v2087_v18 = vpop.xlane.xlu2 %2086  ;;  %2131 = vadd.xlane.f32.xlu0 %v2130_v56 }
 0x897   : > { %v2107_v63 = vmul.f32 %v2087_v18, %v3933_v32 }
 0x899   : > { %v4614_v10 = vsub.f32 %v2063_v30, %v2107_v63 }
 0x89b   : > { %v2123_v13 = vmul.f32 %v4614_v10, %v4614_v10 }
 0x89d   : > { %v2133_v57 = vsel %vm732_vm1, %v2123_v13, 0.0 }
 0x89e   : > { %2134 = vadd.xlane.f32.xlu2 %v2133_v57  ;;  %2104 = vadd.xlane.f32.xlu0 %v2103_v47 }
 0x8c9   : > { %v2090_v8 = vpop.xlane.xlu1 %2089 }
 0x8ca   : > { %v2108_v11 = vmul.f32 %v2090_v8, %v3933_v32 }
 0x8cc   : > { %v4621_v27 = vsub.f32 %v2066_v1, %v2108_v11 }
 0x8ce   : > { %v2124_v21 = vmul.f32 %v4621_v27, %v4621_v27 }
 0x8d0   : > { %v2136_v25 = vsel %vm732_vm1, %v2124_v21, 0.0 }
 0x8d1   : > { %2137 = vadd.xlane.f32.xlu2 %v2136_v25  ;;  %v2093_v31 = vpop.xlane.xlu0 %2092 }
 0x8d2   : > { %v2109_v39 = vmul.f32 %v2093_v31, %v3933_v32 }
 0x8d4   : > { %v4627_v50 = vsub.f32 %v2068_v14, %v2109_v39 }
 0x8d6   : > { %v2125_v33 = vmul.f32 %v4627_v50, %v4627_v50 }
 0x8d8   : > { %v2139_v35 = vsel %vm732_vm1, %v2125_v33, 0.0 }
 0x8d9   : > { %v2096_v40 = vpop.xlane.xlu2 %2095  ;;  %2140 = vadd.xlane.f32.xlu1 %v2139_v35 }
 0x8da   : > { %v2110_v4 = vmul.f32 %v2096_v40, %v3933_v32 }
 0x8dc   : > { %v4633_v43 = vsub.f32 %v2071_v7, %v2110_v4 }
 0x8de   : > { %v2126_v54 = vmul.f32 %v4633_v43, %v4633_v43 }
 0x8e0   : > { %v2142_v15 = vsel %vm732_vm1, %v2126_v54, 0.0 }
 0x8e1   : > { %v2099_v51 = vpop.xlane.xlu1 %2098  ;;  %2143 = vadd.xlane.f32.xlu0 %v2142_v15 }
 0x8e2   : > { %v2111_v41 = vmul.f32 %v2099_v51, %v3933_v32 }
 0x8e4   : > { %v4639_v36 = vsub.f32 %v2073_v19, %v2111_v41 }
 0x8e6   : > { %v2127_v9 = vmul.f32 %v4639_v36, %v4639_v36 }
 0x8e8   : > { %v2145_v12 = vsel %vm732_vm1, %v2127_v9, 0.0 }
 0x8e9   : > { %v2102_v24 = vpop.xlane.xlu1 %2101  ;;  %2146 = vadd.xlane.f32.xlu2 %v2145_v12 }
 0x8ea   : > { %v2112_v6 = vmul.f32 %v2102_v24, %v3933_v32 }
 0x8ec   : > { %v4645_v29 = vsub.f32 %v2076_v26, %v2112_v6 }
 0x8ee   : > { %v2128_v42 = vmul.f32 %v4645_v29, %v4645_v29 }
 0x8f0   : > { %v2148_v60 = vsel %vm732_vm1, %v2128_v42, 0.0 }
 0x8f1   : > { %2149 = vadd.xlane.f32.xlu1 %v2148_v60 }
 0x909   : > { %v2132_v49 = vpop.xlane.xlu0 %2131 }
 0x90a   : > { %v2154_v45 = vmul.f32 %v2132_v49, %v3933_v32 }
 0x90c   : > { %v2162_v52 = vadd.f32 1e-05, %v2154_v45 }
 0x90e   : > { %3628 = vrsqrt.f32 %v2162_v52  ;;  %vm2176_vm2 = vweird.f32 %v2162_v52 }
 0x911   : > { %v2135_v48 = vpop.xlane.xlu2 %2134  ;;  %v2105_v58 = vpop.xlane.xlu0 %2104 }
 0x912   : > { %v2155_v46 = vmul.f32 %v2135_v48, %v3933_v32  ;;  %v2113_v30 = vmul.f32 %v2105_v58, %v3933_v32 }
 0x914   : > { %v3629_v3 = vpop.eup %3628  ;;  %v2163_v34 = vadd.f32 1e-05, %v2155_v46  ;;  %v4655_v1 = vsub.f32 %v2078_v37, %v2113_v30 }
 0x915   : > { %v2171_v61 = vmul.f32 %v3629_v3, %v2162_v52  ;;  %vm2177_vm0 = vweird.f32 %v3629_v3 }
 0x916   : > { %3630 = vrsqrt.f32 %v2163_v34  ;;  %v2129_v38 = vmul.f32 %v4655_v1, %v4655_v1  ;;  %vm2178_vm3 = vmor %vm2176_vm2, %vm2177_vm0  ;;  %vm2186_vm5 = vweird.f32 %v2163_v34 }
 0x917   : > { %v2172_v14 = vmul.f32 %v3629_v3, %v2171_v61 }
 0x918   : > { %v2151_v17 = vsel %vm732_vm1, %v2129_v38, 0.0 }
 0x919   : > { %v2173_v28 = vmul.f32 0.5, %v2172_v14  ;;  %2152 = vadd.xlane.f32.xlu0 %v2151_v17 }
 0x91b   : > { %v2174_v7 = vsub.f32 1.5, %v2173_v28 }
 0x91c   : > { %v3631_v23 = vpop.eup %3630 }
 0x91d   : > { %v2175_v2 = vmul.f32 %v3629_v3, %v2174_v7  ;;  %v2181_v19 = vmul.f32 %v3631_v23, %v2163_v34  ;;  %vm2187_vm4 = vweird.f32 %v3631_v23 }
 0x91e   : > { %vm2188_vm6 = vmor %vm2186_vm5, %vm2187_vm4 }
 0x91f   : > { %v2182_v55 = vmul.f32 %v3631_v23, %v2181_v19  ;;  %v2179_v62 = vsel %vm2178_vm3, %v3629_v3, %v2175_v2 }
 0x920   : > { %v2250_v22 = vmul.f32 %v2179_v62, %v4608_v20 }
 0x921   : > { %v2183_v26 = vmul.f32 0.5, %v2182_v55 }
 0x922   : > { %v2261_v18 = vmul.f32 %v4665_v5, %v2250_v22 }
 0x923   : > { %v2184_v16 = vsub.f32 1.5, %v2183_v26 }
 0x924   : > { %v2272_v13 = vadd.f32 %v4673_v53, %v2261_v18 }
 0x925   : > { %v2185_v59 = vmul.f32 %v3631_v23, %v2184_v16 }
 0x927   : > { %v2189_v56 = vsel %vm2188_vm6, %v3631_v23, %v2185_v59 }
 0x928   : > { %v2251_v63 = vmul.f32 %v2189_v56, %v4614_v10 }
 0x92a   : > { %v2262_v37 = vmul.f32 %v4665_v5, %v2251_v63 }
 0x92c   : > { %v2273_v20 = vadd.f32 %v4673_v53, %v2262_v37 }
 0x92e   : > { %v2280_v57 = vpack.c.bf16 %v2273_v20, %v2272_v13 }
 0x930   : > { %3253 = vmatmul.msk.bf16.vlgmr.msra.gmra.mxu1 %vm732_vm1, %v2280_v57 }
 0x944   : > { %v2138_v47 = vpop.xlane.xlu2 %2137 }
 0x945   : > { %v2156_v8 = vmul.f32 %v2138_v47, %v3933_v32 }
 0x947   : > { %v2164_v11 = vadd.f32 1e-05, %v2156_v8 }
 0x949   : > { %3632 = vrsqrt.f32 %v2164_v11  ;;  %vm2196_vm8 = vweird.f32 %v2164_v11 }
 0x94c   : > { %v2141_v21 = vpop.xlane.xlu1 %2140 }
 0x94d   : > { %v2157_v25 = vmul.f32 %v2141_v21, %v3933_v32 }
 0x94f   : > { %v3633_v31 = vpop.eup %3632  ;;  %v2165_v39 = vadd.f32 1e-05, %v2157_v25 }
 0x950   : > { %v2191_v10 = vmul.f32 %v3633_v31, %v2164_v11  ;;  %vm2197_vm7 = vweird.f32 %v3633_v31 }
 0x951   : > { %3634 = vrsqrt.f32 %v2165_v39  ;;  %vm2198_vm9 = vmor %vm2196_vm8, %vm2197_vm7  ;;  %vm2206_vm11 = vweird.f32 %v2165_v39 }
 0x952   : > { %v2192_v33 = vmul.f32 %v3633_v31, %v2191_v10 }
 0x954   : > { %v2193_v35 = vmul.f32 0.5, %v2192_v33  ;;  %v2144_v40 = vpop.xlane.xlu0 %2143 }
 0x955   : > { %v2158_v4 = vmul.f32 %v2144_v40, %v3933_v32 }
 0x956   : > { %v2194_v54 = vsub.f32 1.5, %v2193_v35 }
 0x957   : > { %v3635_v15 = vpop.eup %3634  ;;  %v2166_v51 = vadd.f32 1e-05, %v2158_v4 }
 0x958   : > { %v2195_v41 = vmul.f32 %v3633_v31, %v2194_v54  ;;  %v2201_v9 = vmul.f32 %v3635_v15, %v2165_v39  ;;  %vm2207_vm10 = vweird.f32 %v3635_v15 }
 0x959   : > { %3636 = vrsqrt.f32 %v2166_v51  ;;  %vm2208_vm12 = vmor %vm2206_vm11, %vm2207_vm10  ;;  %vm2216_vm14 = vweird.f32 %v2166_v51 }
 0x95a   : > { %v2202_v12 = vmul.f32 %v3635_v15, %v2201_v9  ;;  %v2199_v24 = vsel %vm2198_vm9, %v3633_v31, %v2195_v41 }
 0x95b   : > { %v2252_v45 = vmul.f32 %v2199_v24, %v4621_v27 }
 0x95c   : > { %v2203_v6 = vmul.f32 0.5, %v2202_v12  ;;  %v2147_v42 = vpop.xlane.xlu2 %2146 }
 0x95d   : > { %v2159_v60 = vmul.f32 %v2147_v42, %v3933_v32  ;;  %v2263_v3 = vmul.f32 %v4665_v5, %v2252_v45 }
 0x95e   : > { %v2204_v0 = vsub.f32 1.5, %v2203_v6 }
 0x95f   : > { %v3637_v49 = vpop.eup %3636  ;;  %v2167_v52 = vadd.f32 1e-05, %v2159_v60  ;;  %v2274_v17 = vadd.f32 %v4673_v53, %v2263_v3 }
 0x960   : > { %v2205_v44 = vmul.f32 %v3635_v15, %v2204_v0  ;;  %v2211_v48 = vmul.f32 %v3637_v49, %v2166_v51  ;;  %vm2217_vm13 = vweird.f32 %v3637_v49  ;;  %v3320_v0 = vld [vmem:[%s3905_s27 + $0x38] sm:$0xff] }
 0x961   : > { %3638 = vrsqrt.f32 %v2167_v52  ;;  %vm2218_vm15 = vmor %vm2216_vm14, %vm2217_vm13  ;;  %vm2226_vm2 = vweird.f32 %v2167_v52  ;;  %2769 = vmatpush.bf16.msra.mxu3 %v3320_v0 }
 0x962   : > { %v2209_v58 = vsel %vm2208_vm12, %v3635_v15, %v2205_v44  ;;  %v2212_v46 = vmul.f32 %v3637_v49, %v2211_v48 }
 0x963   : > { %v2253_v30 = vmul.f32 %v2209_v58, %v4627_v50 }
 0x964   : > { %v2213_v34 = vmul.f32 0.5, %v2212_v46  ;;  %v2150_v56 = vpop.xlane.xlu1 %2149  ;;  %v3318_v46 = vld [vmem:[%s3905_s27 + $0x28] sm:$0xff] }
 0x965   : > { %v2264_v61 = vmul.f32 %v4665_v5, %v2253_v30  ;;  %v2160_v63 = vmul.f32 %v2150_v56, %v3933_v32 }
 0x966   : > { %v2214_v38 = vsub.f32 1.5, %v2213_v34 }
 0x967   : > { %v3639_v14 = vpop.eup %3638  ;;  %v2275_v27 = vadd.f32 %v4673_v53, %v2264_v61  ;;  %v2168_v57 = vadd.f32 1e-05, %v2160_v63 }
 0x968   : > { %v2215_v28 = vmul.f32 %v3637_v49, %v2214_v38  ;;  %v2221_v7 = vmul.f32 %v3639_v14, %v2167_v52  ;;  %vm2227_vm0 = vweird.f32 %v3639_v14  ;;  %v3317_v38 = vld [vmem:[%s3905_s27 + $0x20] sm:$0xff] }
 0x969   : > { %v2281_v23 = vpack.c.bf16 %v2275_v27, %v2274_v17  ;;  %vm2228_vm3 = vmor %vm2226_vm2, %vm2227_vm0  ;;  %3640 = vrsqrt.f32 %v2168_v57  ;;  %vm2236_vm5 = vweird.f32 %v2168_v57 }
 0x96a   : > { %v2222_v2 = vmul.f32 %v3639_v14, %v2221_v7  ;;  %v2219_v50 = vsel %vm2218_vm15, %v3637_v49, %v2215_v28  ;;  %v3319_v49 = vld [vmem:[%s3905_s27 + $0x30] sm:$0xff] }
 0x96b   : > { %3254 = vmatmul.msk.bf16.gmra.mxu1 %vm732_vm1, %v2281_v23  ;;  %v2254_v62 = vmul.f32 %v2219_v50, %v4633_v43  ;;  %2770 = vmatpush.bf16.msra.mxu3 %v3319_v49  ;;  %v3316_v23 = vld [vmem:[%s3905_s27 + $0x18] sm:$0xff] }
 0x96c   : > { %v2223_v19 = vmul.f32 0.5, %v2222_v2 }
 0x96d   : > { %v2265_v59 = vmul.f32 %v4665_v5, %v2254_v62 }
 0x96e   : > { %v2224_v55 = vsub.f32 1.5, %v2223_v19 }
 0x96f   : > { %v2276_v37 = vadd.f32 %v4673_v53, %v2265_v59  ;;  %v3641_v43 = vpop.eup %3640  ;;  %2771 = vmatpush.bf16.msra.mxu3 %v3318_v46 }
 0x970   : > { %v2225_v26 = vmul.f32 %v3639_v14, %v2224_v55  ;;  %v2231_v47 = vmul.f32 %v3641_v43, %v2168_v57  ;;  %vm2237_vm4 = vweird.f32 %v3641_v43  ;;  %v3314_v57 = vld [vmem:[%s3905_s27 + $0x8] sm:$0xff] }
 0x971   : > { %vm2238_vm6 = vmor %vm2236_vm5, %vm2237_vm4 }
 0x972   : > { %v2229_v16 = vsel %vm2228_vm3, %v3639_v14, %v2225_v26  ;;  %v2232_v8 = vmul.f32 %v3641_v43, %v2231_v47 }
 0x973   : > { %v2255_v22 = vmul.f32 %v2229_v16, %v4639_v36  ;;  %2772 = vmatpush.bf16.msra.mxu3 %v3317_v38 }
 0x974   : > { %v2233_v25 = vmul.f32 0.5, %v2232_v8 }
 0x975   : > { %v2266_v18 = vmul.f32 %v4665_v5, %v2255_v22  ;;  %v3315_v22 = vld [vmem:[%s3905_s27 + $0x10] sm:$0xff] }
 0x976   : > { %v2234_v31 = vsub.f32 1.5, %v2233_v25 }
 0x977   : > { %v2277_v13 = vadd.f32 %v4673_v53, %v2266_v18  ;;  %2773 = vmatpush.bf16.msra.mxu3 %v3316_v23 }
 0x978   : > { %v2235_v10 = vmul.f32 %v3641_v43, %v2234_v31 }
 0x979   : > { %v2282_v20 = vpack.c.bf16 %v2277_v13, %v2276_v37 }
 0x97a   : > { %v2239_v40 = vsel %vm2238_vm6, %v3641_v43, %v2235_v10 }
 0x97b   : > { %3255 = vmatmul.msk.bf16.gmra.mxu1 %vm732_vm1, %v2282_v20  ;;  %v2256_v15 = vmul.f32 %v2239_v40, %v4645_v29  ;;  %v4712_v29 = vld [vmem:[%s673_s13] ss:$0 sm:$0xff]  ;;  %2774 = vmatpush.bf16.msra.mxu3 %v3315_v22 }
 0x97d   : > { %v2267_v9 = vmul.f32 %v4665_v5, %v2256_v15 }
 0x97f   : > { %v2278_v24 = vadd.f32 %v4673_v53, %v2267_v9  ;;  %2775 = vmatpush.bf16.msra.mxu3 %v3314_v57 }
 0x98c   : > { %v2153_v36 = vpop.xlane.xlu0 %2152 }
 0x98d   : > { %v2161_v11 = vmul.f32 %v2153_v36, %v3933_v32 }
 0x98f   : > { %v2169_v21 = vadd.f32 1e-05, %v2161_v11 }
 0x991   : > { %3642 = vrsqrt.f32 %v2169_v21  ;;  %vm2246_vm8 = vweird.f32 %v2169_v21 }
 0x997   : > { %v3643_v39 = vpop.eup %3642 }
 0x998   : > { %v2241_v33 = vmul.f32 %v3643_v39, %v2169_v21  ;;  %vm2247_vm7 = vweird.f32 %v3643_v39  ;;  %v3313_v21 = vld [vmem:[%s3905_s27] sm:$0xff] }
 0x999   : > { %vm2248_vm9 = vmor %vm2246_vm8, %vm2247_vm7  ;;  %2776 = vmatpush.bf16.msra.mxu3 %v3313_v21 }
 0x99a   : > { %v2242_v35 = vmul.f32 %v3643_v39, %v2241_v33 }
 0x99c   : > { %v2243_v4 = vmul.f32 0.5, %v2242_v35 }
 0x99e   : > { %v2244_v54 = vsub.f32 1.5, %v2243_v4 }
 0x9a0   : > { %v2245_v32 = vmul.f32 %v3643_v39, %v2244_v54 }
 0x9a2   : > { %v2249_v51 = vsel %vm2248_vm9, %v3643_v39, %v2245_v32 }
 0x9a3   : > { %v2257_v41 = vmul.f32 %v2249_v51, %v4655_v1 }
 0x9a5   : > { %v2268_v12 = vmul.f32 %v4665_v5, %v2257_v41 }
 0x9a7   : > { %v2279_v6 = vadd.f32 %v4673_v53, %v2268_v12 }
 0x9a9   : > { %v2283_v42 = vpack.c.bf16 %v2279_v6, %v2278_v24 }
 0x9ab   : > { %3256 = vmatmul.msk.bf16.gmra.mxu1 %vm732_vm1, %v2283_v42 }
 0x9ad   : > { %v2325_v60 = vpop.f32.mrf.mxu1 }
 0x9ae   : > { %v4716_v1 = vadd.f32 %v4712_v29, %v2325_v60 }
 0x9b0   : > { %v4720_v5 = vmul.f32 0.70710677, %v4716_v1 }
 0x9b2   : > { %v2361_v53 = vmul.f32 %v4720_v5, %v4720_v5 }
 0x9b4   : > { %v2362_v45 = vmin.f32 %v2361_v53, 16.0 }
 0x9b5   : > { %v2327_v52 = vpop.f32.mrf.mxu1 }
 0x9b6   : > { %v2363_v44 = vmul.f32 2.1237322e-06, %v2362_v45  ;;  %v2374_v48 = vmul.f32 3.8918573e-05, %v2362_v45  ;;  %v4726_v58 = vadd.f32 %v4712_v29, %v2327_v52 }
 0x9b8   : > { %v2364_v30 = vadd.f32 0.00028619796, %v2363_v44  ;;  %v2375_v3 = vadd.f32 0.001143296, %v2374_v48  ;;  %v4730_v34 = vmul.f32 0.70710677, %v4726_v58 }
 0x9ba   : > { %v2376_v61 = vmul.f32 %v2375_v3, %v2362_v45  ;;  %v2401_v14 = vmul.f32 %v4730_v34, %v4730_v34  ;;  %v2365_v17 = vmul.f32 %v2364_v30, %v2362_v45 }
 0x9bc   : > { %v2377_v27 = vadd.f32 0.014752088, %v2376_v61  ;;  %v2402_v28 = vmin.f32 %v2401_v14, 16.0  ;;  %v2366_v19 = vadd.f32 0.0036580483, %v2365_v17 }
 0x9be   : > { %v2378_v7 = vmul.f32 %v2377_v27, %v2362_v45  ;;  %v2403_v2 = vmul.f32 2.1237322e-06, %v2402_v28  ;;  %v2414_v50 = vmul.f32 3.8918573e-05, %v2402_v28  ;;  %v2367_v18 = vmul.f32 %v2366_v19, %v2362_v45 }
 0x9bf   : > { %v2345_v19 = vmul.f32 0.5, %v4716_v1 }
 0x9c0   : > { %v2379_v55 = vadd.f32 0.112945676, %v2378_v7  ;;  %v2404_v62 = vadd.f32 0.00028619796, %v2403_v2  ;;  %v2415_v26 = vadd.f32 0.001143296, %v2414_v50 }
 0x9c1   : > { %v2368_v47 = vadd.f32 0.05243302, %v2367_v18 }
 0x9c2   : > { %v2380_v16 = vmul.f32 %v2379_v55, %v2362_v45  ;;  %v2405_v59 = vmul.f32 %v2404_v62, %v2402_v28  ;;  %v2416_v56 = vmul.f32 %v2415_v26, %v2402_v28  ;;  %v2346_v55 = vmul.f32 0.5, %v4726_v58 }
 0x9c3   : > { %v2369_v31 = vmul.f32 %v2368_v47, %v2362_v45 }
 0x9c4   : > { %v2381_v63 = vadd.f32 0.4994258, %v2380_v16  ;;  %v2406_v37 = vadd.f32 0.0036580483, %v2405_v59  ;;  %v2417_v13 = vadd.f32 0.014752088, %v2416_v56 }
 0x9c5   : > { %v2370_v40 = vadd.f32 0.18741608, %v2369_v31 }
 0x9c6   : > { %v2382_v20 = vmul.f32 %v2381_v63, %v2362_v45  ;;  %v2418_v43 = vmul.f32 %v2417_v13, %v2402_v28  ;;  %v2407_v36 = vmul.f32 %v2406_v37, %v2402_v28 }
 0x9c7   : > { %v2371_v51 = vmul.f32 %v2370_v40, %v2362_v45 }
 0x9c8   : > { %v2383_v8 = vadd.f32 1.0, %v2382_v20  ;;  %v2419_v11 = vadd.f32 0.112945676, %v2418_v43  ;;  %v2408_v39 = vadd.f32 0.05243302, %v2407_v36 }
 0x9c9   : > { %v2372_v42 = vadd.f32 1.1283791, %v2371_v51 }
 0x9ca   : > { %3644 = vrcp.f32 %v2383_v8  ;;  %v2420_v25 = vmul.f32 %v2419_v11, %v2402_v28  ;;  %v2409_v54 = vmul.f32 %v2408_v39, %v2402_v28  ;;  %v2395_v9 = vand.u32 2147483648, %v2383_v8 }
 0x9cb   : > { %v2393_v24 = vand.u32 2147483647, %v2383_v8  ;;  %vm2389_vm11 = vweird.f32 %v2383_v8  ;;  %v2373_v48 = vmul.f32 %v2372_v42, %v4720_v5 }
 0x9cc   : > { %v2421_v10 = vadd.f32 0.4994258, %v2420_v25  ;;  %v2410_v12 = vadd.f32 0.18741608, %v2409_v54  ;;  %v2396_v53 = vor.u32 1.1754944e-38, %v2395_v9 }
 0x9cd   : > { %vm2394_vm13 = vcmp.eq.f32.partialorder %v2393_v24, 8.507059e+37 }
 0x9ce   : > { %v2422_v33 = vmul.f32 %v2421_v10, %v2402_v28  ;;  %v2411_v49 = vmul.f32 %v2410_v12, %v2402_v28 }
 0x9d0   : > { %v3645_v35 = vpop.eup %3644  ;;  %v2423_v15 = vadd.f32 1.0, %v2422_v33  ;;  %v2412_v45 = vadd.f32 1.1283791, %v2411_v49 }
 0x9d1   : > { %v2385_v4 = vmul.f32 %v3645_v35, %v2383_v8  ;;  %vm2390_vm10 = vweird.f32 %v3645_v35 }
 0x9d2   : > { %3646 = vrcp.f32 %v2423_v15  ;;  %vm2391_vm12 = vmor %vm2389_vm11, %vm2390_vm10  ;;  %v2435_v30 = vand.u32 2147483648, %v2423_v15  ;;  %v2433_v38 = vand.u32 2147483647, %v2423_v15  ;;  %vm2429_vm15 = vweird.f32 %v2423_v15 }
 0x9d3   : > { %v2386_v32 = vsub.f32 1.0, %v2385_v4  ;;  %v2413_v7 = vmul.f32 %v2412_v45, %v4730_v34 }
 0x9d4   : > { %v2436_v17 = vor.u32 1.1754944e-38, %v2435_v30  ;;  %vm2434_vm2 = vcmp.eq.f32.partialorder %v2433_v38, 8.507059e+37 }
 0x9d5   : > { %v2387_v41 = vmul.f32 %v3645_v35, %v2386_v32 }
 0x9d7   : > { %v2388_v6 = vadd.f32 %v3645_v35, %v2387_v41 }
 0x9d8   : > { %v3647_v60 = vpop.eup %3646 }
 0x9d9   : > { %v2392_v0 = vsel %vm2391_vm12, %v3645_v35, %v2388_v6  ;;  %v2425_v52 = vmul.f32 %v3647_v60, %v2423_v15  ;;  %vm2430_vm14 = vweird.f32 %v3647_v60 }
 0x9da   : > { %v2397_v44 = vsel %vm2394_vm13, %v2396_v53, %v2392_v0  ;;  %vm2431_vm0 = vmor %vm2429_vm15, %vm2430_vm14 }
 0x9db   : > { %v2426_v46 = vsub.f32 1.0, %v2425_v52  ;;  %v2398_v3 = vmul.f32 %v2397_v44, %v2373_v48 }
 0x9dd   : > { %v2427_v61 = vmul.f32 %v3647_v60, %v2426_v46  ;;  %v3257_v27 = vclamps-f32 %v2398_v3, 1.0 }
 0x9df   : > { %v2428_v14 = vadd.f32 %v3647_v60, %v2427_v61  ;;  %v2681_v50 = vadd.f32 1.0, %v3257_v27 }
 0x9e1   : > { %v2432_v28 = vsel %vm2431_vm0, %v3647_v60, %v2428_v14  ;;  %v2689_v22 = vmul.f32 %v2681_v50, %v2345_v19 }
 0x9e2   : > { %v2437_v23 = vsel %vm2434_vm2, %v2436_v17, %v2432_v28 }
 0x9e3   : > { %v2438_v2 = vmul.f32 %v2437_v23, %v2413_v7 }
 0x9e5   : > { %v3258_v5 = vclamps-f32 %v2438_v2, 1.0 }
 0x9e7   : > { %v2682_v62 = vadd.f32 1.0, %v3258_v5 }
 0x9e8   : > { %v2330_v26 = vpop.f32.mrf.mxu1 }
 0x9e9   : > { %v4744_v16 = vadd.f32 %v4712_v29, %v2330_v26  ;;  %v2690_v59 = vmul.f32 %v2682_v62, %v2346_v55 }
 0x9eb   : > { %v4747_v56 = vmul.f32 0.70710677, %v4744_v16  ;;  %v2697_v34 = vpack.c.bf16 %v2690_v59, %v2689_v22 }
 0x9ed   : > { %v2441_v18 = vmul.f32 %v4747_v56, %v4747_v56  ;;  %2777 = vmatmul.bf16.vlgmr.msra.gmra.mxu3 %v2697_v34 }
 0x9ef   : > { %v4751_v63 = vmin.f32 %v2441_v18, 16.0 }
 0x9f0   : > { %v2332_v1 = vpop.f32.mrf.mxu1 }
 0x9f1   : > { %v2443_v58 = vmul.f32 2.1237322e-06, %v4751_v63  ;;  %v4755_v37 = vadd.f32 %v4712_v29, %v2332_v1  ;;  %v2454_v13 = vmul.f32 3.8918573e-05, %v4751_v63 }
 0x9f3   : > { %v2444_v20 = vadd.f32 0.00028619796, %v2443_v58  ;;  %v4759_v57 = vmul.f32 0.70710677, %v4755_v37  ;;  %v2455_v43 = vadd.f32 0.001143296, %v2454_v13 }
 0x9f5   : > { %v2481_v47 = vmul.f32 %v4759_v57, %v4759_v57  ;;  %v2456_v8 = vmul.f32 %v2455_v43, %v4751_v63  ;;  %v2445_v36 = vmul.f32 %v2444_v20, %v4751_v63 }
 0x9f7   : > { %v4765_v11 = vmin.f32 %v2481_v47, 16.0  ;;  %v2457_v25 = vadd.f32 0.014752088, %v2456_v8  ;;  %v2446_v35 = vadd.f32 0.0036580483, %v2445_v36 }
 0x9f8   : > { %v2335_v21 = vpop.f32.mrf.mxu1 }
 0x9f9   : > { %v2483_v31 = vmul.f32 2.1237322e-06, %v4765_v11  ;;  %v4769_v39 = vadd.f32 %v4712_v29, %v2335_v21  ;;  %v2494_v10 = vmul.f32 3.8918573e-05, %v4765_v11  ;;  %v2458_v33 = vmul.f32 %v2457_v25, %v4751_v63 }
 0x9fa   : > { %v2447_v12 = vmul.f32 %v2446_v35, %v4751_v63 }
 0x9fb   : > { %v2484_v40 = vadd.f32 0.00028619796, %v2483_v31  ;;  %v4774_v4 = vmul.f32 0.70710677, %v4769_v39  ;;  %v2459_v54 = vadd.f32 0.112945676, %v2458_v33 }
 0x9fc   : > { %v2495_v15 = vadd.f32 0.001143296, %v2494_v10  ;;  %v2448_v46 = vadd.f32 0.05243302, %v2447_v12 }
 0x9fd   : > { %v2485_v32 = vmul.f32 %v2484_v40, %v4765_v11  ;;  %v2521_v51 = vmul.f32 %v4774_v4, %v4774_v4  ;;  %v2460_v41 = vmul.f32 %v2459_v54, %v4751_v63 }
 0x9fe   : > { %v2496_v9 = vmul.f32 %v2495_v15, %v4765_v11  ;;  %v2449_v27 = vmul.f32 %v2448_v46, %v4751_v63 }
 0x9ff   : > { %v2486_v24 = vadd.f32 0.0036580483, %v2485_v32  ;;  %v4782_v6 = vmin.f32 %v2521_v51, 16.0  ;;  %v2461_v60 = vadd.f32 0.4994258, %v2460_v41 }
 0xa00   : > { %v2337_v42 = vpop.f32.mrf.mxu1  ;;  %v2497_v0 = vadd.f32 0.014752088, %v2496_v9  ;;  %v2450_v26 = vadd.f32 0.18741608, %v2449_v27 }
 0xa01   : > { %v4785_v53 = vadd.f32 %v4712_v29, %v2337_v42  ;;  %v2523_v49 = vmul.f32 2.1237322e-06, %v4782_v6  ;;  %v2462_v52 = vmul.f32 %v2461_v60, %v4751_v63  ;;  %v2534_v48 = vmul.f32 3.8918573e-05, %v4782_v6 }
 0xa02   : > { %v2498_v44 = vmul.f32 %v2497_v0, %v4765_v11  ;;  %v2487_v45 = vmul.f32 %v2486_v24, %v4765_v11  ;;  %v2451_v21 = vmul.f32 %v2450_v26, %v4751_v63 }
 0xa03   : > { %v2524_v30 = vadd.f32 0.00028619796, %v2523_v49  ;;  %v4793_v3 = vmul.f32 0.70710677, %v4785_v53  ;;  %v2463_v61 = vadd.f32 1.0, %v2462_v52 }
 0xa04   : > { %v2499_v38 = vadd.f32 0.112945676, %v2498_v44  ;;  %v2535_v14 = vadd.f32 0.001143296, %v2534_v48  ;;  %v2488_v7 = vadd.f32 0.05243302, %v2487_v45 }
 0xa05   : > { %v2561_v17 = vmul.f32 %v4793_v3, %v4793_v3  ;;  %3648 = vrcp.f32 %v2463_v61  ;;  %v2525_v23 = vmul.f32 %v2524_v30, %v4782_v6  ;;  %v2475_v33 = vand.u32 2147483648, %v2463_v61 }
 0xa06   : > { %v2500_v28 = vmul.f32 %v2499_v38, %v4765_v11  ;;  %v2536_v50 = vmul.f32 %v2535_v14, %v4782_v6  ;;  %v2489_v22 = vmul.f32 %v2488_v7, %v4765_v11  ;;  %v2473_v32 = vand.u32 2147483647, %v2463_v61 }
 0xa07   : > { %v4800_v2 = vmin.f32 %v2561_v17, 16.0  ;;  %v2526_v18 = vadd.f32 0.0036580483, %v2525_v23  ;;  %vm2469_vm4 = vweird.f32 %v2463_v61  ;;  %v2452_v12 = vadd.f32 1.1283791, %v2451_v21 }
 0xa08   : > { %v2501_v5 = vadd.f32 0.4994258, %v2500_v28  ;;  %v2537_v55 = vadd.f32 0.014752088, %v2536_v50  ;;  %v2490_v31 = vadd.f32 0.18741608, %v2489_v22 }
 0xa09   : > { %v2563_v19 = vmul.f32 2.1237322e-06, %v4800_v2  ;;  %v2574_v62 = vmul.f32 3.8918573e-05, %v4800_v2  ;;  %v2527_v10 = vmul.f32 %v2526_v18, %v4782_v6  ;;  %v2476_v52 = vor.u32 1.1754944e-38, %v2475_v33 }
 0xa0a   : > { %v2502_v59 = vmul.f32 %v2501_v5, %v4765_v11  ;;  %v2538_v58 = vmul.f32 %v2537_v55, %v4782_v6  ;;  %v2491_v63 = vmul.f32 %v2490_v31, %v4765_v11  ;;  %vm2474_vm6 = vcmp.eq.f32.partialorder %v2473_v32, 8.507059e+37 }
 0xa0b   : > { %v3649_v34 = vpop.eup %3648  ;;  %v2564_v1 = vadd.f32 0.00028619796, %v2563_v19  ;;  %v2575_v13 = vadd.f32 0.001143296, %v2574_v62  ;;  %v2528_v24 = vadd.f32 0.05243302, %v2527_v10 }
 0xa0c   : > { %v2465_v20 = vmul.f32 %v3649_v34, %v2463_v61  ;;  %v2503_v43 = vadd.f32 1.0, %v2502_v59  ;;  %v2539_v8 = vadd.f32 0.112945676, %v2538_v58  ;;  %vm2470_vm3 = vweird.f32 %v3649_v34 }
 0xa0d   : > { %v2565_v47 = vmul.f32 %v2564_v1, %v4800_v2  ;;  %v2576_v36 = vmul.f32 %v2575_v13, %v4800_v2  ;;  %vm2471_vm5 = vmor %vm2469_vm4, %vm2470_vm3  ;;  %v2453_v61 = vmul.f32 %v2452_v12, %v4747_v56  ;;  %v2492_v38 = vadd.f32 1.1283791, %v2491_v63 }
 0xa0e   : > { %v2466_v25 = vsub.f32 1.0, %v2465_v20  ;;  %3650 = vrcp.f32 %v2503_v43  ;;  %v2540_v35 = vmul.f32 %v2539_v8, %v4782_v6  ;;  %v2529_v11 = vmul.f32 %v2528_v24, %v4782_v6 }
 0xa0f   : > { %v2566_v40 = vadd.f32 0.0036580483, %v2565_v47  ;;  %v2577_v15 = vadd.f32 0.014752088, %v2576_v36  ;;  %v2513_v27 = vand.u32 2147483647, %v2503_v43  ;;  %vm2509_vm8 = vweird.f32 %v2503_v43 }
 0xa10   : > { %v2467_v54 = vmul.f32 %v3649_v34, %v2466_v25  ;;  %v2541_v51 = vadd.f32 0.4994258, %v2540_v35  ;;  %v2515_v7 = vand.u32 2147483648, %v2503_v43  ;;  %v2493_v55 = vmul.f32 %v2492_v38, %v4759_v57 }
 0xa11   : > { %v2578_v9 = vmul.f32 %v2577_v15, %v4800_v2  ;;  %v2567_v0 = vmul.f32 %v2566_v40, %v4800_v2  ;;  %v2530_v62 = vadd.f32 0.18741608, %v2529_v11  ;;  %vm2514_vm10 = vcmp.eq.f32.partialorder %v2513_v27, 8.507059e+37 }
 0xa12   : > { %v2468_v41 = vadd.f32 %v3649_v34, %v2467_v54  ;;  %v2542_v42 = vmul.f32 %v2541_v51, %v4782_v6  ;;  %v2516_v56 = vor.u32 1.1754944e-38, %v2515_v7  ;;  %v2347_v36 = vmul.f32 0.5, %v4744_v16 }
 0xa13   : > { %v2579_v44 = vadd.f32 0.112945676, %v2578_v9  ;;  %v2568_v17 = vadd.f32 0.05243302, %v2567_v0  ;;  %v2531_v20 = vmul.f32 %v2530_v62, %v4782_v6  ;;  %v2348_v21 = vmul.f32 0.5, %v4755_v37 }
 0xa14   : > { %v3651_v60 = vpop.eup %3650  ;;  %v2472_v49 = vsel %vm2471_vm5, %v3649_v34, %v2468_v41  ;;  %v2543_v45 = vadd.f32 1.0, %v2542_v42  ;;  %v2350_v62 = vmul.f32 0.5, %v4785_v53 }
 0xa15   : > { %v2505_v48 = vmul.f32 %v3651_v60, %v2503_v43  ;;  %v2477_v46 = vsel %vm2474_vm6, %v2476_v52, %v2472_v49  ;;  %v2580_v30 = vmul.f32 %v2579_v44, %v4800_v2  ;;  %vm2510_vm7 = vweird.f32 %v3651_v60 }
 0xa16   : > { %3652 = vrcp.f32 %v2543_v45  ;;  %v2478_v28 = vmul.f32 %v2477_v46, %v2453_v61  ;;  %vm2511_vm9 = vmor %vm2509_vm8, %vm2510_vm7  ;;  %v2569_v26 = vmul.f32 %v2568_v17, %v4800_v2  ;;  %v2555_v25 = vand.u32 2147483648, %v2543_v45 }
 0xa17   : > { %v2506_v14 = vsub.f32 1.0, %v2505_v48  ;;  %v2581_v50 = vadd.f32 0.4994258, %v2580_v30  ;;  %v2553_v33 = vand.u32 2147483647, %v2543_v45  ;;  %vm2549_vm12 = vweird.f32 %v2543_v45 }
 0xa18   : > { %v3259_v22 = vclamps-f32 %v2478_v28, 1.0  ;;  %v2570_v43 = vadd.f32 0.18741608, %v2569_v26  ;;  %v2532_v35 = vadd.f32 1.1283791, %v2531_v20  ;;  %v2556_v51 = vor.u32 1.1754944e-38, %v2555_v25 }
 0xa19   : > { %v2507_v23 = vmul.f32 %v3651_v60, %v2506_v14  ;;  %v2582_v19 = vmul.f32 %v2581_v50, %v4800_v2  ;;  %vm2554_vm14 = vcmp.eq.f32.partialorder %v2553_v33, 8.507059e+37 }
 0xa1a   : > { %v2683_v8 = vadd.f32 1.0, %v3259_v22  ;;  %v2571_v54 = vmul.f32 %v2570_v43, %v4800_v2  ;;  %v2533_v37 = vmul.f32 %v2532_v35, %v4774_v4 }
 0xa1b   : > { %v2508_v5 = vadd.f32 %v3651_v60, %v2507_v23  ;;  %v2583_v34 = vadd.f32 1.0, %v2582_v19 }
 0xa1c   : > { %v3653_v18 = vpop.eup %3652  ;;  %v2691_v15 = vmul.f32 %v2683_v8, %v2347_v36 }
 0xa1d   : > { %v2512_v59 = vsel %vm2511_vm9, %v3651_v60, %v2508_v5  ;;  %v2545_v13 = vmul.f32 %v3653_v18, %v2543_v45  ;;  %3654 = vrcp.f32 %v2583_v34  ;;  %vm2550_vm11 = vweird.f32 %v3653_v18 }
 0xa1e   : > { %v2517_v1 = vsel %vm2514_vm10, %v2516_v56, %v2512_v59  ;;  %vm2551_vm13 = vmor %vm2549_vm12, %vm2550_vm11  ;;  %v2572_v60 = vadd.f32 1.1283791, %v2571_v54  ;;  %v2593_v2 = vand.u32 2147483647, %v2583_v34  ;;  %v2595_v0 = vand.u32 2147483648, %v2583_v34 }
 0xa1f   : > { %v2518_v58 = vmul.f32 %v2517_v1, %v2493_v55  ;;  %v2546_v57 = vsub.f32 1.0, %v2545_v13  ;;  %vm2589_vm0 = vweird.f32 %v2583_v34  ;;  %v2349_v55 = vmul.f32 0.5, %v4769_v39 }
 0xa20   : > { %v2573_v4 = vmul.f32 %v2572_v60, %v4793_v3  ;;  %v2596_v45 = vor.u32 1.1754944e-38, %v2595_v0  ;;  %vm2594_vm3 = vcmp.eq.f32.partialorder %v2593_v2, 8.507059e+37 }
 0xa21   : > { %v3260_v47 = vclamps-f32 %v2518_v58, 1.0  ;;  %v2547_v10 = vmul.f32 %v3653_v18, %v2546_v57 }
 0xa23   : > { %v2684_v31 = vadd.f32 1.0, %v3260_v47  ;;  %v3655_v40 = vpop.eup %3654  ;;  %v2548_v32 = vadd.f32 %v3653_v18, %v2547_v10 }
 0xa24   : > { %v2585_v41 = vmul.f32 %v3655_v40, %v2583_v34  ;;  %vm2590_vm15 = vweird.f32 %v3655_v40 }
 0xa25   : > { %v2692_v6 = vmul.f32 %v2684_v31, %v2348_v21  ;;  %v2552_v12 = vsel %vm2551_vm13, %v3653_v18, %v2548_v32  ;;  %vm2591_vm2 = vmor %vm2589_vm0, %vm2590_vm15 }
 0xa26   : > { %v2557_v24 = vsel %vm2554_vm14, %v2556_v51, %v2552_v12  ;;  %v2586_v42 = vsub.f32 1.0, %v2585_v41 }
 0xa27   : > { %v2698_v16 = vpack.c.bf16 %v2692_v6, %v2691_v15  ;;  %v2558_v52 = vmul.f32 %v2557_v24, %v2533_v37 }
 0xa28   : > { %v2340_v9 = vpop.f32.mrf.mxu1  ;;  %v2587_v44 = vmul.f32 %v3655_v40, %v2586_v42 }
 0xa29   : > { %v4829_v63 = vadd.f32 %v4712_v29, %v2340_v9  ;;  %2782 = vmatmul.bf16.gmra.mxu3 %v2698_v16  ;;  %v3261_v61 = vclamps-f32 %v2558_v52, 1.0 }
 0xa2a   : > { %v2588_v46 = vadd.f32 %v3655_v40, %v2587_v44 }
 0xa2b   : > { %v4832_v49 = vmul.f32 0.70710677, %v4829_v63  ;;  %v2685_v3 = vadd.f32 1.0, %v3261_v61 }
 0xa2c   : > { %v2592_v38 = vsel %vm2591_vm2, %v3655_v40, %v2588_v46 }
 0xa2d   : > { %v2601_v48 = vmul.f32 %v4832_v49, %v4832_v49  ;;  %v2597_v14 = vsel %vm2594_vm3, %v2596_v45, %v2592_v38  ;;  %v2693_v34 = vmul.f32 %v2685_v3, %v2349_v55 }
 0xa2e   : > { %v2598_v7 = vmul.f32 %v2597_v14, %v2573_v4 }
 0xa2f   : > { %v2602_v30 = vmin.f32 %v2601_v48, 16.0 }
 0xa30   : > { %v2342_v11 = vpop.f32.mrf.mxu1  ;;  %v3262_v5 = vclamps-f32 %v2598_v7, 1.0 }
 0xa31   : > { %v2603_v17 = vmul.f32 2.1237322e-06, %v2602_v30  ;;  %v4838_v27 = vadd.f32 %v4712_v29, %v2342_v11  ;;  %v2614_v28 = vmul.f32 3.8918573e-05, %v2602_v30 }
 0xa32   : > { %v2686_v26 = vadd.f32 1.0, %v3262_v5 }
 0xa33   : > { %v2604_v23 = vadd.f32 0.00028619796, %v2603_v17  ;;  %v4841_v50 = vmul.f32 0.70710677, %v4838_v27  ;;  %v2615_v19 = vadd.f32 0.001143296, %v2614_v28 }
 0xa34   : > { %v2694_v18 = vmul.f32 %v2686_v26, %v2350_v62 }
 0xa35   : > { %v2641_v56 = vmul.f32 %v4841_v50, %v4841_v50  ;;  %v2605_v22 = vmul.f32 %v2604_v23, %v2602_v30  ;;  %v2616_v29 = vmul.f32 %v2615_v19, %v2602_v30 }
 0xa36   : > { %v2699_v13 = vpack.c.bf16 %v2694_v18, %v2693_v34 }
 0xa37   : > { %v2642_v59 = vmin.f32 %v2641_v56, 16.0  ;;  %v2617_v1 = vadd.f32 0.014752088, %v2616_v29  ;;  %v2606_v43 = vadd.f32 0.0036580483, %v2605_v22 }
 0xa39   : > { %v2643_v58 = vmul.f32 2.1237322e-06, %v2642_v59  ;;  %v2654_v20 = vmul.f32 3.8918573e-05, %v2642_v59  ;;  %v2618_v47 = vmul.f32 %v2617_v1, %v2602_v30  ;;  %2787 = vmatmul.bf16.gmra.mxu3 %v2699_v13  ;;  %v2607_v21 = vmul.f32 %v2606_v43, %v2602_v30 }
 0xa3a   : > { %v2352_v13 = vmul.f32 0.5, %v4838_v27 }
 0xa3b   : > { %v2644_v8 = vadd.f32 0.00028619796, %v2643_v58  ;;  %v2655_v39 = vadd.f32 0.001143296, %v2654_v20  ;;  %v2619_v57 = vadd.f32 0.112945676, %v2618_v47 }
 0xa3c   : > { %v2608_v40 = vadd.f32 0.05243302, %v2607_v21  ;;  %v2351_v58 = vmul.f32 0.5, %v4829_v63  ;;  %v3661_v21 = vld [vmem:[#allocation2 + $0x8] sm:$0xff] }
 0xa3d   : > { %v2645_v53 = vmul.f32 %v2644_v8, %v2642_v59  ;;  %v2656_v36 = vmul.f32 %v2655_v39, %v2642_v59  ;;  %v2620_v25 = vmul.f32 %v2619_v57, %v2602_v30 }
 0xa3e   : > { %v2609_v41 = vmul.f32 %v2608_v40, %v2602_v30 }
 0xa3f   : > { %v2646_v31 = vadd.f32 0.0036580483, %v2645_v53  ;;  %v2657_v10 = vadd.f32 0.014752088, %v2656_v36  ;;  %v2621_v33 = vadd.f32 0.4994258, %v2620_v25 }
 0xa40   : > { %v2610_v37 = vadd.f32 0.18741608, %v2609_v41  ;;  %v3660_v53 = vld [vmem:[#allocation2] sm:$0xff] }
 0xa41   : > { %v2658_v35 = vmul.f32 %v2657_v10, %v2642_v59  ;;  %v2622_v54 = vmul.f32 %v2621_v33, %v2602_v30  ;;  %v2647_v15 = vmul.f32 %v2646_v31, %v2642_v59  ;;  %v3662_v33 = vld [vmem:[#allocation2 + $0x10] sm:$0xff]  ;;  %v3664_v41 = vld [vmem:[#allocation2 + $0x20] sm:$0xff] }
 0xa42   : > { %v2611_v0 = vmul.f32 %v2610_v37, %v2602_v30  ;;  %v3665_v37 = vld [vmem:[#allocation2 + $0x28] sm:$0xff] }
 0xa43   : > { %v2659_v6 = vadd.f32 0.112945676, %v2658_v35  ;;  %v2623_v32 = vadd.f32 1.0, %v2622_v54  ;;  %v2648_v9 = vadd.f32 0.05243302, %v2647_v15  ;;  %v3663_v15 = vld [vmem:[#allocation2 + $0x18] sm:$0xff] }
 0xa44   : > { %v2612_v45 = vadd.f32 1.1283791, %v2611_v0 }
 0xa45   : > { %v2660_v51 = vmul.f32 %v2659_v6, %v2642_v59  ;;  %3656 = vrcp.f32 %v2623_v32  ;;  %v2649_v24 = vmul.f32 %v2648_v9, %v2642_v59  ;;  %v2635_v48 = vand.u32 2147483648, %v2623_v32 }
 0xa46   : > { %v2633_v4 = vand.u32 2147483647, %v2623_v32  ;;  %vm2629_vm5 = vweird.f32 %v2623_v32  ;;  %v2613_v28 = vmul.f32 %v2612_v45, %v4832_v49 }
 0xa47   : > { %v2661_v16 = vadd.f32 0.4994258, %v2660_v51  ;;  %v2650_v52 = vadd.f32 0.18741608, %v2649_v24  ;;  %v2636_v14 = vor.u32 1.1754944e-38, %v2635_v48  ;;  %v3667_v48 = vld [vmem:[#allocation2 + $0x38] sm:$0xff] }
 0xa48   : > { %vm2634_vm7 = vcmp.eq.f32.partialorder %v2633_v4, 8.507059e+37 }
 0xa49   : > { %v2662_v12 = vmul.f32 %v2661_v16, %v2642_v59  ;;  %v2651_v38 = vmul.f32 %v2650_v52, %v2642_v59 }
 0xa4b   : > { %v2663_v42 = vadd.f32 1.0, %v2662_v12  ;;  %v3657_v60 = vpop.eup %3656  ;;  %v2652_v5 = vadd.f32 1.1283791, %v2651_v38 }
 0xa4c   : > { %v2625_v2 = vmul.f32 %v3657_v60, %v2623_v32  ;;  %vm2630_vm4 = vweird.f32 %v3657_v60 }
 0xa4d   : > { %3658 = vrcp.f32 %v2663_v42  ;;  %vm2631_vm6 = vmor %vm2629_vm5, %vm2630_vm4  ;;  %v2675_v3 = vand.u32 2147483648, %v2663_v42  ;;  %v2673_v62 = vand.u32 2147483647, %v2663_v42  ;;  %vm2669_vm9 = vweird.f32 %v2663_v42 }
 0xa4e   : > { %v2626_v44 = vsub.f32 1.0, %v2625_v2  ;;  %v2653_v22 = vmul.f32 %v2652_v5, %v4841_v50  ;;  %v3481_v50 = vld [vmem:[%s681_s19] ss:$0 sm:$0xff]  ;;  %v3666_v2 = vld [vmem:[#allocation2 + $0x30] sm:$0xff] }
 0xa4f   : > { %v2676_v26 = vor.u32 1.1754944e-38, %v2675_v3  ;;  %vm2674_vm11 = vcmp.eq.f32.partialorder %v2673_v62, 8.507059e+37 }
 0xa50   : > { %v2627_v46 = vmul.f32 %v3657_v60, %v2626_v44 }
 0xa52   : > { %v2628_v11 = vadd.f32 %v3657_v60, %v2627_v46 }
 0xa53   : > { %v3659_v61 = vpop.eup %3658 }
 0xa54   : > { %v2665_v17 = vmul.f32 %v3659_v61, %v2663_v42  ;;  %v2632_v7 = vsel %vm2631_vm6, %v3657_v60, %v2628_v11  ;;  %vm2670_vm8 = vweird.f32 %v3659_v61 }
 0xa55   : > { %v2637_v23 = vsel %vm2634_vm7, %v2636_v14, %v2632_v7  ;;  %vm2671_vm10 = vmor %vm2669_vm9, %vm2670_vm8 }
 0xa56   : > { %v2666_v30 = vsub.f32 1.0, %v2665_v17  ;;  %v2638_v19 = vmul.f32 %v2637_v23, %v2613_v28 }
 0xa58   : > { %v2667_v55 = vmul.f32 %v3659_v61, %v2666_v30  ;;  %v3263_v29 = vclamps-f32 %v2638_v19, 1.0 }
 0xa5a   : > { %v2668_v56 = vadd.f32 %v3659_v61, %v2667_v55  ;;  %v2687_v1 = vadd.f32 1.0, %v3263_v29 }
 0xa5c   : > { %v2672_v59 = vsel %vm2671_vm10, %v3659_v61, %v2668_v56  ;;  %v2695_v43 = vmul.f32 %v2687_v1, %v2351_v58 }
 0xa5d   : > { %v2677_v34 = vsel %vm2674_vm11, %v2676_v26, %v2672_v59 }
 0xa5e   : > { %v2678_v49 = vmul.f32 %v2677_v34, %v2653_v22 }
 0xa60   : > { %v3264_v18 = vclamps-f32 %v2678_v49, 1.0 }
 0xa62   : > { %v2688_v20 = vadd.f32 1.0, %v3264_v18 }
 0xa64   : > { %v2696_v47 = vmul.f32 %v2688_v20, %v2352_v13 }
 0xa66   : > { %v2700_v8 = vpack.c.bf16 %v2696_v47, %v2695_v43 }
 0xa68   : > { %2792 = vmatmul.bf16.gmra.mxu3 %v2700_v8 }
 0xa70   : > { %v2778_v39 = vpop.f32.mrf.mxu3 }
 0xa71   : > { %v2779_v57 = vadd.f32 %v3481_v50, %v2778_v39 }
 0xa73   : > { %v4856_v36 = vadd.f32 %v3660_v53, %v2779_v57 }
 0xa75   : > { %2806 = vst.msk [vmem:[#allocation2] sm:$0xff] %vm732_vm1, %v4856_v36 }
 0xa78   : > { %v2780_v63 = vpop.f32.mrf.mxu3 }
 0xa79   : > { %v2781_v27 = vadd.f32 %v3481_v50, %v2780_v63 }
 0xa7b   : > { %v4860_v25 = vadd.f32 %v3661_v21, %v2781_v27 }
 0xa7d   : > { %2807 = vst.msk [vmem:[#allocation2 + $0x8] sm:$0xff] %vm732_vm1, %v4860_v25 }
 0xaac   : > { %v2783_v31 = vpop.f32.mrf.mxu3 }
 0xaad   : > { %v2784_v10 = vadd.f32 %v3481_v50, %v2783_v31 }
 0xaaf   : > { %v4864_v35 = vadd.f32 %v3662_v33, %v2784_v10 }
 0xab1   : > { %2808 = vst.msk [vmem:[#allocation2 + $0x10] sm:$0xff] %vm732_vm1, %v4864_v35 }
 0xab4   : > { %v2785_v40 = vpop.f32.mrf.mxu3 }
 0xab5   : > { %v2786_v54 = vadd.f32 %v3481_v50, %v2785_v40 }
 0xab7   : > { %v4868_v6 = vadd.f32 %v3663_v15, %v2786_v54 }
 0xab9   : > { %2809 = vst.msk [vmem:[#allocation2 + $0x18] sm:$0xff] %vm732_vm1, %v4868_v6 }
 0xabc   : > { %v2788_v32 = vpop.f32.mrf.mxu3 }
 0xabd   : > { %v2789_v51 = vadd.f32 %v3481_v50, %v2788_v32 }
 0xabf   : > { %v4872_v9 = vadd.f32 %v3664_v41, %v2789_v51 }
 0xac1   : > { %2810 = vst.msk [vmem:[#allocation2 + $0x20] sm:$0xff] %vm732_vm1, %v4872_v9 }
 0xac4   : > { %v2790_v16 = vpop.f32.mrf.mxu3 }
 0xac5   : > { %v2791_v12 = vadd.f32 %v3481_v50, %v2790_v16 }
 0xac7   : > { %v4876_v24 = vadd.f32 %v3665_v37, %v2791_v12 }
 0xac9   : > { %2811 = vst.msk [vmem:[#allocation2 + $0x28] sm:$0xff] %vm732_vm1, %v4876_v24 }
 0xaeb   : > { %v2793_v42 = vpop.f32.mrf.mxu3 }
 0xaec   : > { %v2794_v60 = vadd.f32 %v3481_v50, %v2793_v42 }
 0xaee   : > { %v4880_v0 = vadd.f32 %v3666_v2, %v2794_v60 }
 0xaf0   : > { %2812 = vst.msk [vmem:[#allocation2 + $0x30] sm:$0xff] %vm732_vm1, %v4880_v0 }
 0xaf3   : > { %v2795_v52 = vpop.f32.mrf.mxu3 }
 0xaf4   : > { %v2796_v44 = vadd.f32 %v3481_v50, %v2795_v52  ;;  %2817 = sbr.rel (%p3297_p8) target bundleno = 2856 (0xb28), region = 84 }
 0xaf6   : > { %v4884_v46 = vadd.f32 %v3667_v48, %v2796_v44 }
 0xaf8   : > { %2813 = vst.msk [vmem:[#allocation2 + $0x38] sm:$0xff] %vm732_vm1, %v4884_v46 }
 0xaf9   : > { %3668 = vrsqrt.f32 %v4856_v36  ;;  %v4894_v4 = vld [vmem:[%s3910_s2] sm:$0xff]   ;;  %v2828_v11 = vand.u32 2147483648, %v4856_v36  ;;  %v4901_v14 = vld [vmem:[%s3910_s2 + $0x8] sm:$0xff]   ;;  %vm2825_vm1 = vcmp.eq.f32.partialorder %v4856_v36, inf  ;;  %v2840_v23 = vand.u32 2147483648, %v4860_v25  ;;  %v4914_v55 = vld [vmem:[%s3910_s2 + $0x10] sm:$0xff]  }
 0xafa   : > { %3670 = vrsqrt.f32 %v4860_v25  ;;  %v3339_v7 = vunpack.c.l.bf16 %v4894_v4  ;;  %vm2827_vm12 = vcmp.eq.f32.partialorder %v4856_v36, 0.0  ;;  %vm2837_vm13 = vcmp.eq.f32.partialorder %v4860_v25, inf }
 0xafb   : > { %3672 = vrsqrt.f32 %v4864_v35  ;;  %v3340_v5 = vunpack.c.h.bf16 %v4894_v4  ;;  %v2852_v19 = vand.u32 2147483648, %v4864_v35  ;;  %vm2839_vm14 = vcmp.eq.f32.partialorder %v4860_v25, 0.0 }
 0xafc   : > { %3674 = vrsqrt.f32 %v4868_v6  ;;  %vm2849_vm15 = vcmp.eq.f32.partialorder %v4864_v35, inf  ;;  %v3343_v26 = vunpack.c.l.bf16 %v4901_v14  ;;  %v2864_v22 = vand.u32 2147483648, %v4868_v6 }
 0xafd   : > { %3676 = vrsqrt.f32 %v4872_v9  ;;  %vm2851_vm0 = vcmp.eq.f32.partialorder %v4864_v35, 0.0  ;;  %v3344_v18 = vunpack.c.h.bf16 %v4901_v14  ;;  %vm2861_vm2 = vcmp.eq.f32.partialorder %v4868_v6, inf }
 0xafe   : > { %3678 = vrsqrt.f32 %v4876_v24  ;;  %v2876_v20 = vand.u32 2147483648, %v4872_v9  ;;  %v3347_v43 = vunpack.c.l.bf16 %v4914_v55  ;;  %vm2863_vm3 = vcmp.eq.f32.partialorder %v4868_v6, 0.0 }
 0xaff   : > { %v3669_v45 = vpop.eup %3668  ;;  %3680 = vrsqrt.f32 %v4880_v0  ;;  %vm2873_vm4 = vcmp.eq.f32.partialorder %v4872_v9, inf  ;;  %vm2875_vm5 = vcmp.eq.f32.partialorder %v4872_v9, 0.0  ;;  %v2888_v27 = vand.u32 2147483648, %v4876_v24 }
 0xb00   : > { %v3671_v61 = vpop.eup %3670  ;;  %v2819_v38 = vmul.f32 %v3669_v45, %v4856_v36  ;;  %3682 = vrsqrt.f32 %v4884_v46  ;;  %v3348_v21 = vunpack.c.h.bf16 %v4914_v55  ;;  %vm2885_vm6 = vcmp.eq.f32.partialorder %v4876_v24, inf }
 0xb01   : > { %v3673_v17 = vpop.eup %3672  ;;  %v2831_v28 = vmul.f32 %v3671_v61, %v4860_v25  ;;  %vm2887_vm7 = vcmp.eq.f32.partialorder %v4876_v24, 0.0  ;;  %v2900_v41 = vand.u32 2147483648, %v4880_v0  ;;  %vm2962_vm8 = vcmask 257024  }
 0xb02   : > { %v2820_v30 = vmul.f32 %v3669_v45, %v2819_v38  ;;  %v2843_v3 = vmul.f32 %v3673_v17, %v4864_v35  ;;  %v3675_v62 = vpop.eup %3674  ;;  %vm2897_vm9 = vcmp.eq.f32.partialorder %v4880_v0, inf  ;;  %vm2899_vm10 = vcmp.eq.f32.partialorder %v4880_v0, 0.0 }
 0xb03   : > { %v2832_v56 = vmul.f32 %v3671_v61, %v2831_v28  ;;  %v3677_v29 = vpop.eup %3676  ;;  %v2855_v49 = vmul.f32 %v3675_v62, %v4868_v6  ;;  %vm2909_vm11 = vcmp.eq.f32.partialorder %v4884_v46, inf }
 0xb04   : > { %v2821_v59 = vmul.f32 0.5, %v2820_v30  ;;  %v2844_v34 = vmul.f32 %v3673_v17, %v2843_v3  ;;  %v3679_v1 = vpop.eup %3678  ;;  %v2867_v13 = vmul.f32 %v3677_v29, %v4872_v9 }
 0xb05   : > { %v2833_v58 = vmul.f32 0.5, %v2832_v56  ;;  %v2856_v50 = vmul.f32 %v3675_v62, %v2855_v49  ;;  %v2879_v39 = vmul.f32 %v3679_v1, %v4876_v24  ;;  %v3681_v57 = vpop.eup %3680 }
 0xb06   : > { %v2822_v47 = vsub.f32 1.5, %v2821_v59  ;;  %v2845_v8 = vmul.f32 0.5, %v2844_v34  ;;  %v2868_v63 = vmul.f32 %v3677_v29, %v2867_v13  ;;  %v4935_v54 = vpop.eup %3682  ;;  %v2891_v51 = vmul.f32 %v3681_v57, %v4880_v0 }
 0xb07   : > { %v2834_v53 = vsub.f32 1.5, %v2833_v58  ;;  %v2857_v33 = vmul.f32 0.5, %v2856_v50  ;;  %v2880_v40 = vmul.f32 %v3679_v1, %v2879_v39  ;;  %v2903_v44 = vmul.f32 %v4935_v54, %v4884_v46 }
 0xb08   : > { %v2823_v31 = vmul.f32 %v3669_v45, %v2822_v47  ;;  %v2846_v10 = vsub.f32 1.5, %v2845_v8  ;;  %v2869_v32 = vmul.f32 0.5, %v2868_v63  ;;  %v2892_v52 = vmul.f32 %v3681_v57, %v2891_v51 }
 0xb09   : > { %v2835_v15 = vmul.f32 %v3671_v61, %v2834_v53  ;;  %v2858_v37 = vsub.f32 1.5, %v2857_v33  ;;  %v2881_v42 = vmul.f32 0.5, %v2880_v40  ;;  %v2904_v14 = vmul.f32 %v4935_v54, %v2903_v44 }
 0xb0a   : > { %v2824_v16 = vmul.f32 %v2823_v31, %v4856_v36  ;;  %v2847_v12 = vmul.f32 %v3673_v17, %v2846_v10  ;;  %v2870_v2 = vsub.f32 1.5, %v2869_v32  ;;  %v2893_v3 = vmul.f32 0.5, %v2892_v52 }
 0xb0b   : > { %v2836_v60 = vmul.f32 %v2835_v15, %v4860_v25  ;;  %v2859_v61 = vmul.f32 %v3675_v62, %v2858_v37  ;;  %v2882_v38 = vsub.f32 1.5, %v2881_v42  ;;  %v2905_v37 = vmul.f32 0.5, %v2904_v14 }
 0xb0c   : > { %v2826_v48 = vsel %vm2825_vm1, %v4856_v36, %v2824_v16  ;;  %v2848_v45 = vmul.f32 %v2847_v12, %v4864_v35  ;;  %v2871_v30 = vmul.f32 %v3677_v29, %v2870_v2  ;;  %v2894_v8 = vsub.f32 1.5, %v2893_v3 }
 0xb0d   : > { %v2829_v17 = vsel %vm2827_vm12, %v2828_v11, %v2826_v48  ;;  %v2838_v28 = vsel %vm2837_vm13, %v4860_v25, %v2836_v60  ;;  %v2860_v11 = vmul.f32 %v2859_v61, %v4868_v6  ;;  %v2883_v58 = vmul.f32 %v3679_v1, %v2882_v38 }
 0xb0e   : > { %v2914_v56 = vmul.f32 0.1, %v2829_v17  ;;  %v2841_v62 = vsel %vm2839_vm14, %v2840_v23, %v2838_v28  ;;  %v2850_v59 = vsel %vm2849_vm15, %v4864_v35, %v2848_v45  ;;  %v2872_v49 = vmul.f32 %v2871_v30, %v4872_v9 }
 0xb0f   : > { %v2915_v34 = vmul.f32 0.1, %v2841_v62  ;;  %v2853_v29 = vsel %vm2851_vm0, %v2852_v19, %v2850_v59  ;;  %v2862_v23 = vsel %vm2861_vm2, %v4868_v6, %v2860_v11  ;;  %v2895_v10 = vmul.f32 %v3681_v57, %v2894_v8 }
 0xb10   : > { %v2938_v13 = vmul.f32 %v3339_v7, %v2914_v56  ;;  %v2916_v47 = vmul.f32 0.1, %v2853_v29  ;;  %v2865_v19 = vsel %vm2863_vm3, %v2864_v22, %v2862_v23  ;;  %v2874_v1 = vsel %vm2873_vm4, %v4872_v9, %v2872_v49 }
 0xb11   : > { %v2939_v50 = vmul.f32 %v3340_v5, %v2915_v34  ;;  %v2884_v7 = vmul.f32 %v2883_v58, %v4876_v24  ;;  %v2917_v4 = vmul.f32 0.1, %v2865_v19  ;;  %v2877_v5 = vsel %vm2875_vm5, %v2876_v20, %v2874_v1  ;;  %v3358_v20 = vld [vmem:[%s3910_s2 + $0x18] sm:$0xff]  }
 0xb12   : > { %v2946_v39 = vadd.f32 %v2938_v13, %v4856_v36  ;;  %v2940_v53 = vmul.f32 %v3343_v26, %v2916_v47  ;;  %v2918_v63 = vmul.f32 0.1, %v2877_v5  ;;  %v2896_v51 = vmul.f32 %v2895_v10, %v4880_v0 }
 0xb13   : > { %v2947_v22 = vadd.f32 %v2939_v50, %v4860_v25  ;;  %v2886_v31 = vsel %vm2885_vm6, %v4876_v24, %v2884_v7  ;;  %v2941_v26 = vmul.f32 %v3344_v18, %v2917_v4  ;;  %v3351_v16 = vunpack.c.l.bf16 %v3358_v20 }
 0xb14   : > { %v2954_v36 = vpack.c.bf16 %v2946_v39, %v2946_v39  ;;  %v2948_v33 = vadd.f32 %v2940_v53, %v4864_v35  ;;  %v2889_v40 = vsel %vm2887_vm7, %v2888_v27, %v2886_v31  ;;  %v2942_v25 = vmul.f32 %v3347_v43, %v2918_v63 }
 0xb15   : > { %v2955_v15 = vpack.c.bf16 %v2947_v22, %v2947_v22  ;;  %v2919_v32 = vmul.f32 0.1, %v2889_v40  ;;  %v2949_v35 = vadd.f32 %v2941_v26, %v4868_v6  ;;  %v2898_v43 = vsel %vm2897_vm9, %v4880_v0, %v2896_v51 }
 0xb16   : > { %2963 = vst.msk [vmem:[%s3915_s22] sm:$0xf] %vm2962_vm8, %v2954_v36  ;;  %v2956_v57 = vpack.c.bf16 %v2948_v33, %v2948_v33  ;;  %v2950_v18 = vadd.f32 %v2942_v25, %v4872_v9  ;;  %v2901_v6 = vsel %vm2899_vm10, %v2900_v41, %v2898_v43  ;;  %vm2911_vm1 = vcmp.eq.f32.partialorder %v4884_v46, 0.0 }
 0xb17   : > { %2964 = vst.msk [vmem:[%s3915_s22 + $0x4] sm:$0xf] %vm2962_vm8, %v2955_v15  ;;  %v2943_v27 = vmul.f32 %v3348_v21, %v2919_v32  ;;  %v2957_v12 = vpack.c.bf16 %v2949_v35, %v2949_v35  ;;  %v2920_v55 = vmul.f32 0.1, %v2901_v6  ;;  %v2906_v21 = vsub.f32 1.5, %v2905_v37 }
 0xb18   : > { %2965 = vst.msk [vmem:[%s3915_s22 + $0x8] sm:$0xf] %vm2962_vm8, %v2956_v57  ;;  %v2958_v42 = vpack.c.bf16 %v2950_v18, %v2950_v18  ;;  %v3352_v61 = vunpack.c.h.bf16 %v3358_v20 }
 0xb19   : > { %v2951_v9 = vadd.f32 %v2943_v27, %v4876_v24  ;;  %2966 = vst.msk [vmem:[%s3915_s22 + $0xc] sm:$0xf] %vm2962_vm8, %v2957_v12  ;;  %v2944_v2 = vmul.f32 %v3351_v16, %v2920_v55  ;;  %v2907_v52 = vmul.f32 %v4935_v54, %v2906_v21  ;;  %v2912_v24 = vand.u32 2147483648, %v4884_v46 }
 0xb1a   : > { %2967 = vst.msk [vmem:[%s3915_s22 + $0x10] sm:$0xf] %vm2962_vm8, %v2958_v42 }
 0xb1b   : > { %v2959_v60 = vpack.c.bf16 %v2951_v9, %v2951_v9  ;;  %v2952_v41 = vadd.f32 %v2944_v2, %v4880_v0  ;;  %v2908_v44 = vmul.f32 %v2907_v52, %v4884_v46 }
 0xb1d   : > { %2968 = vst.msk [vmem:[%s3915_s22 + $0x14] sm:$0xf] %vm2962_vm8, %v2959_v60  ;;  %v2960_v48 = vpack.c.bf16 %v2952_v41, %v2952_v41  ;;  %v2910_v45 = vsel %vm2909_vm11, %v4884_v46, %v2908_v44 }
 0xb1e   : > { %v2913_v54 = vsel %vm2911_vm1, %v2912_v24, %v2910_v45 }
 0xb1f   : > { %2969 = vst.msk [vmem:[%s3915_s22 + $0x18] sm:$0xf] %vm2962_vm8, %v2960_v48  ;;  %v2921_v38 = vmul.f32 0.1, %v2913_v54 }
 0xb21   : > { %v2945_v17 = vmul.f32 %v3352_v61, %v2921_v38 }
 0xb23   : > { %v2953_v28 = vadd.f32 %v2945_v17, %v4884_v46 }
 0xb25   : > { %v2961_v0 = vpack.c.bf16 %v2953_v28, %v2953_v28 }
 0xb27   : > { %2970 = vst.msk [vmem:[%s3915_s22 + $0x1c] sm:$0xf] %vm2962_vm8, %v2961_v0 }
 0xb28 PF: > { %s5107_s19 = sld [smem:[#allocation6_spill]] }
 0xb29   : > { %s5108_s29 = sld [smem:[#allocation4_spill]] }
 0xb2a   : > { %s5109_s30 = sld [smem:[#allocation5_spill]] }
 0xb2b   : > { %s5110_s15 = sld [smem:[#allocation7_spill]] }
 0xb2c   : > { %s5111_s16 = sld [smem:[#allocation8_spill]] }
 0xb2e   : > { %s24_s17 = sadd.s32 1, %s5107_s19  }
 0xb2f   : > { %p21_p9 = scmp.ge.s32.totalorder %s24_s17, 6  }
 0xb31   :  { %23 = sbr.rel (!%p21_p9) target bundleno = 8 (0x8), region = 153 }

</bundles_post_ra>
